<compile_context>
chip_gen: v7x
topology: tpu7x:2x2x1
jax: 0.10.0
libtpu: 0.0.40
codegen_flags: <defaults>
</compile_context>

<pallas_src>
import functools

import jax
import jax.numpy as jnp
from jax import lax
from jax.experimental import pallas as pl
from jax.experimental.pallas import tpu as pltpu

EPS = 1e-5  # PyTorch BatchNorm2d default eps


# ----------------------------- Pallas kernels -----------------------------

def _round_up(x, m):
    return (x + m - 1) // m * m


def _pick_tile(dim, unit, cap):
    """Return (tile, padded_dim): tile is a multiple of `unit`, <= cap, divides padded_dim."""
    padded = _round_up(max(dim, unit), unit)
    tile = min(cap, padded)
    while padded % tile != 0:
        tile -= unit
    return tile, padded


def _fused_matmul_kernel(a_ref, b_ref, prs_ref, prh_ref, pos_ref, poh_ref,
                         o_ref, acc_ref, *, fuse_pre, fuse_post):
    k = pl.program_id(2)

    @pl.when(k == 0)
    def _():
        acc_ref[...] = jnp.zeros_like(acc_ref)

    a = a_ref[...]
    if fuse_pre:  # relu(x * scale + shift) on the activation tile (per K column)
        a = jnp.maximum(a.astype(jnp.float32) * prs_ref[...] + prh_ref[...], 0.0)
    acc_ref[...] += jnp.dot(a.astype(jnp.bfloat16), b_ref[...],
                            preferred_element_type=jnp.float32)

    @pl.when(k == pl.num_programs(2) - 1)
    def _():
        out = acc_ref[...]
        if fuse_post:  # relu(acc * scale + shift) on the result tile (per N column)
            out = jnp.maximum(out * pos_ref[...] + poh_ref[...], 0.0)
        o_ref[...] = out.astype(o_ref.dtype)


def fused_matmul(a, b, pre=None, post=None, out_dtype=jnp.bfloat16,
                 tm_cap=512, tn_cap=256, tk_cap=512):
    """(M,K) @ (K,N) bf16 MXU matmul with optional fused BN+ReLU prologue/epilogue."""
    M, K = a.shape
    K2, N = b.shape
    assert K == K2
    fuse_pre, fuse_post = pre is not None, post is not None

    tm, Mp = _pick_tile(M, 8, tm_cap)
    tn, Np = _pick_tile(N, 128, tn_cap)
    tk, Kp = _pick_tile(K, 128, tk_cap)

    a = a.astype(jnp.bfloat16)
    b = b.astype(jnp.bfloat16)
    if (Mp, Kp) != (M, K):
        a = jnp.pad(a, ((0, Mp - M), (0, Kp - K)))
    if (Kp, Np) != (K, N):
        b = jnp.pad(b, ((0, Kp - K), (0, Np - N)))

    prs = (pre[0] if fuse_pre else jnp.ones((K,), jnp.float32)).astype(jnp.float32)
    prh = (pre[1] if fuse_pre else jnp.zeros((K,), jnp.float32)).astype(jnp.float32)
    pos = (post[0] if fuse_post else jnp.ones((N,), jnp.float32)).astype(jnp.float32)
    poh = (post[1] if fuse_post else jnp.zeros((N,), jnp.float32)).astype(jnp.float32)
    prs = jnp.pad(prs, (0, Kp - K)).reshape(1, Kp)
    prh = jnp.pad(prh, (0, Kp - K)).reshape(1, Kp)
    pos = jnp.pad(pos, (0, Np - N)).reshape(1, Np)
    poh = jnp.pad(poh, (0, Np - N)).reshape(1, Np)

    grid = (Mp // tm, Np // tn, Kp // tk)
    kernel = functools.partial(_fused_matmul_kernel,
                               fuse_pre=fuse_pre, fuse_post=fuse_post)
    out = pl.pallas_call(
        kernel,
        out_shape=jax.ShapeDtypeStruct((Mp, Np), out_dtype),
        grid=grid,
        in_specs=[
            pl.BlockSpec((tm, tk), lambda i, j, k: (i, k)),
            pl.BlockSpec((tk, tn), lambda i, j, k: (k, j)),
            pl.BlockSpec((1, tk), lambda i, j, k: (0, k)),
            pl.BlockSpec((1, tk), lambda i, j, k: (0, k)),
            pl.BlockSpec((1, tn), lambda i, j, k: (0, j)),
            pl.BlockSpec((1, tn), lambda i, j, k: (0, j)),
        ],
        out_specs=pl.BlockSpec((tm, tn), lambda i, j, k: (i, j)),
        scratch_shapes=[pltpu.VMEM((tm, tn), jnp.float32)],
        compiler_params=pltpu.CompilerParams(
            dimension_semantics=("parallel", "parallel", "arbitrary"),
            vmem_limit_bytes=32 * 1024 * 1024),
        cost_estimate=pl.CostEstimate(
            flops=2 * Mp * Np * Kp,
            transcendentals=0,
            bytes_accessed=2 * (Mp * Kp + Kp * Np + Mp * Np)),
    )(a, b, prs, prh, pos, poh)
    return out[:M, :N]


def _bn_relu_gap_kernel(x_ref, s_ref, h_ref, o_ref):
    x = x_ref[...].astype(jnp.float32)
    y = jnp.maximum(x * s_ref[...] + h_ref[...], 0.0)
    o_ref[...] = jnp.mean(y, axis=1)


def bn_relu_gap_pallas(x_nhwc, scale, shift):
    """relu(bn(x)) -> adaptive_avg_pool2d((1,1)) -> flatten, fused (final tiny tensor)."""
    N, H, W, C = x_nhwc.shape
    HW = H * W
    x = x_nhwc.reshape(N, HW, C)
    return pl.pallas_call(
        _bn_relu_gap_kernel,
        out_shape=jax.ShapeDtypeStruct((N, C), jnp.float32),
        grid=(1,),
        in_specs=[pl.BlockSpec((N, HW, C), lambda i: (0, 0, 0)),
                  pl.BlockSpec((1, 1, C), lambda i: (0, 0, 0)),
                  pl.BlockSpec((1, 1, C), lambda i: (0, 0, 0))],
        out_specs=pl.BlockSpec((N, C), lambda i: (0, 0)),
        compiler_params=pltpu.CompilerParams(dimension_semantics=("arbitrary",)),
    )(x, scale.reshape(1, 1, C), shift.reshape(1, 1, C))


# ----------------------------- layer helpers ------------------------------

def conv2d_fused(x_nhwc, w_packed, kh, kw, stride=1, pad=0, pre=None, post=None):
    """Bias-free Conv2d (nn.Conv2d semantics).  x: NHWC bf16, w_packed: (kh*kw*cin, cout).

    `pre`  = (scale, shift): fuse relu(bn(x)) on the conv INPUT  (1x1 convs only).
    `post` = (scale, shift): fuse relu(bn(.)) on the conv OUTPUT.
    """
    N, H, W, C = x_nhwc.shape
    cout = w_packed.shape[1]
    assert w_packed.shape[0] == kh * kw * C
    if kh == 1 and kw == 1 and stride == 1 and pad == 0:
        col = x_nhwc.reshape(N * H * W, C)
        Ho, Wo = H, W
    else:
        # TODO(synk): im2col still materializes kh*kw shifted copies in HBM; a
        # halo-tiled tap-accumulating Pallas conv kernel would remove that traffic.
        assert pre is None, "BN prologue only fused on 1x1 (no-padding) convs"
        xp = jnp.pad(x_nhwc, ((0, 0), (pad, pad), (pad, pad), (0, 0)))
        Ho = (H + 2 * pad - kh) // stride + 1
        Wo = (W + 2 * pad - kw) // stride + 1
        patches = [xp[:, i:i + stride * Ho:stride, j:j + stride * Wo:stride, :]
                   for i in range(kh) for j in range(kw)]
        col = jnp.concatenate(patches, axis=-1).reshape(N * Ho * Wo, kh * kw * C)
    y = fused_matmul(col, w_packed, pre=pre, post=post)
    return y.reshape(N, Ho, Wo, cout)


def maxpool_3x3_s2_p1(x_nhwc):
    # TODO(synk): windowed max-pool kept as XLA reduce_window glue (not a Pallas kernel).
    neg_inf = jnp.asarray(-jnp.inf, dtype=x_nhwc.dtype)
    return lax.reduce_window(
        x_nhwc, neg_inf, lax.max,
        window_dimensions=(1, 3, 3, 1),
        window_strides=(1, 2, 2, 1),
        padding=((0, 0), (1, 1), (1, 1), (0, 0)))


def avgpool_2x2(x_nhwc):
    # AvgPool2d(2): crop odd spatial dims (PyTorch floors), then 2x2 mean (XLA glue).
    N, H, W, C = x_nhwc.shape
    x = x_nhwc[:, :(H // 2) * 2, :(W // 2) * 2, :]
    x = x.reshape(N, H // 2, 2, W // 2, 2, C).astype(jnp.float32).mean(axis=(2, 4))
    return x.astype(jnp.bfloat16)


# ------------------------- parameter construction -------------------------

def init_params(key, growth_rate, block_config, num_init_features, bn_size):
    keys = iter(jax.random.split(key, 8192))

    def conv_w(cout, cin, k):
        # nn.Conv2d weight (cout,cin,k,k) pre-packed once to (k*k*cin, cout) bf16.
        w = 0.05 * jax.random.normal(next(keys), (cout, cin, k, k), jnp.float32)
        return jnp.transpose(w, (2, 3, 1, 0)).reshape(k * k * cin, cout).astype(jnp.bfloat16)

    def bn_folded(c):
        # Inference-mode BatchNorm2d folded to (scale, shift).
        k1, k2, k3, k4 = jax.random.split(next(keys), 4)
        gamma = jax.random.uniform(k1, (c,), jnp.float32, 0.5, 1.5)
        beta = 0.1 * jax.random.normal(k2, (c,), jnp.float32)
        mean = 0.1 * jax.random.normal(k3, (c,), jnp.float32)
        var = jax.random.uniform(k4, (c,), jnp.float32, 0.5, 1.5)
        scale = gamma / jnp.sqrt(var + EPS)
        shift = beta - mean * scale
        return scale, shift

    params = {"w0": conv_w(num_init_features, 3, 7)}
    params["s0"], params["b0"] = bn_folded(num_init_features)
    params["blocks"] = []
    num_features = num_init_features
    for i, num_layers in enumerate(block_config):
        layers = []
        for l in range(num_layers):
            cin = num_features + l * growth_rate
            s1, b1 = bn_folded(cin)
            s2, b2 = bn_folded(bn_size * growth_rate)
            layers.append(dict(
                s1=s1, b1=b1, w1=conv_w(bn_size * growth_rate, cin, 1),
                s2=s2, b2=b2, w2=conv_w(growth_rate, bn_size * growth_rate, 3)))
        params["blocks"].append(layers)
        num_features += num_layers * growth_rate
        if i != len(block_config) - 1:
            st, bt = bn_folded(num_features)
            params["transition%d" % (i + 1)] = dict(
                s=st, b=bt, w=conv_w(num_features // 2, num_features, 1))
            num_features //= 2
    params["s5"], params["b5"] = bn_folded(num_features)
    return params


# ------------------------------ forward pass ------------------------------

def dense_block(x, layer_params, growth_rate):
    """Dense block with a pre-allocated channel buffer instead of per-layer concat."""
    N, H, W, C0 = x.shape
    L = len(layer_params)
    buf = jnp.zeros((N, H, W, C0 + L * growth_rate), jnp.bfloat16)
    buf = lax.dynamic_update_slice(buf, x.astype(jnp.bfloat16), (0, 0, 0, 0))
    for l, lp in enumerate(layer_params):
        cin = C0 + l * growth_rate
        xl = buf[:, :, :, :cin]
        # norm1+relu1 fused as prologue, conv1 (1x1), norm2+relu2 fused as epilogue.
        h = conv2d_fused(xl, lp["w1"], 1, 1,
                         pre=(lp["s1"], lp["b1"]), post=(lp["s2"], lp["b2"]))
        # conv2 (3x3, pad 1); drop_rate == 0 -> F.dropout is the identity.
        h = conv2d_fused(h, lp["w2"], 3, 3, stride=1, pad=1)
        # Equivalent of torch.cat([x, new_features], dim=1).
        buf = lax.dynamic_update_slice(buf, h, (0, 0, 0, cin))
    return buf


def densenet_forward(params, x_nchw, block_config, growth_rate):
    x = jnp.transpose(x_nchw, (0, 2, 3, 1)).astype(jnp.bfloat16)  # NCHW -> NHWC

    # stem: conv0 -> norm0 -> relu0 (fused epilogue) -> pool0
    x = conv2d_fused(x, params["w0"], 7, 7, stride=2, pad=3,
                     post=(params["s0"], params["b0"]))
    x = maxpool_3x3_s2_p1(x)

    # dense blocks + transitions
    for i in range(len(block_config)):
        x = dense_block(x, params["blocks"][i], growth_rate)
        if i != len(block_config) - 1:
            tp = params["transition%d" % (i + 1)]
            x = conv2d_fused(x, tp["w"], 1, 1, pre=(tp["s"], tp["b"]))  # norm+relu+conv
            x = avgpool_2x2(x)

    # norm5 + forward's F.relu + adaptive_avg_pool2d((1,1)).view(N, -1), fused.
    return bn_relu_gap_pallas(x, params["s5"], params["b5"])


# ---------------------------------- main -----------------------------------

if __name__ == "__main__":
    # Reduced DenseNet configuration (same architecture/semantics as DenseNet121,
    # smaller growth/block counts so the demo compiles & runs quickly on TPU).
    GROWTH_RATE = 16
    BLOCK_CONFIG = (2, 2, 2, 2)
    NUM_INIT_FEATURES = 32
    BN_SIZE = 4

    key = jax.random.PRNGKey(0)
    pkey, xkey = jax.random.split(key)

    params = init_params(pkey, GROWTH_RATE, BLOCK_CONFIG, NUM_INIT_FEATURES, BN_SIZE)
    x = jax.random.normal(xkey, (2, 3, 32, 32), jnp.float32)  # NCHW like PyTorch

    fwd = jax.jit(functools.partial(densenet_forward,
                                    block_config=BLOCK_CONFIG,
                                    growth_rate=GROWTH_RATE))
    out = jax.block_until_ready(fwd(params, x))

    expected_c = NUM_INIT_FEATURES
    for i, nl in enumerate(BLOCK_CONFIG):
        expected_c += nl * GROWTH_RATE
        if i != len(BLOCK_CONFIG) - 1:
            expected_c //= 2
    assert out.shape == (2, expected_c), out.shape
    assert bool(jnp.all(jnp.isfinite(out)))
    print("KERNEL_OK")
</pallas_src>

<mosaic_0001>
module attributes {stable_mosaic.version = 11 : i64} {
  func.func @_fused_matmul_kernel(%arg0: i32, %arg1: i32, %arg2: i32, %arg3: memref<512x256xbf16, #tpu.memory_space<vmem>>, %arg4: memref<256x128xbf16, #tpu.memory_space<vmem>>, %arg5: memref<1x256xf32, #tpu.memory_space<vmem>>, %arg6: memref<1x256xf32, #tpu.memory_space<vmem>>, %arg7: memref<1x128xf32, #tpu.memory_space<vmem>>, %arg8: memref<1x128xf32, #tpu.memory_space<vmem>>, %arg9: memref<512x128xbf16, #tpu.memory_space<vmem>>, %arg10: memref<512x128xf32, #tpu.memory_space<vmem>>) attributes {dimension_semantics = [#tpu.dimension_semantics<parallel>, #tpu.dimension_semantics<parallel>, #tpu.dimension_semantics<arbitrary>], iteration_bounds = array<i64: 1, 1, 1>, scalar_prefetch = 0 : i64, scratch_operands = 1 : i64, tpu.core_type = #tpu.core_type<tc>, window_params = [{transform_indices = @transform_0, window_bounds = array<i64: 512, 256>}, {transform_indices = @transform_1, window_bounds = array<i64: 256, 128>}, {transform_indices = @transform_2, window_bounds = array<i64: 1, 256>}, {transform_indices = @transform_3, window_bounds = array<i64: 1, 256>}, {transform_indices = @transform_4, window_bounds = array<i64: 1, 128>}, {transform_indices = @transform_5, window_bounds = array<i64: 1, 128>}, {transform_indices = @transform_6, window_bounds = array<i64: 512, 128>}]} {
    %c0_i32 = arith.constant 0 : i32
    %0 = arith.cmpi eq, %arg2, %c0_i32 : i32
    %1 = arith.extui %0 : i1 to i32
    %c0_i32_0 = arith.constant 0 : i32
    %2 = arith.cmpi ne, %1, %c0_i32_0 : i32
    scf.if %2 {
      %cst_10 = arith.constant 0.000000e+00 : f32
      %12 = vector.broadcast %cst_10 : f32 to vector<512x128xf32>
      %c0_11 = arith.constant 0 : index
      %c0_12 = arith.constant 0 : index
      %13 = vector.load %arg10[%c0_11, %c0_12] : memref<512x128xf32, #tpu.memory_space<vmem>>, vector<512x128xf32>
      tpu.vector_store %arg10[%c0_11, %c0_12], %12 {strides = array<i32>} : memref<512x128xf32, #tpu.memory_space<vmem>>, vector<512x128xf32>,
    } else {
    }
    %c0 = arith.constant 0 : index
    %c0_1 = arith.constant 0 : index
    %3 = vector.load %arg3[%c0, %c0_1] : memref<512x256xbf16, #tpu.memory_space<vmem>>, vector<512x256xbf16>
    %c0_2 = arith.constant 0 : index
    %c0_3 = arith.constant 0 : index
    %4 = vector.load %arg10[%c0_2, %c0_3] : memref<512x128xf32, #tpu.memory_space<vmem>>, vector<512x128xf32>
    %c0_4 = arith.constant 0 : index
    %c0_5 = arith.constant 0 : index
    %5 = vector.load %arg4[%c0_4, %c0_5] : memref<256x128xbf16, #tpu.memory_space<vmem>>, vector<256x128xbf16>
    %cst = arith.constant dense<0.000000e+00> : vector<512x128xf32>
    %6 = tpu.matmul %3, %5, %cst {dimension_numbers = #tpu.dot_dimension_numbers<[1], [0], [0], [1], [0, 0, 1, 1], [], []>} : vector<512x256xbf16>, vector<256x128xbf16>, vector<512x128xf32> -> vector<512x128xf32>
    %7 = arith.addf %4, %6 : vector<512x128xf32>
    %c0_6 = arith.constant 0 : index
    %c0_7 = arith.constant 0 : index
    %8 = vector.load %arg10[%c0_6, %c0_7] : memref<512x128xf32, #tpu.memory_space<vmem>>, vector<512x128xf32>
    tpu.vector_store %arg10[%c0_6, %c0_7], %7 {strides = array<i32>} : memref<512x128xf32, #tpu.memory_space<vmem>>, vector<512x128xf32>,
    %c0_i32_8 = arith.constant 0 : i32
    %9 = arith.cmpi eq, %arg2, %c0_i32_8 : i32
    %10 = arith.extui %9 : i1 to i32
    %c0_i32_9 = arith.constant 0 : i32
    %11 = arith.cmpi ne, %10, %c0_i32_9 : i32
    scf.if %11 {
      %c0_10 = arith.constant 0 : index
      %c0_11 = arith.constant 0 : index
      %12 = vector.load %arg10[%c0_10, %c0_11] : memref<512x128xf32, #tpu.memory_space<vmem>>, vector<512x128xf32>
      %c0_12 = arith.constant 0 : index
      %c0_13 = arith.constant 0 : index
      %13 = vector.load %arg7[%c0_12, %c0_13] : memref<1x128xf32, #tpu.memory_space<vmem>>, vector<1x128xf32>
      %14 = vector.broadcast %13 : vector<1x128xf32> to vector<512x128xf32>
      %15 = arith.mulf %12, %14 : vector<512x128xf32>
      %c0_14 = arith.constant 0 : index
      %c0_15 = arith.constant 0 : index
      %16 = vector.load %arg8[%c0_14, %c0_15] : memref<1x128xf32, #tpu.memory_space<vmem>>, vector<1x128xf32>
      %17 = vector.broadcast %16 : vector<1x128xf32> to vector<512x128xf32>
      %18 = arith.addf %15, %17 : vector<512x128xf32>
      %cst_16 = arith.constant 0.000000e+00 : f32
      %19 = vector.broadcast %cst_16 : f32 to vector<512x128xf32>
      %20 = arith.maximumf %18, %19 : vector<512x128xf32>
      %21 = arith.truncf %20 : vector<512x128xf32> to vector<512x128xbf16>
      %c0_17 = arith.constant 0 : index
      %c0_18 = arith.constant 0 : index
      %22 = vector.load %arg9[%c0_17, %c0_18] : memref<512x128xbf16, #tpu.memory_space<vmem>>, vector<512x128xbf16>
      tpu.vector_store %arg9[%c0_17, %c0_18], %21 {strides = array<i32>} : memref<512x128xbf16, #tpu.memory_space<vmem>>, vector<512x128xbf16>,
    } else {
    }
    return
  }
  func.func @transform_0(%arg0: i32, %arg1: i32, %arg2: i32) -> (i32, i32) {
    %c0_i32 = arith.constant 0 : i32
    return %arg0, %arg2 : i32, i32
  }
  func.func @transform_1(%arg0: i32, %arg1: i32, %arg2: i32) -> (i32, i32) {
    %c0_i32 = arith.constant 0 : i32
    return %arg2, %arg1 : i32, i32
  }
  func.func @transform_2(%arg0: i32, %arg1: i32, %arg2: i32) -> (i32, i32) {
    %c0_i32 = arith.constant 0 : i32
    %c0_i32_0 = arith.constant 0 : i32
    return %c0_i32, %arg2 : i32, i32
  }
  func.func @transform_3(%arg0: i32, %arg1: i32, %arg2: i32) -> (i32, i32) {
    %c0_i32 = arith.constant 0 : i32
    %c0_i32_0 = arith.constant 0 : i32
    return %c0_i32, %arg2 : i32, i32
  }
  func.func @transform_4(%arg0: i32, %arg1: i32, %arg2: i32) -> (i32, i32) {
    %c0_i32 = arith.constant 0 : i32
    %c0_i32_0 = arith.constant 0 : i32
    return %c0_i32, %arg1 : i32, i32
  }
  func.func @transform_5(%arg0: i32, %arg1: i32, %arg2: i32) -> (i32, i32) {
    %c0_i32 = arith.constant 0 : i32
    %c0_i32_0 = arith.constant 0 : i32
    return %c0_i32, %arg1 : i32, i32
  }
  func.func @transform_6(%arg0: i32, %arg1: i32, %arg2: i32) -> (i32, i32) {
    %c0_i32 = arith.constant 0 : i32
    return %arg0, %arg1 : i32, i32
  }
}

module attributes {stable_mosaic.version = 11 : i64} {
  func.func @_fused_matmul_kernel(%arg0: i32, %arg1: i32, %arg2: i32, %arg3: memref<128x128xbf16, #tpu.memory_space<vmem>>, %arg4: memref<128x128xbf16, #tpu.memory_space<vmem>>, %arg5: memref<1x128xf32, #tpu.memory_space<vmem>>, %arg6: memref<1x128xf32, #tpu.memory_space<vmem>>, %arg7: memref<1x128xf32, #tpu.memory_space<vmem>>, %arg8: memref<1x128xf32, #tpu.memory_space<vmem>>, %arg9: memref<128x128xbf16, #tpu.memory_space<vmem>>, %arg10: memref<128x128xf32, #tpu.memory_space<vmem>>) attributes {dimension_semantics = [#tpu.dimension_semantics<parallel>, #tpu.dimension_semantics<parallel>, #tpu.dimension_semantics<arbitrary>], iteration_bounds = array<i64: 1, 1, 1>, scalar_prefetch = 0 : i64, scratch_operands = 1 : i64, tpu.core_type = #tpu.core_type<tc>, window_params = [{transform_indices = @transform_0, window_bounds = array<i64: 128, 128>}, {transform_indices = @transform_1, window_bounds = array<i64: 128, 128>}, {transform_indices = @transform_2, window_bounds = array<i64: 1, 128>}, {transform_indices = @transform_3, window_bounds = array<i64: 1, 128>}, {transform_indices = @transform_4, window_bounds = array<i64: 1, 128>}, {transform_indices = @transform_5, window_bounds = array<i64: 1, 128>}, {transform_indices = @transform_6, window_bounds = array<i64: 128, 128>}]} {
    %c0_i32 = arith.constant 0 : i32
    %0 = arith.cmpi eq, %arg2, %c0_i32 : i32
    %1 = arith.extui %0 : i1 to i32
    %c0_i32_0 = arith.constant 0 : i32
    %2 = arith.cmpi ne, %1, %c0_i32_0 : i32
    scf.if %2 {
      %cst_15 = arith.constant 0.000000e+00 : f32
      %22 = vector.broadcast %cst_15 : f32 to vector<128x128xf32>
      %c0_16 = arith.constant 0 : index
      %c0_17 = arith.constant 0 : index
      %23 = vector.load %arg10[%c0_16, %c0_17] : memref<128x128xf32, #tpu.memory_space<vmem>>, vector<128x128xf32>
      tpu.vector_store %arg10[%c0_16, %c0_17], %22 {strides = array<i32>} : memref<128x128xf32, #tpu.memory_space<vmem>>, vector<128x128xf32>,
    } else {
    }
    %c0 = arith.constant 0 : index
    %c0_1 = arith.constant 0 : index
    %3 = vector.load %arg3[%c0, %c0_1] : memref<128x128xbf16, #tpu.memory_space<vmem>>, vector<128x128xbf16>
    %4 = arith.extf %3 : vector<128x128xbf16> to vector<128x128xf32>
    %c0_2 = arith.constant 0 : index
    %c0_3 = arith.constant 0 : index
    %5 = vector.load %arg5[%c0_2, %c0_3] : memref<1x128xf32, #tpu.memory_space<vmem>>, vector<1x128xf32>
    %6 = vector.broadcast %5 : vector<1x128xf32> to vector<128x128xf32>
    %7 = arith.mulf %4, %6 : vector<128x128xf32>
    %c0_4 = arith.constant 0 : index
    %c0_5 = arith.constant 0 : index
    %8 = vector.load %arg6[%c0_4, %c0_5] : memref<1x128xf32, #tpu.memory_space<vmem>>, vector<1x128xf32>
    %9 = vector.broadcast %8 : vector<1x128xf32> to vector<128x128xf32>
    %10 = arith.addf %7, %9 : vector<128x128xf32>
    %cst = arith.constant 0.000000e+00 : f32
    %11 = vector.broadcast %cst : f32 to vector<128x128xf32>
    %12 = arith.maximumf %10, %11 : vector<128x128xf32>
    %c0_6 = arith.constant 0 : index
    %c0_7 = arith.constant 0 : index
    %13 = vector.load %arg10[%c0_6, %c0_7] : memref<128x128xf32, #tpu.memory_space<vmem>>, vector<128x128xf32>
    %14 = arith.truncf %12 : vector<128x128xf32> to vector<128x128xbf16>
    %c0_8 = arith.constant 0 : index
    %c0_9 = arith.constant 0 : index
    %15 = vector.load %arg4[%c0_8, %c0_9] : memref<128x128xbf16, #tpu.memory_space<vmem>>, vector<128x128xbf16>
    %cst_10 = arith.constant dense<0.000000e+00> : vector<128x128xf32>
    %16 = tpu.matmul %14, %15, %cst_10 {dimension_numbers = #tpu.dot_dimension_numbers<[1], [0], [0], [1], [0, 0, 1, 1], [], []>} : vector<128x128xbf16>, vector<128x128xbf16>, vector<128x128xf32> -> vector<128x128xf32>
    %17 = arith.addf %13, %16 : vector<128x128xf32>
    %c0_11 = arith.constant 0 : index
    %c0_12 = arith.constant 0 : index
    %18 = vector.load %arg10[%c0_11, %c0_12] : memref<128x128xf32, #tpu.memory_space<vmem>>, vector<128x128xf32>
    tpu.vector_store %arg10[%c0_11, %c0_12], %17 {strides = array<i32>} : memref<128x128xf32, #tpu.memory_space<vmem>>, vector<128x128xf32>,
    %c0_i32_13 = arith.constant 0 : i32
    %19 = arith.cmpi eq, %arg2, %c0_i32_13 : i32
    %20 = arith.extui %19 : i1 to i32
    %c0_i32_14 = arith.constant 0 : i32
    %21 = arith.cmpi ne, %20, %c0_i32_14 : i32
    scf.if %21 {
      %c0_15 = arith.constant 0 : index
      %c0_16 = arith.constant 0 : index
      %22 = vector.load %arg10[%c0_15, %c0_16] : memref<128x128xf32, #tpu.memory_space<vmem>>, vector<128x128xf32>
      %c0_17 = arith.constant 0 : index
      %c0_18 = arith.constant 0 : index
      %23 = vector.load %arg7[%c0_17, %c0_18] : memref<1x128xf32, #tpu.memory_space<vmem>>, vector<1x128xf32>
      %24 = vector.broadcast %23 : vector<1x128xf32> to vector<128x128xf32>
      %25 = arith.mulf %22, %24 : vector<128x128xf32>
      %c0_19 = arith.constant 0 : index
      %c0_20 = arith.constant 0 : index
      %26 = vector.load %arg8[%c0_19, %c0_20] : memref<1x128xf32, #tpu.memory_space<vmem>>, vector<1x128xf32>
      %27 = vector.broadcast %26 : vector<1x128xf32> to vector<128x128xf32>
      %28 = arith.addf %25, %27 : vector<128x128xf32>
      %cst_21 = arith.constant 0.000000e+00 : f32
      %29 = vector.broadcast %cst_21 : f32 to vector<128x128xf32>
      %30 = arith.maximumf %28, %29 : vector<128x128xf32>
      %31 = arith.truncf %30 : vector<128x128xf32> to vector<128x128xbf16>
      %c0_22 = arith.constant 0 : index
      %c0_23 = arith.constant 0 : index
      %32 = vector.load %arg9[%c0_22, %c0_23] : memref<128x128xbf16, #tpu.memory_space<vmem>>, vector<128x128xbf16>
      tpu.vector_store %arg9[%c0_22, %c0_23], %31 {strides = array<i32>} : memref<128x128xbf16, #tpu.memory_space<vmem>>, vector<128x128xbf16>,
    } else {
    }
    return
  }
  func.func @transform_0(%arg0: i32, %arg1: i32, %arg2: i32) -> (i32, i32) {
    %c0_i32 = arith.constant 0 : i32
    return %arg0, %arg2 : i32, i32
  }
  func.func @transform_1(%arg0: i32, %arg1: i32, %arg2: i32) -> (i32, i32) {
    %c0_i32 = arith.constant 0 : i32
    return %arg2, %arg1 : i32, i32
  }
  func.func @transform_2(%arg0: i32, %arg1: i32, %arg2: i32) -> (i32, i32) {
    %c0_i32 = arith.constant 0 : i32
    %c0_i32_0 = arith.constant 0 : i32
    return %c0_i32, %arg2 : i32, i32
  }
  func.func @transform_3(%arg0: i32, %arg1: i32, %arg2: i32) -> (i32, i32) {
    %c0_i32 = arith.constant 0 : i32
    %c0_i32_0 = arith.constant 0 : i32
    return %c0_i32, %arg2 : i32, i32
  }
  func.func @transform_4(%arg0: i32, %arg1: i32, %arg2: i32) -> (i32, i32) {
    %c0_i32 = arith.constant 0 : i32
    %c0_i32_0 = arith.constant 0 : i32
    return %c0_i32, %arg1 : i32, i32
  }
  func.func @transform_5(%arg0: i32, %arg1: i32, %arg2: i32) -> (i32, i32) {
    %c0_i32 = arith.constant 0 : i32
    %c0_i32_0 = arith.constant 0 : i32
    return %c0_i32, %arg1 : i32, i32
  }
  func.func @transform_6(%arg0: i32, %arg1: i32, %arg2: i32) -> (i32, i32) {
    %c0_i32 = arith.constant 0 : i32
    return %arg0, %arg1 : i32, i32
  }
}

module attributes {stable_mosaic.version = 11 : i64} {
  func.func @_fused_matmul_kernel(%arg0: i32, %arg1: i32, %arg2: i32, %arg3: memref<128x128xbf16, #tpu.memory_space<vmem>>, %arg4: memref<128x128xbf16, #tpu.memory_space<vmem>>, %arg5: memref<1x128xf32, #tpu.memory_space<vmem>>, %arg6: memref<1x128xf32, #tpu.memory_space<vmem>>, %arg7: memref<1x128xf32, #tpu.memory_space<vmem>>, %arg8: memref<1x128xf32, #tpu.memory_space<vmem>>, %arg9: memref<128x128xbf16, #tpu.memory_space<vmem>>, %arg10: memref<128x128xf32, #tpu.memory_space<vmem>>) attributes {dimension_semantics = [#tpu.dimension_semantics<parallel>, #tpu.dimension_semantics<parallel>, #tpu.dimension_semantics<arbitrary>], iteration_bounds = array<i64: 1, 1, 5>, scalar_prefetch = 0 : i64, scratch_operands = 1 : i64, tpu.core_type = #tpu.core_type<tc>, window_params = [{transform_indices = @transform_0, window_bounds = array<i64: 128, 128>}, {transform_indices = @transform_1, window_bounds = array<i64: 128, 128>}, {transform_indices = @transform_2, window_bounds = array<i64: 1, 128>}, {transform_indices = @transform_3, window_bounds = array<i64: 1, 128>}, {transform_indices = @transform_4, window_bounds = array<i64: 1, 128>}, {transform_indices = @transform_5, window_bounds = array<i64: 1, 128>}, {transform_indices = @transform_6, window_bounds = array<i64: 128, 128>}]} {
    %c0_i32 = arith.constant 0 : i32
    %0 = arith.cmpi eq, %arg2, %c0_i32 : i32
    %1 = arith.extui %0 : i1 to i32
    %c0_i32_0 = arith.constant 0 : i32
    %2 = arith.cmpi ne, %1, %c0_i32_0 : i32
    scf.if %2 {
      %cst_9 = arith.constant 0.000000e+00 : f32
      %12 = vector.broadcast %cst_9 : f32 to vector<128x128xf32>
      %c0_10 = arith.constant 0 : index
      %c0_11 = arith.constant 0 : index
      %13 = vector.load %arg10[%c0_10, %c0_11] : memref<128x128xf32, #tpu.memory_space<vmem>>, vector<128x128xf32>
      tpu.vector_store %arg10[%c0_10, %c0_11], %12 {strides = array<i32>} : memref<128x128xf32, #tpu.memory_space<vmem>>, vector<128x128xf32>,
    } else {
    }
    %c0 = arith.constant 0 : index
    %c0_1 = arith.constant 0 : index
    %3 = vector.load %arg3[%c0, %c0_1] : memref<128x128xbf16, #tpu.memory_space<vmem>>, vector<128x128xbf16>
    %c0_2 = arith.constant 0 : index
    %c0_3 = arith.constant 0 : index
    %4 = vector.load %arg10[%c0_2, %c0_3] : memref<128x128xf32, #tpu.memory_space<vmem>>, vector<128x128xf32>
    %c0_4 = arith.constant 0 : index
    %c0_5 = arith.constant 0 : index
    %5 = vector.load %arg4[%c0_4, %c0_5] : memref<128x128xbf16, #tpu.memory_space<vmem>>, vector<128x128xbf16>
    %cst = arith.constant dense<0.000000e+00> : vector<128x128xf32>
    %6 = tpu.matmul %3, %5, %cst {dimension_numbers = #tpu.dot_dimension_numbers<[1], [0], [0], [1], [0, 0, 1, 1], [], []>} : vector<128x128xbf16>, vector<128x128xbf16>, vector<128x128xf32> -> vector<128x128xf32>
    %7 = arith.addf %4, %6 : vector<128x128xf32>
    %c0_6 = arith.constant 0 : index
    %c0_7 = arith.constant 0 : index
    %8 = vector.load %arg10[%c0_6, %c0_7] : memref<128x128xf32, #tpu.memory_space<vmem>>, vector<128x128xf32>
    tpu.vector_store %arg10[%c0_6, %c0_7], %7 {strides = array<i32>} : memref<128x128xf32, #tpu.memory_space<vmem>>, vector<128x128xf32>,
    %c4_i32 = arith.constant 4 : i32
    %9 = arith.cmpi eq, %arg2, %c4_i32 : i32
    %10 = arith.extui %9 : i1 to i32
    %c0_i32_8 = arith.constant 0 : i32
    %11 = arith.cmpi ne, %10, %c0_i32_8 : i32
    scf.if %11 {
      %c0_9 = arith.constant 0 : index
      %c0_10 = arith.constant 0 : index
      %12 = vector.load %arg10[%c0_9, %c0_10] : memref<128x128xf32, #tpu.memory_space<vmem>>, vector<128x128xf32>
      %13 = arith.truncf %12 : vector<128x128xf32> to vector<128x128xbf16>
      %c0_11 = arith.constant 0 : index
      %c0_12 = arith.constant 0 : index
      %14 = vector.load %arg9[%c0_11, %c0_12] : memref<128x128xbf16, #tpu.memory_space<vmem>>, vector<128x128xbf16>
      tpu.vector_store %arg9[%c0_11, %c0_12], %13 {strides = array<i32>} : memref<128x128xbf16, #tpu.memory_space<vmem>>, vector<128x128xbf16>,
    } else {
    }
    return
  }
  func.func @transform_0(%arg0: i32, %arg1: i32, %arg2: i32) -> (i32, i32) {
    %c0_i32 = arith.constant 0 : i32
    return %arg0, %arg2 : i32, i32
  }
  func.func @transform_1(%arg0: i32, %arg1: i32, %arg2: i32) -> (i32, i32) {
    %c0_i32 = arith.constant 0 : i32
    return %arg2, %arg1 : i32, i32
  }
  func.func @transform_2(%arg0: i32, %arg1: i32, %arg2: i32) -> (i32, i32) {
    %c0_i32 = arith.constant 0 : i32
    %c0_i32_0 = arith.constant 0 : i32
    return %c0_i32, %arg2 : i32, i32
  }
  func.func @transform_3(%arg0: i32, %arg1: i32, %arg2: i32) -> (i32, i32) {
    %c0_i32 = arith.constant 0 : i32
    %c0_i32_0 = arith.constant 0 : i32
    return %c0_i32, %arg2 : i32, i32
  }
  func.func @transform_4(%arg0: i32, %arg1: i32, %arg2: i32) -> (i32, i32) {
    %c0_i32 = arith.constant 0 : i32
    %c0_i32_0 = arith.constant 0 : i32
    return %c0_i32, %arg1 : i32, i32
  }
  func.func @transform_5(%arg0: i32, %arg1: i32, %arg2: i32) -> (i32, i32) {
    %c0_i32 = arith.constant 0 : i32
    %c0_i32_0 = arith.constant 0 : i32
    return %c0_i32, %arg1 : i32, i32
  }
  func.func @transform_6(%arg0: i32, %arg1: i32, %arg2: i32) -> (i32, i32) {
    %c0_i32 = arith.constant 0 : i32
    return %arg0, %arg1 : i32, i32
  }
}

module attributes {stable_mosaic.version = 11 : i64} {
  func.func @_fused_matmul_kernel(%arg0: i32, %arg1: i32, %arg2: i32, %arg3: memref<128x128xbf16, #tpu.memory_space<vmem>>, %arg4: memref<128x128xbf16, #tpu.memory_space<vmem>>, %arg5: memref<1x128xf32, #tpu.memory_space<vmem>>, %arg6: memref<1x128xf32, #tpu.memory_space<vmem>>, %arg7: memref<1x128xf32, #tpu.memory_space<vmem>>, %arg8: memref<1x128xf32, #tpu.memory_space<vmem>>, %arg9: memref<128x128xbf16, #tpu.memory_space<vmem>>, %arg10: memref<128x128xf32, #tpu.memory_space<vmem>>) attributes {dimension_semantics = [#tpu.dimension_semantics<parallel>, #tpu.dimension_semantics<parallel>, #tpu.dimension_semantics<arbitrary>], iteration_bounds = array<i64: 1, 1, 1>, scalar_prefetch = 0 : i64, scratch_operands = 1 : i64, tpu.core_type = #tpu.core_type<tc>, window_params = [{transform_indices = @transform_0, window_bounds = array<i64: 128, 128>}, {transform_indices = @transform_1, window_bounds = array<i64: 128, 128>}, {transform_indices = @transform_2, window_bounds = array<i64: 1, 128>}, {transform_indices = @transform_3, window_bounds = array<i64: 1, 128>}, {transform_indices = @transform_4, window_bounds = array<i64: 1, 128>}, {transform_indices = @transform_5, window_bounds = array<i64: 1, 128>}, {transform_indices = @transform_6, window_bounds = array<i64: 128, 128>}]} {
    %c0_i32 = arith.constant 0 : i32
    %0 = arith.cmpi eq, %arg2, %c0_i32 : i32
    %1 = arith.extui %0 : i1 to i32
    %c0_i32_0 = arith.constant 0 : i32
    %2 = arith.cmpi ne, %1, %c0_i32_0 : i32
    scf.if %2 {
      %cst_15 = arith.constant 0.000000e+00 : f32
      %22 = vector.broadcast %cst_15 : f32 to vector<128x128xf32>
      %c0_16 = arith.constant 0 : index
      %c0_17 = arith.constant 0 : index
      %23 = vector.load %arg10[%c0_16, %c0_17] : memref<128x128xf32, #tpu.memory_space<vmem>>, vector<128x128xf32>
      tpu.vector_store %arg10[%c0_16, %c0_17], %22 {strides = array<i32>} : memref<128x128xf32, #tpu.memory_space<vmem>>, vector<128x128xf32>,
    } else {
    }
    %c0 = arith.constant 0 : index
    %c0_1 = arith.constant 0 : index
    %3 = vector.load %arg3[%c0, %c0_1] : memref<128x128xbf16, #tpu.memory_space<vmem>>, vector<128x128xbf16>
    %4 = arith.extf %3 : vector<128x128xbf16> to vector<128x128xf32>
    %c0_2 = arith.constant 0 : index
    %c0_3 = arith.constant 0 : index
    %5 = vector.load %arg5[%c0_2, %c0_3] : memref<1x128xf32, #tpu.memory_space<vmem>>, vector<1x128xf32>
    %6 = vector.broadcast %5 : vector<1x128xf32> to vector<128x128xf32>
    %7 = arith.mulf %4, %6 : vector<128x128xf32>
    %c0_4 = arith.constant 0 : index
    %c0_5 = arith.constant 0 : index
    %8 = vector.load %arg6[%c0_4, %c0_5] : memref<1x128xf32, #tpu.memory_space<vmem>>, vector<1x128xf32>
    %9 = vector.broadcast %8 : vector<1x128xf32> to vector<128x128xf32>
    %10 = arith.addf %7, %9 : vector<128x128xf32>
    %cst = arith.constant 0.000000e+00 : f32
    %11 = vector.broadcast %cst : f32 to vector<128x128xf32>
    %12 = arith.maximumf %10, %11 : vector<128x128xf32>
    %c0_6 = arith.constant 0 : index
    %c0_7 = arith.constant 0 : index
    %13 = vector.load %arg10[%c0_6, %c0_7] : memref<128x128xf32, #tpu.memory_space<vmem>>, vector<128x128xf32>
    %14 = arith.truncf %12 : vector<128x128xf32> to vector<128x128xbf16>
    %c0_8 = arith.constant 0 : index
    %c0_9 = arith.constant 0 : index
    %15 = vector.load %arg4[%c0_8, %c0_9] : memref<128x128xbf16, #tpu.memory_space<vmem>>, vector<128x128xbf16>
    %cst_10 = arith.constant dense<0.000000e+00> : vector<128x128xf32>
    %16 = tpu.matmul %14, %15, %cst_10 {dimension_numbers = #tpu.dot_dimension_numbers<[1], [0], [0], [1], [0, 0, 1, 1], [], []>} : vector<128x128xbf16>, vector<128x128xbf16>, vector<128x128xf32> -> vector<128x128xf32>
    %17 = arith.addf %13, %16 : vector<128x128xf32>
    %c0_11 = arith.constant 0 : index
    %c0_12 = arith.constant 0 : index
    %18 = vector.load %arg10[%c0_11, %c0_12] : memref<128x128xf32, #tpu.memory_space<vmem>>, vector<128x128xf32>
    tpu.vector_store %arg10[%c0_11, %c0_12], %17 {strides = array<i32>} : memref<128x128xf32, #tpu.memory_space<vmem>>, vector<128x128xf32>,
    %c0_i32_13 = arith.constant 0 : i32
    %19 = arith.cmpi eq, %arg2, %c0_i32_13 : i32
    %20 = arith.extui %19 : i1 to i32
    %c0_i32_14 = arith.constant 0 : i32
    %21 = arith.cmpi ne, %20, %c0_i32_14 : i32
    scf.if %21 {
      %c0_15 = arith.constant 0 : index
      %c0_16 = arith.constant 0 : index
      %22 = vector.load %arg10[%c0_15, %c0_16] : memref<128x128xf32, #tpu.memory_space<vmem>>, vector<128x128xf32>
      %23 = arith.truncf %22 : vector<128x128xf32> to vector<128x128xbf16>
      %c0_17 = arith.constant 0 : index
      %c0_18 = arith.constant 0 : index
      %24 = vector.load %arg9[%c0_17, %c0_18] : memref<128x128xbf16, #tpu.memory_space<vmem>>, vector<128x128xbf16>
      tpu.vector_store %arg9[%c0_17, %c0_18], %23 {strides = array<i32>} : memref<128x128xbf16, #tpu.memory_space<vmem>>, vector<128x128xbf16>,
    } else {
    }
    return
  }
  func.func @transform_0(%arg0: i32, %arg1: i32, %arg2: i32) -> (i32, i32) {
    %c0_i32 = arith.constant 0 : i32
    return %arg0, %arg2 : i32, i32
  }
  func.func @transform_1(%arg0: i32, %arg1: i32, %arg2: i32) -> (i32, i32) {
    %c0_i32 = arith.constant 0 : i32
    return %arg2, %arg1 : i32, i32
  }
  func.func @transform_2(%arg0: i32, %arg1: i32, %arg2: i32) -> (i32, i32) {
    %c0_i32 = arith.constant 0 : i32
    %c0_i32_0 = arith.constant 0 : i32
    return %c0_i32, %arg2 : i32, i32
  }
  func.func @transform_3(%arg0: i32, %arg1: i32, %arg2: i32) -> (i32, i32) {
    %c0_i32 = arith.constant 0 : i32
    %c0_i32_0 = arith.constant 0 : i32
    return %c0_i32, %arg2 : i32, i32
  }
  func.func @transform_4(%arg0: i32, %arg1: i32, %arg2: i32) -> (i32, i32) {
    %c0_i32 = arith.constant 0 : i32
    %c0_i32_0 = arith.constant 0 : i32
    return %c0_i32, %arg1 : i32, i32
  }
  func.func @transform_5(%arg0: i32, %arg1: i32, %arg2: i32) -> (i32, i32) {
    %c0_i32 = arith.constant 0 : i32
    %c0_i32_0 = arith.constant 0 : i32
    return %c0_i32, %arg1 : i32, i32
  }
  func.func @transform_6(%arg0: i32, %arg1: i32, %arg2: i32) -> (i32, i32) {
    %c0_i32 = arith.constant 0 : i32
    return %arg0, %arg1 : i32, i32
  }
}

module attributes {stable_mosaic.version = 11 : i64} {
  func.func @_fused_matmul_kernel(%arg0: i32, %arg1: i32, %arg2: i32, %arg3: memref<32x128xbf16, #tpu.memory_space<vmem>>, %arg4: memref<128x128xbf16, #tpu.memory_space<vmem>>, %arg5: memref<1x128xf32, #tpu.memory_space<vmem>>, %arg6: memref<1x128xf32, #tpu.memory_space<vmem>>, %arg7: memref<1x128xf32, #tpu.memory_space<vmem>>, %arg8: memref<1x128xf32, #tpu.memory_space<vmem>>, %arg9: memref<32x128xbf16, #tpu.memory_space<vmem>>, %arg10: memref<32x128xf32, #tpu.memory_space<vmem>>) attributes {dimension_semantics = [#tpu.dimension_semantics<parallel>, #tpu.dimension_semantics<parallel>, #tpu.dimension_semantics<arbitrary>], iteration_bounds = array<i64: 1, 1, 1>, scalar_prefetch = 0 : i64, scratch_operands = 1 : i64, tpu.core_type = #tpu.core_type<tc>, window_params = [{transform_indices = @transform_0, window_bounds = array<i64: 32, 128>}, {transform_indices = @transform_1, window_bounds = array<i64: 128, 128>}, {transform_indices = @transform_2, window_bounds = array<i64: 1, 128>}, {transform_indices = @transform_3, window_bounds = array<i64: 1, 128>}, {transform_indices = @transform_4, window_bounds = array<i64: 1, 128>}, {transform_indices = @transform_5, window_bounds = array<i64: 1, 128>}, {transform_indices = @transform_6, window_bounds = array<i64: 32, 128>}]} {
    %c0_i32 = arith.constant 0 : i32
    %0 = arith.cmpi eq, %arg2, %c0_i32 : i32
    %1 = arith.extui %0 : i1 to i32
    %c0_i32_0 = arith.constant 0 : i32
    %2 = arith.cmpi ne, %1, %c0_i32_0 : i32
    scf.if %2 {
      %cst_15 = arith.constant 0.000000e+00 : f32
      %22 = vector.broadcast %cst_15 : f32 to vector<32x128xf32>
      %c0_16 = arith.constant 0 : index
      %c0_17 = arith.constant 0 : index
      %23 = vector.load %arg10[%c0_16, %c0_17] : memref<32x128xf32, #tpu.memory_space<vmem>>, vector<32x128xf32>
      tpu.vector_store %arg10[%c0_16, %c0_17], %22 {strides = array<i32>} : memref<32x128xf32, #tpu.memory_space<vmem>>, vector<32x128xf32>,
    } else {
    }
    %c0 = arith.constant 0 : index
    %c0_1 = arith.constant 0 : index
    %3 = vector.load %arg3[%c0, %c0_1] : memref<32x128xbf16, #tpu.memory_space<vmem>>, vector<32x128xbf16>
    %4 = arith.extf %3 : vector<32x128xbf16> to vector<32x128xf32>
    %c0_2 = arith.constant 0 : index
    %c0_3 = arith.constant 0 : index
    %5 = vector.load %arg5[%c0_2, %c0_3] : memref<1x128xf32, #tpu.memory_space<vmem>>, vector<1x128xf32>
    %6 = vector.broadcast %5 : vector<1x128xf32> to vector<32x128xf32>
    %7 = arith.mulf %4, %6 : vector<32x128xf32>
    %c0_4 = arith.constant 0 : index
    %c0_5 = arith.constant 0 : index
    %8 = vector.load %arg6[%c0_4, %c0_5] : memref<1x128xf32, #tpu.memory_space<vmem>>, vector<1x128xf32>
    %9 = vector.broadcast %8 : vector<1x128xf32> to vector<32x128xf32>
    %10 = arith.addf %7, %9 : vector<32x128xf32>
    %cst = arith.constant 0.000000e+00 : f32
    %11 = vector.broadcast %cst : f32 to vector<32x128xf32>
    %12 = arith.maximumf %10, %11 : vector<32x128xf32>
    %c0_6 = arith.constant 0 : index
    %c0_7 = arith.constant 0 : index
    %13 = vector.load %arg10[%c0_6, %c0_7] : memref<32x128xf32, #tpu.memory_space<vmem>>, vector<32x128xf32>
    %14 = arith.truncf %12 : vector<32x128xf32> to vector<32x128xbf16>
    %c0_8 = arith.constant 0 : index
    %c0_9 = arith.constant 0 : index
    %15 = vector.load %arg4[%c0_8, %c0_9] : memref<128x128xbf16, #tpu.memory_space<vmem>>, vector<128x128xbf16>
    %cst_10 = arith.constant dense<0.000000e+00> : vector<32x128xf32>
    %16 = tpu.matmul %14, %15, %cst_10 {dimension_numbers = #tpu.dot_dimension_numbers<[1], [0], [0], [1], [0, 0, 1, 1], [], []>} : vector<32x128xbf16>, vector<128x128xbf16>, vector<32x128xf32> -> vector<32x128xf32>
    %17 = arith.addf %13, %16 : vector<32x128xf32>
    %c0_11 = arith.constant 0 : index
    %c0_12 = arith.constant 0 : index
    %18 = vector.load %arg10[%c0_11, %c0_12] : memref<32x128xf32, #tpu.memory_space<vmem>>, vector<32x128xf32>
    tpu.vector_store %arg10[%c0_11, %c0_12], %17 {strides = array<i32>} : memref<32x128xf32, #tpu.memory_space<vmem>>, vector<32x128xf32>,
    %c0_i32_13 = arith.constant 0 : i32
    %19 = arith.cmpi eq, %arg2, %c0_i32_13 : i32
    %20 = arith.extui %19 : i1 to i32
    %c0_i32_14 = arith.constant 0 : i32
    %21 = arith.cmpi ne, %20, %c0_i32_14 : i32
    scf.if %21 {
      %c0_15 = arith.constant 0 : index
      %c0_16 = arith.constant 0 : index
      %22 = vector.load %arg10[%c0_15, %c0_16] : memref<32x128xf32, #tpu.memory_space<vmem>>, vector<32x128xf32>
      %c0_17 = arith.constant 0 : index
      %c0_18 = arith.constant 0 : index
      %23 = vector.load %arg7[%c0_17, %c0_18] : memref<1x128xf32, #tpu.memory_space<vmem>>, vector<1x128xf32>
      %24 = vector.broadcast %23 : vector<1x128xf32> to vector<32x128xf32>
      %25 = arith.mulf %22, %24 : vector<32x128xf32>
      %c0_19 = arith.constant 0 : index
      %c0_20 = arith.constant 0 : index
      %26 = vector.load %arg8[%c0_19, %c0_20] : memref<1x128xf32, #tpu.memory_space<vmem>>, vector<1x128xf32>
      %27 = vector.broadcast %26 : vector<1x128xf32> to vector<32x128xf32>
      %28 = arith.addf %25, %27 : vector<32x128xf32>
      %cst_21 = arith.constant 0.000000e+00 : f32
      %29 = vector.broadcast %cst_21 : f32 to vector<32x128xf32>
      %30 = arith.maximumf %28, %29 : vector<32x128xf32>
      %31 = arith.truncf %30 : vector<32x128xf32> to vector<32x128xbf16>
      %c0_22 = arith.constant 0 : index
      %c0_23 = arith.constant 0 : index
      %32 = vector.load %arg9[%c0_22, %c0_23] : memref<32x128xbf16, #tpu.memory_space<vmem>>, vector<32x128xbf16>
      tpu.vector_store %arg9[%c0_22, %c0_23], %31 {strides = array<i32>} : memref<32x128xbf16, #tpu.memory_space<vmem>>, vector<32x128xbf16>,
    } else {
    }
    return
  }
  func.func @transform_0(%arg0: i32, %arg1: i32, %arg2: i32) -> (i32, i32) {
    %c0_i32 = arith.constant 0 : i32
    return %arg0, %arg2 : i32, i32
  }
  func.func @transform_1(%arg0: i32, %arg1: i32, %arg2: i32) -> (i32, i32) {
    %c0_i32 = arith.constant 0 : i32
    return %arg2, %arg1 : i32, i32
  }
  func.func @transform_2(%arg0: i32, %arg1: i32, %arg2: i32) -> (i32, i32) {
    %c0_i32 = arith.constant 0 : i32
    %c0_i32_0 = arith.constant 0 : i32
    return %c0_i32, %arg2 : i32, i32
  }
  func.func @transform_3(%arg0: i32, %arg1: i32, %arg2: i32) -> (i32, i32) {
    %c0_i32 = arith.constant 0 : i32
    %c0_i32_0 = arith.constant 0 : i32
    return %c0_i32, %arg2 : i32, i32
  }
  func.func @transform_4(%arg0: i32, %arg1: i32, %arg2: i32) -> (i32, i32) {
    %c0_i32 = arith.constant 0 : i32
    %c0_i32_0 = arith.constant 0 : i32
    return %c0_i32, %arg1 : i32, i32
  }
  func.func @transform_5(%arg0: i32, %arg1: i32, %arg2: i32) -> (i32, i32) {
    %c0_i32 = arith.constant 0 : i32
    %c0_i32_0 = arith.constant 0 : i32
    return %c0_i32, %arg1 : i32, i32
  }
  func.func @transform_6(%arg0: i32, %arg1: i32, %arg2: i32) -> (i32, i32) {
    %c0_i32 = arith.constant 0 : i32
    return %arg0, %arg1 : i32, i32
  }
}

module attributes {stable_mosaic.version = 11 : i64} {
  func.func @_fused_matmul_kernel(%arg0: i32, %arg1: i32, %arg2: i32, %arg3: memref<32x128xbf16, #tpu.memory_space<vmem>>, %arg4: memref<128x128xbf16, #tpu.memory_space<vmem>>, %arg5: memref<1x128xf32, #tpu.memory_space<vmem>>, %arg6: memref<1x128xf32, #tpu.memory_space<vmem>>, %arg7: memref<1x128xf32, #tpu.memory_space<vmem>>, %arg8: memref<1x128xf32, #tpu.memory_space<vmem>>, %arg9: memref<32x128xbf16, #tpu.memory_space<vmem>>, %arg10: memref<32x128xf32, #tpu.memory_space<vmem>>) attributes {dimension_semantics = [#tpu.dimension_semantics<parallel>, #tpu.dimension_semantics<parallel>, #tpu.dimension_semantics<arbitrary>], iteration_bounds = array<i64: 1, 1, 5>, scalar_prefetch = 0 : i64, scratch_operands = 1 : i64, tpu.core_type = #tpu.core_type<tc>, window_params = [{transform_indices = @transform_0, window_bounds = array<i64: 32, 128>}, {transform_indices = @transform_1, window_bounds = array<i64: 128, 128>}, {transform_indices = @transform_2, window_bounds = array<i64: 1, 128>}, {transform_indices = @transform_3, window_bounds = array<i64: 1, 128>}, {transform_indices = @transform_4, window_bounds = array<i64: 1, 128>}, {transform_indices = @transform_5, window_bounds = array<i64: 1, 128>}, {transform_indices = @transform_6, window_bounds = array<i64: 32, 128>}]} {
    %c0_i32 = arith.constant 0 : i32
    %0 = arith.cmpi eq, %arg2, %c0_i32 : i32
    %1 = arith.extui %0 : i1 to i32
    %c0_i32_0 = arith.constant 0 : i32
    %2 = arith.cmpi ne, %1, %c0_i32_0 : i32
    scf.if %2 {
      %cst_9 = arith.constant 0.000000e+00 : f32
      %12 = vector.broadcast %cst_9 : f32 to vector<32x128xf32>
      %c0_10 = arith.constant 0 : index
      %c0_11 = arith.constant 0 : index
      %13 = vector.load %arg10[%c0_10, %c0_11] : memref<32x128xf32, #tpu.memory_space<vmem>>, vector<32x128xf32>
      tpu.vector_store %arg10[%c0_10, %c0_11], %12 {strides = array<i32>} : memref<32x128xf32, #tpu.memory_space<vmem>>, vector<32x128xf32>,
    } else {
    }
    %c0 = arith.constant 0 : index
    %c0_1 = arith.constant 0 : index
    %3 = vector.load %arg3[%c0, %c0_1] : memref<32x128xbf16, #tpu.memory_space<vmem>>, vector<32x128xbf16>
    %c0_2 = arith.constant 0 : index
    %c0_3 = arith.constant 0 : index
    %4 = vector.load %arg10[%c0_2, %c0_3] : memref<32x128xf32, #tpu.memory_space<vmem>>, vector<32x128xf32>
    %c0_4 = arith.constant 0 : index
    %c0_5 = arith.constant 0 : index
    %5 = vector.load %arg4[%c0_4, %c0_5] : memref<128x128xbf16, #tpu.memory_space<vmem>>, vector<128x128xbf16>
    %cst = arith.constant dense<0.000000e+00> : vector<32x128xf32>
    %6 = tpu.matmul %3, %5, %cst {dimension_numbers = #tpu.dot_dimension_numbers<[1], [0], [0], [1], [0, 0, 1, 1], [], []>} : vector<32x128xbf16>, vector<128x128xbf16>, vector<32x128xf32> -> vector<32x128xf32>
    %7 = arith.addf %4, %6 : vector<32x128xf32>
    %c0_6 = arith.constant 0 : index
    %c0_7 = arith.constant 0 : index
    %8 = vector.load %arg10[%c0_6, %c0_7] : memref<32x128xf32, #tpu.memory_space<vmem>>, vector<32x128xf32>
    tpu.vector_store %arg10[%c0_6, %c0_7], %7 {strides = array<i32>} : memref<32x128xf32, #tpu.memory_space<vmem>>, vector<32x128xf32>,
    %c4_i32 = arith.constant 4 : i32
    %9 = arith.cmpi eq, %arg2, %c4_i32 : i32
    %10 = arith.extui %9 : i1 to i32
    %c0_i32_8 = arith.constant 0 : i32
    %11 = arith.cmpi ne, %10, %c0_i32_8 : i32
    scf.if %11 {
      %c0_9 = arith.constant 0 : index
      %c0_10 = arith.constant 0 : index
      %12 = vector.load %arg10[%c0_9, %c0_10] : memref<32x128xf32, #tpu.memory_space<vmem>>, vector<32x128xf32>
      %13 = arith.truncf %12 : vector<32x128xf32> to vector<32x128xbf16>
      %c0_11 = arith.constant 0 : index
      %c0_12 = arith.constant 0 : index
      %14 = vector.load %arg9[%c0_11, %c0_12] : memref<32x128xbf16, #tpu.memory_space<vmem>>, vector<32x128xbf16>
      tpu.vector_store %arg9[%c0_11, %c0_12], %13 {strides = array<i32>} : memref<32x128xbf16, #tpu.memory_space<vmem>>, vector<32x128xbf16>,
    } else {
    }
    return
  }
  func.func @transform_0(%arg0: i32, %arg1: i32, %arg2: i32) -> (i32, i32) {
    %c0_i32 = arith.constant 0 : i32
    return %arg0, %arg2 : i32, i32
  }
  func.func @transform_1(%arg0: i32, %arg1: i32, %arg2: i32) -> (i32, i32) {
    %c0_i32 = arith.constant 0 : i32
    return %arg2, %arg1 : i32, i32
  }
  func.func @transform_2(%arg0: i32, %arg1: i32, %arg2: i32) -> (i32, i32) {
    %c0_i32 = arith.constant 0 : i32
    %c0_i32_0 = arith.constant 0 : i32
    return %c0_i32, %arg2 : i32, i32
  }
  func.func @transform_3(%arg0: i32, %arg1: i32, %arg2: i32) -> (i32, i32) {
    %c0_i32 = arith.constant 0 : i32
    %c0_i32_0 = arith.constant 0 : i32
    return %c0_i32, %arg2 : i32, i32
  }
  func.func @transform_4(%arg0: i32, %arg1: i32, %arg2: i32) -> (i32, i32) {
    %c0_i32 = arith.constant 0 : i32
    %c0_i32_0 = arith.constant 0 : i32
    return %c0_i32, %arg1 : i32, i32
  }
  func.func @transform_5(%arg0: i32, %arg1: i32, %arg2: i32) -> (i32, i32) {
    %c0_i32 = arith.constant 0 : i32
    %c0_i32_0 = arith.constant 0 : i32
    return %c0_i32, %arg1 : i32, i32
  }
  func.func @transform_6(%arg0: i32, %arg1: i32, %arg2: i32) -> (i32, i32) {
    %c0_i32 = arith.constant 0 : i32
    return %arg0, %arg1 : i32, i32
  }
}

module attributes {stable_mosaic.version = 11 : i64} {
  func.func @_fused_matmul_kernel(%arg0: i32, %arg1: i32, %arg2: i32, %arg3: memref<32x128xbf16, #tpu.memory_space<vmem>>, %arg4: memref<128x128xbf16, #tpu.memory_space<vmem>>, %arg5: memref<1x128xf32, #tpu.memory_space<vmem>>, %arg6: memref<1x128xf32, #tpu.memory_space<vmem>>, %arg7: memref<1x128xf32, #tpu.memory_space<vmem>>, %arg8: memref<1x128xf32, #tpu.memory_space<vmem>>, %arg9: memref<32x128xbf16, #tpu.memory_space<vmem>>, %arg10: memref<32x128xf32, #tpu.memory_space<vmem>>) attributes {dimension_semantics = [#tpu.dimension_semantics<parallel>, #tpu.dimension_semantics<parallel>, #tpu.dimension_semantics<arbitrary>], iteration_bounds = array<i64: 1, 1, 1>, scalar_prefetch = 0 : i64, scratch_operands = 1 : i64, tpu.core_type = #tpu.core_type<tc>, window_params = [{transform_indices = @transform_0, window_bounds = array<i64: 32, 128>}, {transform_indices = @transform_1, window_bounds = array<i64: 128, 128>}, {transform_indices = @transform_2, window_bounds = array<i64: 1, 128>}, {transform_indices = @transform_3, window_bounds = array<i64: 1, 128>}, {transform_indices = @transform_4, window_bounds = array<i64: 1, 128>}, {transform_indices = @transform_5, window_bounds = array<i64: 1, 128>}, {transform_indices = @transform_6, window_bounds = array<i64: 32, 128>}]} {
    %c0_i32 = arith.constant 0 : i32
    %0 = arith.cmpi eq, %arg2, %c0_i32 : i32
    %1 = arith.extui %0 : i1 to i32
    %c0_i32_0 = arith.constant 0 : i32
    %2 = arith.cmpi ne, %1, %c0_i32_0 : i32
    scf.if %2 {
      %cst_15 = arith.constant 0.000000e+00 : f32
      %22 = vector.broadcast %cst_15 : f32 to vector<32x128xf32>
      %c0_16 = arith.constant 0 : index
      %c0_17 = arith.constant 0 : index
      %23 = vector.load %arg10[%c0_16, %c0_17] : memref<32x128xf32, #tpu.memory_space<vmem>>, vector<32x128xf32>
      tpu.vector_store %arg10[%c0_16, %c0_17], %22 {strides = array<i32>} : memref<32x128xf32, #tpu.memory_space<vmem>>, vector<32x128xf32>,
    } else {
    }
    %c0 = arith.constant 0 : index
    %c0_1 = arith.constant 0 : index
    %3 = vector.load %arg3[%c0, %c0_1] : memref<32x128xbf16, #tpu.memory_space<vmem>>, vector<32x128xbf16>
    %4 = arith.extf %3 : vector<32x128xbf16> to vector<32x128xf32>
    %c0_2 = arith.constant 0 : index
    %c0_3 = arith.constant 0 : index
    %5 = vector.load %arg5[%c0_2, %c0_3] : memref<1x128xf32, #tpu.memory_space<vmem>>, vector<1x128xf32>
    %6 = vector.broadcast %5 : vector<1x128xf32> to vector<32x128xf32>
    %7 = arith.mulf %4, %6 : vector<32x128xf32>
    %c0_4 = arith.constant 0 : index
    %c0_5 = arith.constant 0 : index
    %8 = vector.load %arg6[%c0_4, %c0_5] : memref<1x128xf32, #tpu.memory_space<vmem>>, vector<1x128xf32>
    %9 = vector.broadcast %8 : vector<1x128xf32> to vector<32x128xf32>
    %10 = arith.addf %7, %9 : vector<32x128xf32>
    %cst = arith.constant 0.000000e+00 : f32
    %11 = vector.broadcast %cst : f32 to vector<32x128xf32>
    %12 = arith.maximumf %10, %11 : vector<32x128xf32>
    %c0_6 = arith.constant 0 : index
    %c0_7 = arith.constant 0 : index
    %13 = vector.load %arg10[%c0_6, %c0_7] : memref<32x128xf32, #tpu.memory_space<vmem>>, vector<32x128xf32>
    %14 = arith.truncf %12 : vector<32x128xf32> to vector<32x128xbf16>
    %c0_8 = arith.constant 0 : index
    %c0_9 = arith.constant 0 : index
    %15 = vector.load %arg4[%c0_8, %c0_9] : memref<128x128xbf16, #tpu.memory_space<vmem>>, vector<128x128xbf16>
    %cst_10 = arith.constant dense<0.000000e+00> : vector<32x128xf32>
    %16 = tpu.matmul %14, %15, %cst_10 {dimension_numbers = #tpu.dot_dimension_numbers<[1], [0], [0], [1], [0, 0, 1, 1], [], []>} : vector<32x128xbf16>, vector<128x128xbf16>, vector<32x128xf32> -> vector<32x128xf32>
    %17 = arith.addf %13, %16 : vector<32x128xf32>
    %c0_11 = arith.constant 0 : index
    %c0_12 = arith.constant 0 : index
    %18 = vector.load %arg10[%c0_11, %c0_12] : memref<32x128xf32, #tpu.memory_space<vmem>>, vector<32x128xf32>
    tpu.vector_store %arg10[%c0_11, %c0_12], %17 {strides = array<i32>} : memref<32x128xf32, #tpu.memory_space<vmem>>, vector<32x128xf32>,
    %c0_i32_13 = arith.constant 0 : i32
    %19 = arith.cmpi eq, %arg2, %c0_i32_13 : i32
    %20 = arith.extui %19 : i1 to i32
    %c0_i32_14 = arith.constant 0 : i32
    %21 = arith.cmpi ne, %20, %c0_i32_14 : i32
    scf.if %21 {
      %c0_15 = arith.constant 0 : index
      %c0_16 = arith.constant 0 : index
      %22 = vector.load %arg10[%c0_15, %c0_16] : memref<32x128xf32, #tpu.memory_space<vmem>>, vector<32x128xf32>
      %23 = arith.truncf %22 : vector<32x128xf32> to vector<32x128xbf16>
      %c0_17 = arith.constant 0 : index
      %c0_18 = arith.constant 0 : index
      %24 = vector.load %arg9[%c0_17, %c0_18] : memref<32x128xbf16, #tpu.memory_space<vmem>>, vector<32x128xbf16>
      tpu.vector_store %arg9[%c0_17, %c0_18], %23 {strides = array<i32>} : memref<32x128xbf16, #tpu.memory_space<vmem>>, vector<32x128xbf16>,
    } else {
    }
    return
  }
  func.func @transform_0(%arg0: i32, %arg1: i32, %arg2: i32) -> (i32, i32) {
    %c0_i32 = arith.constant 0 : i32
    return %arg0, %arg2 : i32, i32
  }
  func.func @transform_1(%arg0: i32, %arg1: i32, %arg2: i32) -> (i32, i32) {
    %c0_i32 = arith.constant 0 : i32
    return %arg2, %arg1 : i32, i32
  }
  func.func @transform_2(%arg0: i32, %arg1: i32, %arg2: i32) -> (i32, i32) {
    %c0_i32 = arith.constant 0 : i32
    %c0_i32_0 = arith.constant 0 : i32
    return %c0_i32, %arg2 : i32, i32
  }
  func.func @transform_3(%arg0: i32, %arg1: i32, %arg2: i32) -> (i32, i32) {
    %c0_i32 = arith.constant 0 : i32
    %c0_i32_0 = arith.constant 0 : i32
    return %c0_i32, %arg2 : i32, i32
  }
  func.func @transform_4(%arg0: i32, %arg1: i32, %arg2: i32) -> (i32, i32) {
    %c0_i32 = arith.constant 0 : i32
    %c0_i32_0 = arith.constant 0 : i32
    return %c0_i32, %arg1 : i32, i32
  }
  func.func @transform_5(%arg0: i32, %arg1: i32, %arg2: i32) -> (i32, i32) {
    %c0_i32 = arith.constant 0 : i32
    %c0_i32_0 = arith.constant 0 : i32
    return %c0_i32, %arg1 : i32, i32
  }
  func.func @transform_6(%arg0: i32, %arg1: i32, %arg2: i32) -> (i32, i32) {
    %c0_i32 = arith.constant 0 : i32
    return %arg0, %arg1 : i32, i32
  }
}

module attributes {stable_mosaic.version = 11 : i64} {
  func.func @_fused_matmul_kernel(%arg0: i32, %arg1: i32, %arg2: i32, %arg3: memref<8x128xbf16, #tpu.memory_space<vmem>>, %arg4: memref<128x128xbf16, #tpu.memory_space<vmem>>, %arg5: memref<1x128xf32, #tpu.memory_space<vmem>>, %arg6: memref<1x128xf32, #tpu.memory_space<vmem>>, %arg7: memref<1x128xf32, #tpu.memory_space<vmem>>, %arg8: memref<1x128xf32, #tpu.memory_space<vmem>>, %arg9: memref<8x128xbf16, #tpu.memory_space<vmem>>, %arg10: memref<8x128xf32, #tpu.memory_space<vmem>>) attributes {dimension_semantics = [#tpu.dimension_semantics<parallel>, #tpu.dimension_semantics<parallel>, #tpu.dimension_semantics<arbitrary>], iteration_bounds = array<i64: 1, 1, 1>, scalar_prefetch = 0 : i64, scratch_operands = 1 : i64, tpu.core_type = #tpu.core_type<tc>, window_params = [{transform_indices = @transform_0, window_bounds = array<i64: 8, 128>}, {transform_indices = @transform_1, window_bounds = array<i64: 128, 128>}, {transform_indices = @transform_2, window_bounds = array<i64: 1, 128>}, {transform_indices = @transform_3, window_bounds = array<i64: 1, 128>}, {transform_indices = @transform_4, window_bounds = array<i64: 1, 128>}, {transform_indices = @transform_5, window_bounds = array<i64: 1, 128>}, {transform_indices = @transform_6, window_bounds = array<i64: 8, 128>}]} {
    %c0_i32 = arith.constant 0 : i32
    %0 = arith.cmpi eq, %arg2, %c0_i32 : i32
    %1 = arith.extui %0 : i1 to i32
    %c0_i32_0 = arith.constant 0 : i32
    %2 = arith.cmpi ne, %1, %c0_i32_0 : i32
    scf.if %2 {
      %cst_15 = arith.constant 0.000000e+00 : f32
      %22 = vector.broadcast %cst_15 : f32 to vector<8x128xf32>
      %c0_16 = arith.constant 0 : index
      %c0_17 = arith.constant 0 : index
      %23 = vector.load %arg10[%c0_16, %c0_17] : memref<8x128xf32, #tpu.memory_space<vmem>>, vector<8x128xf32>
      tpu.vector_store %arg10[%c0_16, %c0_17], %22 {strides = array<i32>} : memref<8x128xf32, #tpu.memory_space<vmem>>, vector<8x128xf32>,
    } else {
    }
    %c0 = arith.constant 0 : index
    %c0_1 = arith.constant 0 : index
    %3 = vector.load %arg3[%c0, %c0_1] : memref<8x128xbf16, #tpu.memory_space<vmem>>, vector<8x128xbf16>
    %4 = arith.extf %3 : vector<8x128xbf16> to vector<8x128xf32>
    %c0_2 = arith.constant 0 : index
    %c0_3 = arith.constant 0 : index
    %5 = vector.load %arg5[%c0_2, %c0_3] : memref<1x128xf32, #tpu.memory_space<vmem>>, vector<1x128xf32>
    %6 = vector.broadcast %5 : vector<1x128xf32> to vector<8x128xf32>
    %7 = arith.mulf %4, %6 : vector<8x128xf32>
    %c0_4 = arith.constant 0 : index
    %c0_5 = arith.constant 0 : index
    %8 = vector.load %arg6[%c0_4, %c0_5] : memref<1x128xf32, #tpu.memory_space<vmem>>, vector<1x128xf32>
    %9 = vector.broadcast %8 : vector<1x128xf32> to vector<8x128xf32>
    %10 = arith.addf %7, %9 : vector<8x128xf32>
    %cst = arith.constant 0.000000e+00 : f32
    %11 = vector.broadcast %cst : f32 to vector<8x128xf32>
    %12 = arith.maximumf %10, %11 : vector<8x128xf32>
    %c0_6 = arith.constant 0 : index
    %c0_7 = arith.constant 0 : index
    %13 = vector.load %arg10[%c0_6, %c0_7] : memref<8x128xf32, #tpu.memory_space<vmem>>, vector<8x128xf32>
    %14 = arith.truncf %12 : vector<8x128xf32> to vector<8x128xbf16>
    %c0_8 = arith.constant 0 : index
    %c0_9 = arith.constant 0 : index
    %15 = vector.load %arg4[%c0_8, %c0_9] : memref<128x128xbf16, #tpu.memory_space<vmem>>, vector<128x128xbf16>
    %cst_10 = arith.constant dense<0.000000e+00> : vector<8x128xf32>
    %16 = tpu.matmul %14, %15, %cst_10 {dimension_numbers = #tpu.dot_dimension_numbers<[1], [0], [0], [1], [0, 0, 1, 1], [], []>} : vector<8x128xbf16>, vector<128x128xbf16>, vector<8x128xf32> -> vector<8x128xf32>
    %17 = arith.addf %13, %16 : vector<8x128xf32>
    %c0_11 = arith.constant 0 : index
    %c0_12 = arith.constant 0 : index
    %18 = vector.load %arg10[%c0_11, %c0_12] : memref<8x128xf32, #tpu.memory_space<vmem>>, vector<8x128xf32>
    tpu.vector_store %arg10[%c0_11, %c0_12], %17 {strides = array<i32>} : memref<8x128xf32, #tpu.memory_space<vmem>>, vector<8x128xf32>,
    %c0_i32_13 = arith.constant 0 : i32
    %19 = arith.cmpi eq, %arg2, %c0_i32_13 : i32
    %20 = arith.extui %19 : i1 to i32
    %c0_i32_14 = arith.constant 0 : i32
    %21 = arith.cmpi ne, %20, %c0_i32_14 : i32
    scf.if %21 {
      %c0_15 = arith.constant 0 : index
      %c0_16 = arith.constant 0 : index
      %22 = vector.load %arg10[%c0_15, %c0_16] : memref<8x128xf32, #tpu.memory_space<vmem>>, vector<8x128xf32>
      %c0_17 = arith.constant 0 : index
      %c0_18 = arith.constant 0 : index
      %23 = vector.load %arg7[%c0_17, %c0_18] : memref<1x128xf32, #tpu.memory_space<vmem>>, vector<1x128xf32>
      %24 = vector.broadcast %23 : vector<1x128xf32> to vector<8x128xf32>
      %25 = arith.mulf %22, %24 : vector<8x128xf32>
      %c0_19 = arith.constant 0 : index
      %c0_20 = arith.constant 0 : index
      %26 = vector.load %arg8[%c0_19, %c0_20] : memref<1x128xf32, #tpu.memory_space<vmem>>, vector<1x128xf32>
      %27 = vector.broadcast %26 : vector<1x128xf32> to vector<8x128xf32>
      %28 = arith.addf %25, %27 : vector<8x128xf32>
      %cst_21 = arith.constant 0.000000e+00 : f32
      %29 = vector.broadcast %cst_21 : f32 to vector<8x128xf32>
      %30 = arith.maximumf %28, %29 : vector<8x128xf32>
      %31 = arith.truncf %30 : vector<8x128xf32> to vector<8x128xbf16>
      %c0_22 = arith.constant 0 : index
      %c0_23 = arith.constant 0 : index
      %32 = vector.load %arg9[%c0_22, %c0_23] : memref<8x128xbf16, #tpu.memory_space<vmem>>, vector<8x128xbf16>
      tpu.vector_store %arg9[%c0_22, %c0_23], %31 {strides = array<i32>} : memref<8x128xbf16, #tpu.memory_space<vmem>>, vector<8x128xbf16>,
    } else {
    }
    return
  }
  func.func @transform_0(%arg0: i32, %arg1: i32, %arg2: i32) -> (i32, i32) {
    %c0_i32 = arith.constant 0 : i32
    return %arg0, %arg2 : i32, i32
  }
  func.func @transform_1(%arg0: i32, %arg1: i32, %arg2: i32) -> (i32, i32) {
    %c0_i32 = arith.constant 0 : i32
    return %arg2, %arg1 : i32, i32
  }
  func.func @transform_2(%arg0: i32, %arg1: i32, %arg2: i32) -> (i32, i32) {
    %c0_i32 = arith.constant 0 : i32
    %c0_i32_0 = arith.constant 0 : i32
    return %c0_i32, %arg2 : i32, i32
  }
  func.func @transform_3(%arg0: i32, %arg1: i32, %arg2: i32) -> (i32, i32) {
    %c0_i32 = arith.constant 0 : i32
    %c0_i32_0 = arith.constant 0 : i32
    return %c0_i32, %arg2 : i32, i32
  }
  func.func @transform_4(%arg0: i32, %arg1: i32, %arg2: i32) -> (i32, i32) {
    %c0_i32 = arith.constant 0 : i32
    %c0_i32_0 = arith.constant 0 : i32
    return %c0_i32, %arg1 : i32, i32
  }
  func.func @transform_5(%arg0: i32, %arg1: i32, %arg2: i32) -> (i32, i32) {
    %c0_i32 = arith.constant 0 : i32
    %c0_i32_0 = arith.constant 0 : i32
    return %c0_i32, %arg1 : i32, i32
  }
  func.func @transform_6(%arg0: i32, %arg1: i32, %arg2: i32) -> (i32, i32) {
    %c0_i32 = arith.constant 0 : i32
    return %arg0, %arg1 : i32, i32
  }
}

module attributes {stable_mosaic.version = 11 : i64} {
  func.func @_fused_matmul_kernel(%arg0: i32, %arg1: i32, %arg2: i32, %arg3: memref<8x128xbf16, #tpu.memory_space<vmem>>, %arg4: memref<128x128xbf16, #tpu.memory_space<vmem>>, %arg5: memref<1x128xf32, #tpu.memory_space<vmem>>, %arg6: memref<1x128xf32, #tpu.memory_space<vmem>>, %arg7: memref<1x128xf32, #tpu.memory_space<vmem>>, %arg8: memref<1x128xf32, #tpu.memory_space<vmem>>, %arg9: memref<8x128xbf16, #tpu.memory_space<vmem>>, %arg10: memref<8x128xf32, #tpu.memory_space<vmem>>) attributes {dimension_semantics = [#tpu.dimension_semantics<parallel>, #tpu.dimension_semantics<parallel>, #tpu.dimension_semantics<arbitrary>], iteration_bounds = array<i64: 1, 1, 5>, scalar_prefetch = 0 : i64, scratch_operands = 1 : i64, tpu.core_type = #tpu.core_type<tc>, window_params = [{transform_indices = @transform_0, window_bounds = array<i64: 8, 128>}, {transform_indices = @transform_1, window_bounds = array<i64: 128, 128>}, {transform_indices = @transform_2, window_bounds = array<i64: 1, 128>}, {transform_indices = @transform_3, window_bounds = array<i64: 1, 128>}, {transform_indices = @transform_4, window_bounds = array<i64: 1, 128>}, {transform_indices = @transform_5, window_bounds = array<i64: 1, 128>}, {transform_indices = @transform_6, window_bounds = array<i64: 8, 128>}]} {
    %c0_i32 = arith.constant 0 : i32
    %0 = arith.cmpi eq, %arg2, %c0_i32 : i32
    %1 = arith.extui %0 : i1 to i32
    %c0_i32_0 = arith.constant 0 : i32
    %2 = arith.cmpi ne, %1, %c0_i32_0 : i32
    scf.if %2 {
      %cst_9 = arith.constant 0.000000e+00 : f32
      %12 = vector.broadcast %cst_9 : f32 to vector<8x128xf32>
      %c0_10 = arith.constant 0 : index
      %c0_11 = arith.constant 0 : index
      %13 = vector.load %arg10[%c0_10, %c0_11] : memref<8x128xf32, #tpu.memory_space<vmem>>, vector<8x128xf32>
      tpu.vector_store %arg10[%c0_10, %c0_11], %12 {strides = array<i32>} : memref<8x128xf32, #tpu.memory_space<vmem>>, vector<8x128xf32>,
    } else {
    }
    %c0 = arith.constant 0 : index
    %c0_1 = arith.constant 0 : index
    %3 = vector.load %arg3[%c0, %c0_1] : memref<8x128xbf16, #tpu.memory_space<vmem>>, vector<8x128xbf16>
    %c0_2 = arith.constant 0 : index
    %c0_3 = arith.constant 0 : index
    %4 = vector.load %arg10[%c0_2, %c0_3] : memref<8x128xf32, #tpu.memory_space<vmem>>, vector<8x128xf32>
    %c0_4 = arith.constant 0 : index
    %c0_5 = arith.constant 0 : index
    %5 = vector.load %arg4[%c0_4, %c0_5] : memref<128x128xbf16, #tpu.memory_space<vmem>>, vector<128x128xbf16>
    %cst = arith.constant dense<0.000000e+00> : vector<8x128xf32>
    %6 = tpu.matmul %3, %5, %cst {dimension_numbers = #tpu.dot_dimension_numbers<[1], [0], [0], [1], [0, 0, 1, 1], [], []>} : vector<8x128xbf16>, vector<128x128xbf16>, vector<8x128xf32> -> vector<8x128xf32>
    %7 = arith.addf %4, %6 : vector<8x128xf32>
    %c0_6 = arith.constant 0 : index
    %c0_7 = arith.constant 0 : index
    %8 = vector.load %arg10[%c0_6, %c0_7] : memref<8x128xf32, #tpu.memory_space<vmem>>, vector<8x128xf32>
    tpu.vector_store %arg10[%c0_6, %c0_7], %7 {strides = array<i32>} : memref<8x128xf32, #tpu.memory_space<vmem>>, vector<8x128xf32>,
    %c4_i32 = arith.constant 4 : i32
    %9 = arith.cmpi eq, %arg2, %c4_i32 : i32
    %10 = arith.extui %9 : i1 to i32
    %c0_i32_8 = arith.constant 0 : i32
    %11 = arith.cmpi ne, %10, %c0_i32_8 : i32
    scf.if %11 {
      %c0_9 = arith.constant 0 : index
      %c0_10 = arith.constant 0 : index
      %12 = vector.load %arg10[%c0_9, %c0_10] : memref<8x128xf32, #tpu.memory_space<vmem>>, vector<8x128xf32>
      %13 = arith.truncf %12 : vector<8x128xf32> to vector<8x128xbf16>
      %c0_11 = arith.constant 0 : index
      %c0_12 = arith.constant 0 : index
      %14 = vector.load %arg9[%c0_11, %c0_12] : memref<8x128xbf16, #tpu.memory_space<vmem>>, vector<8x128xbf16>
      tpu.vector_store %arg9[%c0_11, %c0_12], %13 {strides = array<i32>} : memref<8x128xbf16, #tpu.memory_space<vmem>>, vector<8x128xbf16>,
    } else {
    }
    return
  }
  func.func @transform_0(%arg0: i32, %arg1: i32, %arg2: i32) -> (i32, i32) {
    %c0_i32 = arith.constant 0 : i32
    return %arg0, %arg2 : i32, i32
  }
  func.func @transform_1(%arg0: i32, %arg1: i32, %arg2: i32) -> (i32, i32) {
    %c0_i32 = arith.constant 0 : i32
    return %arg2, %arg1 : i32, i32
  }
  func.func @transform_2(%arg0: i32, %arg1: i32, %arg2: i32) -> (i32, i32) {
    %c0_i32 = arith.constant 0 : i32
    %c0_i32_0 = arith.constant 0 : i32
    return %c0_i32, %arg2 : i32, i32
  }
  func.func @transform_3(%arg0: i32, %arg1: i32, %arg2: i32) -> (i32, i32) {
    %c0_i32 = arith.constant 0 : i32
    %c0_i32_0 = arith.constant 0 : i32
    return %c0_i32, %arg2 : i32, i32
  }
  func.func @transform_4(%arg0: i32, %arg1: i32, %arg2: i32) -> (i32, i32) {
    %c0_i32 = arith.constant 0 : i32
    %c0_i32_0 = arith.constant 0 : i32
    return %c0_i32, %arg1 : i32, i32
  }
  func.func @transform_5(%arg0: i32, %arg1: i32, %arg2: i32) -> (i32, i32) {
    %c0_i32 = arith.constant 0 : i32
    %c0_i32_0 = arith.constant 0 : i32
    return %c0_i32, %arg1 : i32, i32
  }
  func.func @transform_6(%arg0: i32, %arg1: i32, %arg2: i32) -> (i32, i32) {
    %c0_i32 = arith.constant 0 : i32
    return %arg0, %arg1 : i32, i32
  }
}

module attributes {stable_mosaic.version = 11 : i64} {
  func.func @_fused_matmul_kernel(%arg0: i32, %arg1: i32, %arg2: i32, %arg3: memref<8x128xbf16, #tpu.memory_space<vmem>>, %arg4: memref<128x128xbf16, #tpu.memory_space<vmem>>, %arg5: memref<1x128xf32, #tpu.memory_space<vmem>>, %arg6: memref<1x128xf32, #tpu.memory_space<vmem>>, %arg7: memref<1x128xf32, #tpu.memory_space<vmem>>, %arg8: memref<1x128xf32, #tpu.memory_space<vmem>>, %arg9: memref<8x128xbf16, #tpu.memory_space<vmem>>, %arg10: memref<8x128xf32, #tpu.memory_space<vmem>>) attributes {dimension_semantics = [#tpu.dimension_semantics<parallel>, #tpu.dimension_semantics<parallel>, #tpu.dimension_semantics<arbitrary>], iteration_bounds = array<i64: 1, 1, 1>, scalar_prefetch = 0 : i64, scratch_operands = 1 : i64, tpu.core_type = #tpu.core_type<tc>, window_params = [{transform_indices = @transform_0, window_bounds = array<i64: 8, 128>}, {transform_indices = @transform_1, window_bounds = array<i64: 128, 128>}, {transform_indices = @transform_2, window_bounds = array<i64: 1, 128>}, {transform_indices = @transform_3, window_bounds = array<i64: 1, 128>}, {transform_indices = @transform_4, window_bounds = array<i64: 1, 128>}, {transform_indices = @transform_5, window_bounds = array<i64: 1, 128>}, {transform_indices = @transform_6, window_bounds = array<i64: 8, 128>}]} {
    %c0_i32 = arith.constant 0 : i32
    %0 = arith.cmpi eq, %arg2, %c0_i32 : i32
    %1 = arith.extui %0 : i1 to i32
    %c0_i32_0 = arith.constant 0 : i32
    %2 = arith.cmpi ne, %1, %c0_i32_0 : i32
    scf.if %2 {
      %cst_15 = arith.constant 0.000000e+00 : f32
      %22 = vector.broadcast %cst_15 : f32 to vector<8x128xf32>
      %c0_16 = arith.constant 0 : index
      %c0_17 = arith.constant 0 : index
      %23 = vector.load %arg10[%c0_16, %c0_17] : memref<8x128xf32, #tpu.memory_space<vmem>>, vector<8x128xf32>
      tpu.vector_store %arg10[%c0_16, %c0_17], %22 {strides = array<i32>} : memref<8x128xf32, #tpu.memory_space<vmem>>, vector<8x128xf32>,
    } else {
    }
    %c0 = arith.constant 0 : index
    %c0_1 = arith.constant 0 : index
    %3 = vector.load %arg3[%c0, %c0_1] : memref<8x128xbf16, #tpu.memory_space<vmem>>, vector<8x128xbf16>
    %4 = arith.extf %3 : vector<8x128xbf16> to vector<8x128xf32>
    %c0_2 = arith.constant 0 : index
    %c0_3 = arith.constant 0 : index
    %5 = vector.load %arg5[%c0_2, %c0_3] : memref<1x128xf32, #tpu.memory_space<vmem>>, vector<1x128xf32>
    %6 = vector.broadcast %5 : vector<1x128xf32> to vector<8x128xf32>
    %7 = arith.mulf %4, %6 : vector<8x128xf32>
    %c0_4 = arith.constant 0 : index
    %c0_5 = arith.constant 0 : index
    %8 = vector.load %arg6[%c0_4, %c0_5] : memref<1x128xf32, #tpu.memory_space<vmem>>, vector<1x128xf32>
    %9 = vector.broadcast %8 : vector<1x128xf32> to vector<8x128xf32>
    %10 = arith.addf %7, %9 : vector<8x128xf32>
    %cst = arith.constant 0.000000e+00 : f32
    %11 = vector.broadcast %cst : f32 to vector<8x128xf32>
    %12 = arith.maximumf %10, %11 : vector<8x128xf32>
    %c0_6 = arith.constant 0 : index
    %c0_7 = arith.constant 0 : index
    %13 = vector.load %arg10[%c0_6, %c0_7] : memref<8x128xf32, #tpu.memory_space<vmem>>, vector<8x128xf32>
    %14 = arith.truncf %12 : vector<8x128xf32> to vector<8x128xbf16>
    %c0_8 = arith.constant 0 : index
    %c0_9 = arith.constant 0 : index
    %15 = vector.load %arg4[%c0_8, %c0_9] : memref<128x128xbf16, #tpu.memory_space<vmem>>, vector<128x128xbf16>
    %cst_10 = arith.constant dense<0.000000e+00> : vector<8x128xf32>
    %16 = tpu.matmul %14, %15, %cst_10 {dimension_numbers = #tpu.dot_dimension_numbers<[1], [0], [0], [1], [0, 0, 1, 1], [], []>} : vector<8x128xbf16>, vector<128x128xbf16>, vector<8x128xf32> -> vector<8x128xf32>
    %17 = arith.addf %13, %16 : vector<8x128xf32>
    %c0_11 = arith.constant 0 : index
    %c0_12 = arith.constant 0 : index
    %18 = vector.load %arg10[%c0_11, %c0_12] : memref<8x128xf32, #tpu.memory_space<vmem>>, vector<8x128xf32>
    tpu.vector_store %arg10[%c0_11, %c0_12], %17 {strides = array<i32>} : memref<8x128xf32, #tpu.memory_space<vmem>>, vector<8x128xf32>,
    %c0_i32_13 = arith.constant 0 : i32
    %19 = arith.cmpi eq, %arg2, %c0_i32_13 : i32
    %20 = arith.extui %19 : i1 to i32
    %c0_i32_14 = arith.constant 0 : i32
    %21 = arith.cmpi ne, %20, %c0_i32_14 : i32
    scf.if %21 {
      %c0_15 = arith.constant 0 : index
      %c0_16 = arith.constant 0 : index
      %22 = vector.load %arg10[%c0_15, %c0_16] : memref<8x128xf32, #tpu.memory_space<vmem>>, vector<8x128xf32>
      %23 = arith.truncf %22 : vector<8x128xf32> to vector<8x128xbf16>
      %c0_17 = arith.constant 0 : index
      %c0_18 = arith.constant 0 : index
      %24 = vector.load %arg9[%c0_17, %c0_18] : memref<8x128xbf16, #tpu.memory_space<vmem>>, vector<8x128xbf16>
      tpu.vector_store %arg9[%c0_17, %c0_18], %23 {strides = array<i32>} : memref<8x128xbf16, #tpu.memory_space<vmem>>, vector<8x128xbf16>,
    } else {
    }
    return
  }
  func.func @transform_0(%arg0: i32, %arg1: i32, %arg2: i32) -> (i32, i32) {
    %c0_i32 = arith.constant 0 : i32
    return %arg0, %arg2 : i32, i32
  }
  func.func @transform_1(%arg0: i32, %arg1: i32, %arg2: i32) -> (i32, i32) {
    %c0_i32 = arith.constant 0 : i32
    return %arg2, %arg1 : i32, i32
  }
  func.func @transform_2(%arg0: i32, %arg1: i32, %arg2: i32) -> (i32, i32) {
    %c0_i32 = arith.constant 0 : i32
    %c0_i32_0 = arith.constant 0 : i32
    return %c0_i32, %arg2 : i32, i32
  }
  func.func @transform_3(%arg0: i32, %arg1: i32, %arg2: i32) -> (i32, i32) {
    %c0_i32 = arith.constant 0 : i32
    %c0_i32_0 = arith.constant 0 : i32
    return %c0_i32, %arg2 : i32, i32
  }
  func.func @transform_4(%arg0: i32, %arg1: i32, %arg2: i32) -> (i32, i32) {
    %c0_i32 = arith.constant 0 : i32
    %c0_i32_0 = arith.constant 0 : i32
    return %c0_i32, %arg1 : i32, i32
  }
  func.func @transform_5(%arg0: i32, %arg1: i32, %arg2: i32) -> (i32, i32) {
    %c0_i32 = arith.constant 0 : i32
    %c0_i32_0 = arith.constant 0 : i32
    return %c0_i32, %arg1 : i32, i32
  }
  func.func @transform_6(%arg0: i32, %arg1: i32, %arg2: i32) -> (i32, i32) {
    %c0_i32 = arith.constant 0 : i32
    return %arg0, %arg1 : i32, i32
  }
}

module attributes {stable_mosaic.version = 11 : i64} {
  func.func @_bn_relu_gap_kernel(%arg0: i32, %arg1: memref<2x1x64xbf16, #tpu.memory_space<vmem>>, %arg2: memref<1x1x64xf32, #tpu.memory_space<vmem>>, %arg3: memref<1x1x64xf32, #tpu.memory_space<vmem>>, %arg4: memref<2x64xf32, #tpu.memory_space<vmem>>) attributes {dimension_semantics = [#tpu.dimension_semantics<arbitrary>], iteration_bounds = array<i64: 1>, scalar_prefetch = 0 : i64, scratch_operands = 0 : i64, tpu.core_type = #tpu.core_type<tc>, window_params = [{pipeline_mode = #tpu.pipeline_mode<synchronous>, transform_indices = @transform_0, window_bounds = array<i64: 2, 1, 64>}, {pipeline_mode = #tpu.pipeline_mode<synchronous>, transform_indices = @transform_1, window_bounds = array<i64: 1, 1, 64>}, {pipeline_mode = #tpu.pipeline_mode<synchronous>, transform_indices = @transform_2, window_bounds = array<i64: 1, 1, 64>}, {pipeline_mode = #tpu.pipeline_mode<synchronous>, transform_indices = @transform_3, window_bounds = array<i64: 2, 64>}]} {
    %c0 = arith.constant 0 : index
    %c0_0 = arith.constant 0 : index
    %c0_1 = arith.constant 0 : index
    %0 = vector.load %arg1[%c0, %c0_0, %c0_1] : memref<2x1x64xbf16, #tpu.memory_space<vmem>>, vector<2x1x64xbf16>
    %1 = arith.extf %0 : vector<2x1x64xbf16> to vector<2x1x64xf32>
    %c0_2 = arith.constant 0 : index
    %c0_3 = arith.constant 0 : index
    %c0_4 = arith.constant 0 : index
    %2 = vector.load %arg2[%c0_2, %c0_3, %c0_4] : memref<1x1x64xf32, #tpu.memory_space<vmem>>, vector<1x1x64xf32>
    %3 = vector.broadcast %2 : vector<1x1x64xf32> to vector<2x1x64xf32>
    %4 = arith.mulf %1, %3 : vector<2x1x64xf32>
    %c0_5 = arith.constant 0 : index
    %c0_6 = arith.constant 0 : index
    %c0_7 = arith.constant 0 : index
    %5 = vector.load %arg3[%c0_5, %c0_6, %c0_7] : memref<1x1x64xf32, #tpu.memory_space<vmem>>, vector<1x1x64xf32>
    %6 = vector.broadcast %5 : vector<1x1x64xf32> to vector<2x1x64xf32>
    %7 = arith.addf %4, %6 : vector<2x1x64xf32>
    %cst = arith.constant 0.000000e+00 : f32
    %8 = vector.broadcast %cst : f32 to vector<2x1x64xf32>
    %9 = arith.maximumf %7, %8 : vector<2x1x64xf32>
    %cst_8 = arith.constant dense<0.000000e+00> : vector<2x64xf32>
    %10 = vector.multi_reduction <add>, %9, %cst_8 [1] : vector<2x1x64xf32> to vector<2x64xf32>
    %cst_9 = arith.constant 1.000000e+00 : f32
    %11 = vector.broadcast %cst_9 : f32 to vector<2x64xf32>
    %12 = arith.divf %10, %11 : vector<2x64xf32>
    %c0_10 = arith.constant 0 : index
    %c0_11 = arith.constant 0 : index
    %13 = vector.load %arg4[%c0_10, %c0_11] : memref<2x64xf32, #tpu.memory_space<vmem>>, vector<2x64xf32>
    tpu.vector_store %arg4[%c0_10, %c0_11], %12 {strides = array<i32>} : memref<2x64xf32, #tpu.memory_space<vmem>>, vector<2x64xf32>,
    return
  }
  func.func @transform_0(%arg0: i32) -> (i32, i32, i32) {
    %c0_i32 = arith.constant 0 : i32
    %c0_i32_0 = arith.constant 0 : i32
    %c0_i32_1 = arith.constant 0 : i32
    %c0_i32_2 = arith.constant 0 : i32
    return %c0_i32, %c0_i32_0, %c0_i32_1 : i32, i32, i32
  }
  func.func @transform_1(%arg0: i32) -> (i32, i32, i32) {
    %c0_i32 = arith.constant 0 : i32
    %c0_i32_0 = arith.constant 0 : i32
    %c0_i32_1 = arith.constant 0 : i32
    %c0_i32_2 = arith.constant 0 : i32
    return %c0_i32, %c0_i32_0, %c0_i32_1 : i32, i32, i32
  }
  func.func @transform_2(%arg0: i32) -> (i32, i32, i32) {
    %c0_i32 = arith.constant 0 : i32
    %c0_i32_0 = arith.constant 0 : i32
    %c0_i32_1 = arith.constant 0 : i32
    %c0_i32_2 = arith.constant 0 : i32
    return %c0_i32, %c0_i32_0, %c0_i32_1 : i32, i32, i32
  }
  func.func @transform_3(%arg0: i32) -> (i32, i32) {
    %c0_i32 = arith.constant 0 : i32
    %c0_i32_0 = arith.constant 0 : i32
    %c0_i32_1 = arith.constant 0 : i32
    return %c0_i32, %c0_i32_0 : i32, i32
  }
}

</mosaic_0001>

<bundles_post_ra>
// kernel: densenet_forward.22
= control target key start
LH: loop header
LB: loop body
LE: loop exit
PB: predicated region body
PF: predicated region fallthrough
CT: control target
= control target key end

     0   :  { %s895_s1 = inlined_call_operand.vmem [shape: bf16[128,128], index: 1, kind: input, shape index: {}]   ;;  %s896_s0 = inlined_call_operand.vmem [shape: bf16[128,128], index: 0, kind: input, shape index: {}]   ;;  %s897_s2 = inlined_call_operand.vmem [shape: f32[1,128], index: 2, kind: input, shape index: {}]   ;;  %s898_s3 = inlined_call_operand.vmem [shape: f32[1,128], index: 3, kind: input, shape index: {}]   ;;  %s899_s4 = inlined_call_operand.vmem [shape: f32[1,128], index: 4, kind: input, shape index: {}]   ;;  %s900_s5 = inlined_call_operand.vmem [shape: f32[1,128], index: 5, kind: input, shape index: {}]   ;;  %s901_s6 = inlined_call_operand.vmem [shape: bf16[128,128], index: 6, kind: output, shape index: {}]  }
   0x1   :  { %v714_v0 = vld [vmem:[%s895_s1] sm:$0xff]   ;;  %v715_v1 = vld [vmem:[%s895_s1 + $0x8] sm:$0xff]   ;;  %v716_v2 = vld [vmem:[%s895_s1 + $0x10] sm:$0xff]  }
   0x2   :  { %666 = vmatprep.subr.bf16.mxu0 %v714_v0  ;;  %698 = vmatprep.subr.bf16.mxu1 %v714_v0  ;;  %v717_v3 = vld [vmem:[%s895_s1 + $0x18] sm:$0xff]   ;;  %v565_v4 = vld [vmem:[%s896_s0] sm:$0xff]   ;;  %v636_v9 = vld [vmem:[%s896_s0 + $0x8] sm:$0xff]  }
   0x3   :  { %667 = vmatpush3.bf16.msra.mxu0 %v714_v0  ;;  %706 = vmatpush3.bf16.msra.mxu1 %v714_v0  ;;  %v775_v5 = vld [vmem:[%s897_s2] ss:$0 sm:$0xff]  ;;  %v566_v6 = vunpack.c.l.bf16 %v565_v4  ;;  %v567_v7 = vunpack.c.h.bf16 %v565_v4  ;;  %v640_v13 = vld [vmem:[%s896_s0 + $0x28] sm:$0xff]   ;;  %v637_v16 = vld [vmem:[%s896_s0 + $0x10] sm:$0xff]   ;;  %v570_v20 = vunpack.c.l.bf16 %v636_v9  ;;  %v571_v21 = vunpack.c.h.bf16 %v636_v9 }
   0x4   :  { %668 = vmatprep.subr.bf16.mxu0 %v715_v1  ;;  %699 = vmatprep.subr.bf16.mxu1 %v715_v1  ;;  %v639_v8 = vld [vmem:[%s896_s0 + $0x20] sm:$0xff]   ;;  %v586_v24 = vunpack.c.l.bf16 %v640_v13  ;;  %v587_v25 = vunpack.c.h.bf16 %v640_v13  ;;  %v574_v28 = vunpack.c.l.bf16 %v637_v16  ;;  %v641_v31 = vld [vmem:[%s896_s0 + $0x30] sm:$0xff]   ;;  %v719_v32 = vld [vmem:[%s895_s1 + $0x28] sm:$0xff]   ;;  %v575_v40 = vunpack.c.h.bf16 %v637_v16 }
   0x5   :  { %v786_v10 = vld [vmem:[%s898_s3] ss:$0 sm:$0xff]  ;;  %v582_v11 = vunpack.c.l.bf16 %v639_v8  ;;  %v583_v12 = vunpack.c.h.bf16 %v639_v8  ;;  %v83_v14 = vmul.f32 %v566_v6, %v775_v5  ;;  %v84_v15 = vmul.f32 %v567_v7, %v775_v5  ;;  %v638_v44 = vld [vmem:[%s896_s0 + $0x18] sm:$0xff]   ;;  %v720_v48 = vld [vmem:[%s895_s1 + $0x30] sm:$0xff]  }
   0x6   :  { %v718_v17 = vld [vmem:[%s895_s1 + $0x20] sm:$0xff]   ;;  %v85_v35 = vmul.f32 %v570_v20, %v775_v5  ;;  %v86_v36 = vmul.f32 %v571_v21, %v775_v5  ;;  %v93_v38 = vmul.f32 %v586_v24, %v775_v5  ;;  %v94_v39 = vmul.f32 %v587_v25, %v775_v5  ;;  %v642_v47 = vld [vmem:[%s896_s0 + $0x38] sm:$0xff]  }
   0x7   :  { %669 = vmatpush3.bf16.msra.mxu0 %v715_v1  ;;  %707 = vmatpush3.bf16.msra.mxu1 %v715_v1  ;;  %v91_v18 = vmul.f32 %v582_v11, %v775_v5  ;;  %v92_v19 = vmul.f32 %v583_v12, %v775_v5  ;;  %v106_v22 = vadd.f32 %v786_v10, %v83_v14  ;;  %v590_v43 = vunpack.c.l.bf16 %v641_v31  ;;  %v721_v63 = vld [vmem:[%s895_s1 + $0x38] sm:$0xff]  }
   0x8   :  { %670 = vmatprep.subr.bf16.mxu0 %v716_v2  ;;  %700 = vmatprep.subr.bf16.mxu1 %v716_v2  ;;  %v107_v23 = vadd.f32 %v786_v10, %v84_v15  ;;  %v87_v42 = vmul.f32 %v574_v28, %v775_v5  ;;  %v88_v45 = vmul.f32 %v575_v40, %v775_v5  ;;  %v591_v46 = vunpack.c.h.bf16 %v641_v31  ;;  %v853_v28 = vld [vmem:[%s900_s5] ss:$0 sm:$0xff] }
   0x9   :  { %v114_v26 = vadd.f32 %v786_v10, %v91_v18  ;;  %v115_v27 = vadd.f32 %v786_v10, %v92_v19  ;;  %v122_v29 = vmax.f32 %v106_v22, 0.0  ;;  %v108_v49 = vadd.f32 %v786_v10, %v85_v35 }
   0xa   :  { %v123_v30 = vmax.f32 %v107_v23, 0.0  ;;  %v109_v50 = vadd.f32 %v786_v10, %v86_v36  ;;  %v95_v51 = vmul.f32 %v590_v43, %v775_v5  ;;  %v116_v52 = vadd.f32 %v786_v10, %v93_v38 }
   0xb   :  { %671 = vmatpush3.bf16.msra.mxu0 %v716_v2  ;;  %708 = vmatpush3.bf16.msra.mxu1 %v716_v2  ;;  %v130_v33 = vmax.f32 %v114_v26, 0.0  ;;  %v131_v34 = vmax.f32 %v115_v27, 0.0  ;;  %v117_v53 = vadd.f32 %v786_v10, %v94_v39  ;;  %v96_v54 = vmul.f32 %v591_v46, %v775_v5 }
   0xc   :  { %672 = vmatprep.subr.bf16.mxu0 %v717_v3  ;;  %701 = vmatprep.subr.bf16.mxu1 %v717_v3  ;;  %v154_v37 = vpack.c.bf16 %v123_v30, %v122_v29  ;;  %v578_v55 = vunpack.c.l.bf16 %v638_v44  ;;  %v110_v56 = vadd.f32 %v786_v10, %v87_v42  ;;  %v579_v57 = vunpack.c.h.bf16 %v638_v44 }
   0xd   :  { %v158_v41 = vpack.c.bf16 %v131_v34, %v130_v33  ;;  %v594_v58 = vunpack.c.l.bf16 %v642_v47  ;;  %v595_v59 = vunpack.c.h.bf16 %v642_v47  ;;  %v111_v60 = vadd.f32 %v786_v10, %v88_v45 }
   0xe   :  { %682 = vmatprep.mubr.bf16.mxu0 %v154_v37  ;;  %v118_v61 = vadd.f32 %v786_v10, %v95_v51  ;;  %v119_v62 = vadd.f32 %v786_v10, %v96_v54  ;;  %v124_v0 = vmax.f32 %v108_v49, 0.0  ;;  %v125_v1 = vmax.f32 %v109_v50, 0.0 }
   0xf   :  { %673 = vmatpush3.bf16.msra.mxu0 %v717_v3  ;;  %709 = vmatpush3.bf16.msra.mxu1 %v717_v3  ;;  %v132_v2 = vmax.f32 %v116_v52, 0.0  ;;  %v133_v3 = vmax.f32 %v117_v53, 0.0  ;;  %v89_v4 = vmul.f32 %v578_v55, %v775_v5  ;;  %v90_v6 = vmul.f32 %v579_v57, %v775_v5 }
  0x10   :  { %674 = vmatprep.subr.bf16.mxu0 %v718_v17  ;;  %702 = vmatprep.subr.bf16.mxu1 %v718_v17  ;;  %v97_v7 = vmul.f32 %v594_v58, %v775_v5  ;;  %v98_v8 = vmul.f32 %v595_v59, %v775_v5  ;;  %v126_v9 = vmax.f32 %v110_v56, 0.0  ;;  %v127_v11 = vmax.f32 %v111_v60, 0.0 }
  0x11   :  { %690 = vmatprep.mubr.bf16.mxu1 %v158_v41  ;;  %v134_v12 = vmax.f32 %v118_v61, 0.0  ;;  %v135_v13 = vmax.f32 %v119_v62, 0.0  ;;  %v155_v14 = vpack.c.bf16 %v125_v1, %v124_v0  ;;  %v159_v15 = vpack.c.bf16 %v133_v3, %v132_v2 }
  0x12   :  { %v112_v16 = vadd.f32 %v786_v10, %v89_v4  ;;  %v120_v18 = vadd.f32 %v786_v10, %v97_v7  ;;  %v121_v19 = vadd.f32 %v786_v10, %v98_v8  ;;  %v156_v5 = vpack.c.bf16 %v127_v11, %v126_v9 }
  0x13   :  { %675 = vmatpush3.bf16.msra.mxu0 %v718_v17  ;;  %710 = vmatpush3.bf16.msra.mxu1 %v718_v17  ;;  %v113_v17 = vadd.f32 %v786_v10, %v90_v6  ;;  %v160_v20 = vpack.c.bf16 %v135_v13, %v134_v12  ;;  %v530_v10 = vld [vmem:[%s899_s4] ss:$0 sm:$0xff] }
  0x14   :  { %676 = vmatprep.subr.bf16.mxu0 %v719_v32  ;;  %703 = vmatprep.subr.bf16.mxu1 %v719_v32  ;;  %v128_v21 = vmax.f32 %v112_v16, 0.0  ;;  %v136_v23 = vmax.f32 %v120_v18, 0.0  ;;  %v137_v24 = vmax.f32 %v121_v19, 0.0 }
  0x15   :  { %v129_v22 = vmax.f32 %v113_v17, 0.0 }
  0x16   :  { %v161_v26 = vpack.c.bf16 %v137_v24, %v136_v23 }
  0x17   :  { %677 = vmatpush3.bf16.msra.mxu0 %v719_v32  ;;  %711 = vmatpush3.bf16.msra.mxu1 %v719_v32  ;;  %v157_v25 = vpack.c.bf16 %v129_v22, %v128_v21 }
  0x18   :  { %678 = vmatprep.subr.bf16.mxu0 %v720_v48  ;;  %704 = vmatprep.subr.bf16.mxu1 %v720_v48 }
  0x1b   :  { %679 = vmatpush3.bf16.msra.mxu0 %v720_v48  ;;  %712 = vmatpush3.bf16.msra.mxu1 %v720_v48 }
  0x1c   :  { %680 = vmatprep.subr.bf16.mxu0 %v721_v63  ;;  %705 = vmatprep.subr.bf16.mxu1 %v721_v63 }
  0x1f   :  { %681 = vmatpush3.bf16.msra.mxu0 %v721_v63  ;;  %713 = vmatpush3.bf16.msra.mxu1 %v721_v63 }
  0x22   :  { %683 = vmatmul.mubr.bf16.vlgmr.msra.gmra.mrb[0].mxu0 %v155_v14  ;;  %691 = vmatmul.mubr.bf16.vlgmr.msra.gmra.mrb[0].mxu1 %v159_v15 }
  0x23   :  { %686 = vmatprep.mubr.bf16.mxu0 %v156_v5  ;;  %694 = vmatprep.mubr.bf16.mxu1 %v160_v20 }
  0x2a   :  { %687 = vmatmul.mubr.bf16.gmra.mrb[4].mxu0 %v157_v25  ;;  %695 = vmatmul.mubr.bf16.gmra.mrb[4].mxu1 %v161_v26 }
  0xf5   :  { %v684_v27 = vpop.f32.mrb[0].mxu0  ;;  %v692_v29 = vpop.f32.mrb[0].mxu1 }
  0xf6   :  { %v383_v30 = vmul.f32 %v684_v27, %v530_v10  ;;  %v391_v31 = vmul.f32 %v692_v29, %v530_v10  ;;  %v260_v32 = vpop.f32.mrb[1].mxu0  ;;  %v292_v33 = vpop.f32.mrb[1].mxu1 }
  0xf7   :  { %v381_v34 = vmul.f32 %v530_v10, %v260_v32  ;;  %v389_v35 = vmul.f32 %v530_v10, %v292_v33  ;;  %v685_v36 = vpop.f32.mrb[2].mxu0  ;;  %v693_v37 = vpop.f32.mrb[2].mxu1 }
  0xf8   :  { %v406_v38 = vadd.f32 %v853_v28, %v383_v30  ;;  %v414_v39 = vadd.f32 %v853_v28, %v391_v31  ;;  %v384_v40 = vmul.f32 %v685_v36, %v530_v10  ;;  %v392_v41 = vmul.f32 %v693_v37, %v530_v10  ;;  %v263_v42 = vpop.f32.mrb[3].mxu0  ;;  %v295_v43 = vpop.f32.mrb[3].mxu1 }
  0xf9   :  { %v404_v44 = vadd.f32 %v853_v28, %v381_v34  ;;  %v412_v45 = vadd.f32 %v853_v28, %v389_v35  ;;  %v382_v46 = vmul.f32 %v530_v10, %v263_v42  ;;  %v390_v47 = vmul.f32 %v530_v10, %v295_v43 }
  0xfa   :  { %v407_v48 = vadd.f32 %v853_v28, %v384_v40  ;;  %v415_v49 = vadd.f32 %v853_v28, %v392_v41  ;;  %v422_v52 = vmax.f32 %v406_v38, 0.0  ;;  %v430_v53 = vmax.f32 %v414_v39, 0.0 }
  0xfb   :  { %v405_v50 = vadd.f32 %v853_v28, %v382_v46  ;;  %v413_v51 = vadd.f32 %v853_v28, %v390_v47  ;;  %v420_v56 = vmax.f32 %v404_v44, 0.0  ;;  %v428_v57 = vmax.f32 %v412_v45, 0.0 }
  0xfc   :  { %v423_v54 = vmax.f32 %v407_v48, 0.0  ;;  %v431_v55 = vmax.f32 %v415_v49, 0.0 }
  0xfd   :  { %v421_v58 = vmax.f32 %v405_v50, 0.0  ;;  %v429_v59 = vmax.f32 %v413_v51, 0.0  ;;  %v688_v60 = vpop.f32.mrb[4].mxu0  ;;  %v696_v61 = vpop.f32.mrb[4].mxu1 }
  0xfe   :  { %v604_v62 = vpack.c.bf16 %v423_v54, %v422_v52  ;;  %v624_v63 = vpack.c.bf16 %v431_v55, %v430_v53  ;;  %v387_v0 = vmul.f32 %v688_v60, %v530_v10  ;;  %v395_v1 = vmul.f32 %v696_v61, %v530_v10  ;;  %v276_v2 = vpop.f32.mrb[5].mxu0  ;;  %v308_v3 = vpop.f32.mrb[5].mxu1 }
  0xff   :  { %v599_v4 = vpack.c.bf16 %v421_v58, %v420_v56  ;;  %v619_v6 = vpack.c.bf16 %v429_v59, %v428_v57  ;;  %v385_v7 = vmul.f32 %v530_v10, %v276_v2  ;;  %v393_v8 = vmul.f32 %v530_v10, %v308_v3  ;;  %v689_v9 = vpop.f32.mrb[6].mxu0  ;;  %v697_v11 = vpop.f32.mrb[6].mxu1 }
 0x100   :  { %643 = vst [vmem:[%s901_s6 + $0x8] sm:$0xff] %v604_v62   ;;  %647 = vst [vmem:[%s901_s6 + $0x28] sm:$0xff] %v624_v63   ;;  %v410_v12 = vadd.f32 %v853_v28, %v387_v0  ;;  %v418_v13 = vadd.f32 %v853_v28, %v395_v1  ;;  %v388_v14 = vmul.f32 %v689_v9, %v530_v10  ;;  %v279_v16 = vpop.f32.mrb[7].mxu0  ;;  %v311_v17 = vpop.f32.mrb[7].mxu1 }
 0x101   :  { %v396_v15 = vmul.f32 %v697_v11, %v530_v10  ;;  %600 = vst [vmem:[%s901_s6] sm:$0xff] %v599_v4   ;;  %646 = vst [vmem:[%s901_s6 + $0x20] sm:$0xff] %v619_v6   ;;  %v408_v18 = vadd.f32 %v853_v28, %v385_v7  ;;  %v416_v19 = vadd.f32 %v853_v28, %v393_v8 }
 0x102   :  { %v386_v5 = vmul.f32 %v530_v10, %v279_v16  ;;  %v394_v20 = vmul.f32 %v530_v10, %v311_v17  ;;  %v411_v21 = vadd.f32 %v853_v28, %v388_v14  ;;  %v426_v25 = vmax.f32 %v410_v12, 0.0 }
 0x103   :  { %v419_v22 = vadd.f32 %v853_v28, %v396_v15  ;;  %v434_v26 = vmax.f32 %v418_v13, 0.0  ;;  %v424_v30 = vmax.f32 %v408_v18, 0.0  ;;  %v432_v31 = vmax.f32 %v416_v19, 0.0 }
 0x104   :  { %v409_v23 = vadd.f32 %v853_v28, %v386_v5  ;;  %v417_v24 = vadd.f32 %v853_v28, %v394_v20  ;;  %v427_v27 = vmax.f32 %v411_v21, 0.0 }
 0x105   :  { %v435_v29 = vmax.f32 %v419_v22, 0.0 }
 0x106   :  { %v425_v32 = vmax.f32 %v409_v23, 0.0  ;;  %v433_v33 = vmax.f32 %v417_v24, 0.0  ;;  %v614_v34 = vpack.c.bf16 %v427_v27, %v426_v25 }
 0x107   :  { %v634_v35 = vpack.c.bf16 %v435_v29, %v434_v26 }
 0x108   :  { %v609_v36 = vpack.c.bf16 %v425_v32, %v424_v30  ;;  %v629_v10 = vpack.c.bf16 %v433_v33, %v432_v31  ;;  %645 = vst [vmem:[%s901_s6 + $0x18] sm:$0xff] %v614_v34  }
 0x109   :  { %649 = vst [vmem:[%s901_s6 + $0x38] sm:$0xff] %v634_v35  }
 0x10a   :  { %644 = vst [vmem:[%s901_s6 + $0x10] sm:$0xff] %v609_v36   ;;  %648 = vst [vmem:[%s901_s6 + $0x30] sm:$0xff] %v629_v10  }

// kernel: densenet_forward.21
= control target key start
LH: loop header
LB: loop body
LE: loop exit
PB: predicated region body
PF: predicated region fallthrough
CT: control target
= control target key end

     0   :  { %v2228_v0 = vmov 0   ;;  %s2770_s2 = inlined_call_operand.vmem [shape: f32[1,256], index: 2, kind: input, shape index: {}]   ;;  %s2771_s3 = inlined_call_operand.vmem [shape: f32[1,256], index: 3, kind: input, shape index: {}]   ;;  %s2772_s1 = inlined_call_operand.vmem [shape: bf16[256,128], index: 1, kind: input, shape index: {}]   ;;  %s2773_s0 = inlined_call_operand.vmem [shape: bf16[512,256], index: 0, kind: input, shape index: {}]   ;;  %s2774_s4 = inlined_call_operand.vmem [shape: f32[1,128], index: 4, kind: input, shape index: {}]   ;;  %s2775_s5 = inlined_call_operand.vmem [shape: f32[1,128], index: 5, kind: input, shape index: {}]   ;;  %s2776_s6 = inlined_call_operand.vmem [shape: bf16[512,128], index: 6, kind: output, shape index: {}]  }
   0x1   :  { %668 = vmatprep.subr.bf16.mxu0 %v2228_v0  ;;  %2083 = vmatprep.subr.bf16.mxu1 %v2228_v0  ;;  %v2116_v1 = vld [vmem:[%s2772_s1] sm:$0xff]   ;;  %v2117_v2 = vld [vmem:[%s2772_s1 + $0x8] sm:$0xff]   ;;  %v2118_v3 = vld [vmem:[%s2772_s1 + $0x10] sm:$0xff]  }
   0x2   :  { %669 = vmatpush1.bf16.msra.mxu0 %v2116_v1  ;;  %2099 = vmatpush1.bf16.msra.mxu1 %v2116_v1  ;;  %v2119_v4 = vld [vmem:[%s2772_s1 + $0x18] sm:$0xff]   ;;  %v2120_v5 = vld [vmem:[%s2772_s1 + $0x20] sm:$0xff]   ;;  %v2121_v7 = vld [vmem:[%s2772_s1 + $0x28] sm:$0xff]  }
   0x3   :  { %670 = vmatprep.subr.bf16.mxu0 %v2228_v0  ;;  %2084 = vmatprep.subr.bf16.mxu1 %v2228_v0  ;;  %v2134_v6 = vld [vmem:[%s2773_s0 + $0x4] ss:$8 sps:$4 sm:$0xff]   ;;  %v2122_v9 = vld [vmem:[%s2772_s1 + $0x30] sm:$0xff]   ;;  %v2123_v10 = vld [vmem:[%s2772_s1 + $0x38] sm:$0xff]  }
   0x4   :  { %v2137_v8 = vld [vmem:[%s2773_s0 + $0x104] ss:$8 sps:$4 sm:$0xff]   ;;  %700 = vmatprep.mubr.bf16.mxu0 %v2134_v6  ;;  %v2126_v13 = vld [vmem:[%s2772_s1 + $0x50] sm:$0xff]   ;;  %v2127_v14 = vld [vmem:[%s2772_s1 + $0x58] sm:$0xff]  }
   0x5   :  { %828 = vmatprep.mubr.bf16.mxu1 %v2137_v8  ;;  %v2124_v11 = vld [vmem:[%s2772_s1 + $0x40] sm:$0xff]   ;;  %v2125_v12 = vld [vmem:[%s2772_s1 + $0x48] sm:$0xff]   ;;  %v2130_v17 = vld [vmem:[%s2772_s1 + $0x70] sm:$0xff]  }
   0x6   :  { %671 = vmatpush1.bf16.msra.mxu0 %v2117_v2  ;;  %2100 = vmatpush1.bf16.msra.mxu1 %v2117_v2  ;;  %v2128_v15 = vld [vmem:[%s2772_s1 + $0x60] sm:$0xff]   ;;  %v2129_v16 = vld [vmem:[%s2772_s1 + $0x68] sm:$0xff]   ;;  %v2131_v18 = vld [vmem:[%s2772_s1 + $0x78] sm:$0xff]  }
   0x7   :  { %672 = vmatprep.subr.bf16.mxu0 %v2228_v0  ;;  %2085 = vmatprep.subr.bf16.mxu1 %v2228_v0  ;;  %v2132_v19 = vld [vmem:[%s2773_s0] ss:$8 sps:$4 sm:$0xff]   ;;  %v2138_v21 = vld [vmem:[%s2773_s0 + $0x14] ss:$8 sps:$4 sm:$0xff]   ;;  %v2142_v23 = vld [vmem:[%s2773_s0 + $0x10] ss:$8 sps:$4 sm:$0xff]  }
   0x8   :  { %v2135_v20 = vld [vmem:[%s2773_s0 + $0x100] ss:$8 sps:$4 sm:$0xff]   ;;  %v2140_v22 = vld [vmem:[%s2773_s0 + $0x114] ss:$8 sps:$4 sm:$0xff]   ;;  %v2143_v24 = vld [vmem:[%s2773_s0 + $0x110] ss:$8 sps:$4 sm:$0xff]  }
   0x9   :  { %v2144_v25 = vld [vmem:[%s2773_s0 + $0x24] ss:$8 sps:$4 sm:$0xff]   ;;  %v2148_v27 = vld [vmem:[%s2773_s0 + $0x20] ss:$8 sps:$4 sm:$0xff]   ;;  %v2150_v29 = vld [vmem:[%s2773_s0 + $0x34] ss:$8 sps:$4 sm:$0xff]  }
   0xa   :  { %673 = vmatpush1.bf16.msra.mxu0 %v2118_v3  ;;  %2101 = vmatpush1.bf16.msra.mxu1 %v2118_v3  ;;  %v2146_v26 = vld [vmem:[%s2773_s0 + $0x124] ss:$8 sps:$4 sm:$0xff]   ;;  %v2149_v28 = vld [vmem:[%s2773_s0 + $0x120] ss:$8 sps:$4 sm:$0xff]   ;;  %v2152_v30 = vld [vmem:[%s2773_s0 + $0x134] ss:$8 sps:$4 sm:$0xff]  }
   0xb   :  { %674 = vmatprep.subr.bf16.mxu0 %v2228_v0  ;;  %2086 = vmatprep.subr.bf16.mxu1 %v2228_v0  ;;  %v2154_v31 = vld [vmem:[%s2773_s0 + $0x30] ss:$8 sps:$4 sm:$0xff]   ;;  %v2156_v33 = vld [vmem:[%s2773_s0 + $0x44] ss:$8 sps:$4 sm:$0xff]   ;;  %v2160_v35 = vld [vmem:[%s2773_s0 + $0x40] ss:$8 sps:$4 sm:$0xff]  }
   0xc   :  { %v2155_v32 = vld [vmem:[%s2773_s0 + $0x130] ss:$8 sps:$4 sm:$0xff]   ;;  %v2158_v34 = vld [vmem:[%s2773_s0 + $0x144] ss:$8 sps:$4 sm:$0xff]   ;;  %v2161_v36 = vld [vmem:[%s2773_s0 + $0x140] ss:$8 sps:$4 sm:$0xff]  }
   0xd   :  { %v2162_v37 = vld [vmem:[%s2773_s0 + $0x54] ss:$8 sps:$4 sm:$0xff]   ;;  %v2166_v39 = vld [vmem:[%s2773_s0 + $0x50] ss:$8 sps:$4 sm:$0xff]   ;;  %v2168_v41 = vld [vmem:[%s2773_s0 + $0x64] ss:$8 sps:$4 sm:$0xff]  }
   0xe   :  { %675 = vmatpush1.bf16.msra.mxu0 %v2119_v4  ;;  %2102 = vmatpush1.bf16.msra.mxu1 %v2119_v4  ;;  %v2164_v38 = vld [vmem:[%s2773_s0 + $0x154] ss:$8 sps:$4 sm:$0xff]   ;;  %v2167_v40 = vld [vmem:[%s2773_s0 + $0x150] ss:$8 sps:$4 sm:$0xff]   ;;  %v2170_v42 = vld [vmem:[%s2773_s0 + $0x164] ss:$8 sps:$4 sm:$0xff]  }
   0xf   :  { %676 = vmatprep.subr.bf16.mxu0 %v2228_v0  ;;  %2087 = vmatprep.subr.bf16.mxu1 %v2228_v0  ;;  %v2172_v43 = vld [vmem:[%s2773_s0 + $0x60] ss:$8 sps:$4 sm:$0xff]   ;;  %v2174_v45 = vld [vmem:[%s2773_s0 + $0x74] ss:$8 sps:$4 sm:$0xff]   ;;  %v2178_v47 = vld [vmem:[%s2773_s0 + $0x70] ss:$8 sps:$4 sm:$0xff]  }
  0x10   :  { %v2173_v44 = vld [vmem:[%s2773_s0 + $0x160] ss:$8 sps:$4 sm:$0xff]   ;;  %v2176_v46 = vld [vmem:[%s2773_s0 + $0x174] ss:$8 sps:$4 sm:$0xff]   ;;  %v2179_v48 = vld [vmem:[%s2773_s0 + $0x170] ss:$8 sps:$4 sm:$0xff]  }
  0x11   :  { %v2180_v49 = vld [vmem:[%s2773_s0 + $0x84] ss:$8 sps:$4 sm:$0xff]   ;;  %v2184_v51 = vld [vmem:[%s2773_s0 + $0x80] ss:$8 sps:$4 sm:$0xff]   ;;  %v2186_v53 = vld [vmem:[%s2773_s0 + $0x94] ss:$8 sps:$4 sm:$0xff]  }
  0x12   :  { %677 = vmatpush1.bf16.msra.mxu0 %v2120_v5  ;;  %2103 = vmatpush1.bf16.msra.mxu1 %v2120_v5  ;;  %v2182_v50 = vld [vmem:[%s2773_s0 + $0x184] ss:$8 sps:$4 sm:$0xff]   ;;  %v2185_v52 = vld [vmem:[%s2773_s0 + $0x180] ss:$8 sps:$4 sm:$0xff]   ;;  %v2188_v54 = vld [vmem:[%s2773_s0 + $0x194] ss:$8 sps:$4 sm:$0xff]  }
  0x13   :  { %678 = vmatprep.subr.bf16.mxu0 %v2228_v0  ;;  %2088 = vmatprep.subr.bf16.mxu1 %v2228_v0  ;;  %v2190_v55 = vld [vmem:[%s2773_s0 + $0x90] ss:$8 sps:$4 sm:$0xff]   ;;  %v2192_v57 = vld [vmem:[%s2773_s0 + $0xa4] ss:$8 sps:$4 sm:$0xff]   ;;  %v2196_v59 = vld [vmem:[%s2773_s0 + $0xa0] ss:$8 sps:$4 sm:$0xff]  }
  0x14   :  { %v2191_v56 = vld [vmem:[%s2773_s0 + $0x190] ss:$8 sps:$4 sm:$0xff]   ;;  %v2194_v58 = vld [vmem:[%s2773_s0 + $0x1a4] ss:$8 sps:$4 sm:$0xff]   ;;  %v2197_v60 = vld [vmem:[%s2773_s0 + $0x1a0] ss:$8 sps:$4 sm:$0xff]  }
  0x15   :  { %v2198_v61 = vld [vmem:[%s2773_s0 + $0xb4] ss:$8 sps:$4 sm:$0xff]   ;;  %v2202_v63 = vld [vmem:[%s2773_s0 + $0xb0] ss:$8 sps:$4 sm:$0xff]   ;;  %v2204_v1 = vld [vmem:[%s2773_s0 + $0xc4] ss:$8 sps:$4 sm:$0xff]  }
  0x16   :  { %679 = vmatpush1.bf16.msra.mxu0 %v2121_v7  ;;  %2104 = vmatpush1.bf16.msra.mxu1 %v2121_v7  ;;  %v2200_v62 = vld [vmem:[%s2773_s0 + $0x1b4] ss:$8 sps:$4 sm:$0xff]   ;;  %v2206_v2 = vld [vmem:[%s2773_s0 + $0x1c4] ss:$8 sps:$4 sm:$0xff]   ;;  %v2208_v3 = vld [vmem:[%s2773_s0 + $0xc0] ss:$8 sps:$4 sm:$0xff]  }
  0x17   :  { %680 = vmatprep.subr.bf16.mxu0 %v2228_v0  ;;  %2089 = vmatprep.subr.bf16.mxu1 %v2228_v0  ;;  %v2209_v4 = vld [vmem:[%s2773_s0 + $0x1c0] ss:$8 sps:$4 sm:$0xff]   ;;  %v2210_v5 = vld [vmem:[%s2773_s0 + $0xd4] ss:$8 sps:$4 sm:$0xff]   ;;  %v2214_v7 = vld [vmem:[%s2773_s0 + $0xd0] ss:$8 sps:$4 sm:$0xff]  }
  0x18   :  { %v2212_v6 = vld [vmem:[%s2773_s0 + $0x1d4] ss:$8 sps:$4 sm:$0xff]   ;;  %v2215_v8 = vld [vmem:[%s2773_s0 + $0x1d0] ss:$8 sps:$4 sm:$0xff]  }
  0x1a   :  { %681 = vmatpush1.bf16.msra.mxu0 %v2122_v9  ;;  %2105 = vmatpush1.bf16.msra.mxu1 %v2122_v9  ;;  %v2216_v9 = vld [vmem:[%s2773_s0 + $0xe4] ss:$8 sps:$4 sm:$0xff]  }
  0x1b   :  { %682 = vmatprep.subr.bf16.mxu0 %v2228_v0  ;;  %2090 = vmatprep.subr.bf16.mxu1 %v2228_v0 }
  0x1e   :  { %683 = vmatpush1.bf16.msra.mxu0 %v2123_v10  ;;  %2106 = vmatpush1.bf16.msra.mxu1 %v2123_v10  ;;  %v2218_v10 = vld [vmem:[%s2773_s0 + $0x1e4] ss:$8 sps:$4 sm:$0xff]  }
  0x1f   :  { %684 = vmatprep.subr.bf16.mxu0 %v2228_v0  ;;  %2091 = vmatprep.subr.bf16.mxu1 %v2228_v0 }
  0x22   :  { %685 = vmatpush1.bf16.msra.mxu0 %v2124_v11  ;;  %2107 = vmatpush1.bf16.msra.mxu1 %v2124_v11  ;;  %v2220_v11 = vld [vmem:[%s2773_s0 + $0xe0] ss:$8 sps:$4 sm:$0xff]  }
  0x23   :  { %686 = vmatprep.subr.bf16.mxu0 %v2228_v0  ;;  %2092 = vmatprep.subr.bf16.mxu1 %v2228_v0 }
  0x26   :  { %687 = vmatpush1.bf16.msra.mxu0 %v2125_v12  ;;  %2108 = vmatpush1.bf16.msra.mxu1 %v2125_v12  ;;  %v2221_v12 = vld [vmem:[%s2773_s0 + $0x1e0] ss:$8 sps:$4 sm:$0xff]  }
  0x27   :  { %688 = vmatprep.subr.bf16.mxu0 %v2228_v0  ;;  %2093 = vmatprep.subr.bf16.mxu1 %v2228_v0 }
  0x2a   :  { %689 = vmatpush1.bf16.msra.mxu0 %v2126_v13  ;;  %2109 = vmatpush1.bf16.msra.mxu1 %v2126_v13  ;;  %v2222_v13 = vld [vmem:[%s2773_s0 + $0xf4] ss:$8 sps:$4 sm:$0xff]  }
  0x2b   :  { %690 = vmatprep.subr.bf16.mxu0 %v2228_v0  ;;  %2094 = vmatprep.subr.bf16.mxu1 %v2228_v0 }
  0x2e   :  { %691 = vmatpush1.bf16.msra.mxu0 %v2127_v14  ;;  %2110 = vmatpush1.bf16.msra.mxu1 %v2127_v14  ;;  %v2224_v14 = vld [vmem:[%s2773_s0 + $0x1f4] ss:$8 sps:$4 sm:$0xff]  }
  0x2f   :  { %692 = vmatprep.subr.bf16.mxu0 %v2228_v0  ;;  %2095 = vmatprep.subr.bf16.mxu1 %v2228_v0 }
  0x32   :  { %693 = vmatpush1.bf16.msra.mxu0 %v2128_v15  ;;  %2111 = vmatpush1.bf16.msra.mxu1 %v2128_v15  ;;  %v2226_v15 = vld [vmem:[%s2773_s0 + $0xf0] ss:$8 sps:$4 sm:$0xff]  }
  0x33   :  { %694 = vmatprep.subr.bf16.mxu0 %v2228_v0  ;;  %2096 = vmatprep.subr.bf16.mxu1 %v2228_v0 }
  0x36   :  { %695 = vmatpush1.bf16.msra.mxu0 %v2129_v16  ;;  %2112 = vmatpush1.bf16.msra.mxu1 %v2129_v16  ;;  %v2227_v16 = vld [vmem:[%s2773_s0 + $0x1f0] ss:$8 sps:$4 sm:$0xff]  }
  0x37   :  { %696 = vmatprep.subr.bf16.mxu0 %v2228_v0  ;;  %2097 = vmatprep.subr.bf16.mxu1 %v2228_v0 }
  0x3a   :  { %697 = vmatpush1.bf16.msra.mxu0 %v2130_v17  ;;  %2113 = vmatpush1.bf16.msra.mxu1 %v2130_v17  ;;  %v2539_v17 = vld [vmem:[%s2774_s4] ss:$0 sm:$0xff] }
  0x3b   :  { %698 = vmatprep.subr.bf16.mxu0 %v2228_v0  ;;  %2098 = vmatprep.subr.bf16.mxu1 %v2228_v0  ;;  %v2203_v0 = vld [vmem:[%s2773_s0 + $0x1b0] ss:$8 sps:$4 sm:$0xff]  }
  0x3e   :  { %699 = vmatpush1.bf16.msra.mxu0 %v2131_v18  ;;  %2114 = vmatpush1.bf16.msra.mxu1 %v2131_v18 }
  0x41   :  { %701 = vmatmul.mubr.bf16.vlgmr.msra.gmra.mrb[0].mxu0 %v2132_v19  ;;  %829 = vmatmul.mubr.bf16.vlgmr.msra.gmra.mrb[0].mxu1 %v2135_v20  ;;  %v2544_v19 = vld [vmem:[%s2775_s5] ss:$0 sm:$0xff] }
  0x42   :  { %708 = vmatprep.mubr.bf16.mxu0 %v2138_v21  ;;  %836 = vmatprep.mubr.bf16.mxu1 %v2140_v22 }
  0x49   :  { %709 = vmatmul.mubr.bf16.gmra.mrb[4].mxu0 %v2142_v23  ;;  %837 = vmatmul.mubr.bf16.gmra.mrb[4].mxu1 %v2143_v24 }
  0x4a   :  { %716 = vmatprep.mubr.bf16.mxu0 %v2144_v25  ;;  %844 = vmatprep.mubr.bf16.mxu1 %v2146_v26 }
  0x51   :  { %717 = vmatmul.mubr.bf16.gmra.mrb[8].mxu0 %v2148_v27  ;;  %845 = vmatmul.mubr.bf16.gmra.mrb[8].mxu1 %v2149_v28 }
  0x52   :  { %724 = vmatprep.mubr.bf16.mxu0 %v2150_v29  ;;  %852 = vmatprep.mubr.bf16.mxu1 %v2152_v30 }
  0x59   :  { %725 = vmatmul.mubr.bf16.gmra.mrb[12].mxu0 %v2154_v31  ;;  %853 = vmatmul.mubr.bf16.gmra.mrb[12].mxu1 %v2155_v32 }
  0x5a   :  { %732 = vmatprep.mubr.bf16.mxu0 %v2156_v33  ;;  %860 = vmatprep.mubr.bf16.mxu1 %v2158_v34 }
  0x61   :  { %733 = vmatmul.mubr.bf16.gmra.mrb[16].mxu0 %v2160_v35  ;;  %861 = vmatmul.mubr.bf16.gmra.mrb[16].mxu1 %v2161_v36 }
  0x62   :  { %740 = vmatprep.mubr.bf16.mxu0 %v2162_v37  ;;  %868 = vmatprep.mubr.bf16.mxu1 %v2164_v38 }
  0x69   :  { %741 = vmatmul.mubr.bf16.gmra.mrb[20].mxu0 %v2166_v39  ;;  %869 = vmatmul.mubr.bf16.gmra.mrb[20].mxu1 %v2167_v40 }
  0x6a   :  { %748 = vmatprep.mubr.bf16.mxu0 %v2168_v41  ;;  %876 = vmatprep.mubr.bf16.mxu1 %v2170_v42 }
  0x71   :  { %749 = vmatmul.mubr.bf16.gmra.mrb[24].mxu0 %v2172_v43  ;;  %877 = vmatmul.mubr.bf16.gmra.mrb[24].mxu1 %v2173_v44 }
  0x72   :  { %756 = vmatprep.mubr.bf16.mxu0 %v2174_v45  ;;  %884 = vmatprep.mubr.bf16.mxu1 %v2176_v46 }
  0x79   :  { %757 = vmatmul.mubr.bf16.gmra.mrb[28].mxu0 %v2178_v47  ;;  %885 = vmatmul.mubr.bf16.gmra.mrb[28].mxu1 %v2179_v48 }
  0x7a   :  { %764 = vmatprep.mubr.bf16.mxu0 %v2180_v49  ;;  %892 = vmatprep.mubr.bf16.mxu1 %v2182_v50 }
  0x81   :  { %765 = vmatmul.mubr.bf16.gmra.mrb[32].mxu0 %v2184_v51  ;;  %893 = vmatmul.mubr.bf16.gmra.mrb[32].mxu1 %v2185_v52 }
  0x82   :  { %772 = vmatprep.mubr.bf16.mxu0 %v2186_v53  ;;  %900 = vmatprep.mubr.bf16.mxu1 %v2188_v54 }
  0x89   :  { %773 = vmatmul.mubr.bf16.gmra.mrb[36].mxu0 %v2190_v55  ;;  %901 = vmatmul.mubr.bf16.gmra.mrb[36].mxu1 %v2191_v56 }
  0x8a   :  { %780 = vmatprep.mubr.bf16.mxu0 %v2192_v57  ;;  %908 = vmatprep.mubr.bf16.mxu1 %v2194_v58 }
  0x91   :  { %781 = vmatmul.mubr.bf16.gmra.mrb[40].mxu0 %v2196_v59  ;;  %909 = vmatmul.mubr.bf16.gmra.mrb[40].mxu1 %v2197_v60 }
  0x92   :  { %788 = vmatprep.mubr.bf16.mxu0 %v2198_v61  ;;  %916 = vmatprep.mubr.bf16.mxu1 %v2200_v62 }
  0x99   :  { %789 = vmatmul.mubr.bf16.gmra.mrb[44].mxu0 %v2202_v63  ;;  %917 = vmatmul.mubr.bf16.gmra.mrb[44].mxu1 %v2203_v0 }
  0x9a   :  { %796 = vmatprep.mubr.bf16.mxu0 %v2204_v1  ;;  %924 = vmatprep.mubr.bf16.mxu1 %v2206_v2 }
  0xa1   :  { %797 = vmatmul.mubr.bf16.gmra.mrb[48].mxu0 %v2208_v3  ;;  %925 = vmatmul.mubr.bf16.gmra.mrb[48].mxu1 %v2209_v4 }
  0xa2   :  { %804 = vmatprep.mubr.bf16.mxu0 %v2210_v5  ;;  %932 = vmatprep.mubr.bf16.mxu1 %v2212_v6 }
  0xa9   :  { %805 = vmatmul.mubr.bf16.gmra.mrb[52].mxu0 %v2214_v7  ;;  %933 = vmatmul.mubr.bf16.gmra.mrb[52].mxu1 %v2215_v8 }
  0xaa   :  { %812 = vmatprep.mubr.bf16.mxu0 %v2216_v9  ;;  %940 = vmatprep.mubr.bf16.mxu1 %v2218_v10 }
  0xb1   :  { %813 = vmatmul.mubr.bf16.gmra.mrb[56].mxu0 %v2220_v11  ;;  %941 = vmatmul.mubr.bf16.gmra.mrb[56].mxu1 %v2221_v12 }
  0xb2   :  { %820 = vmatprep.mubr.bf16.mxu0 %v2222_v13  ;;  %948 = vmatprep.mubr.bf16.mxu1 %v2224_v14 }
  0xb9   :  { %821 = vmatmul.mubr.bf16.gmra.mrb[60].mxu0 %v2226_v15  ;;  %949 = vmatmul.mubr.bf16.gmra.mrb[60].mxu1 %v2227_v16 }
 0x114   :  { %v702_v18 = vpop.f32.mrb[0].mxu0  ;;  %v830_v20 = vpop.f32.mrb[0].mxu1 }
 0x115   :  { %v1159_v21 = vmul.f32 %v2539_v17, %v702_v18  ;;  %v1191_v22 = vmul.f32 %v2539_v17, %v830_v20  ;;  %v704_v23 = vpop.f32.mrb[1].mxu0  ;;  %v832_v24 = vpop.f32.mrb[1].mxu1 }
 0x116   :  { %v705_v25 = vpop.f32.mrb[2].mxu0  ;;  %v833_v26 = vpop.f32.mrb[2].mxu1 }
 0x117   :  { %v1230_v27 = vadd.f32 %v2544_v19, %v1159_v21  ;;  %v1262_v28 = vadd.f32 %v2544_v19, %v1191_v22  ;;  %v1160_v29 = vmul.f32 %v2539_v17, %v705_v25  ;;  %v1192_v30 = vmul.f32 %v2539_v17, %v833_v26  ;;  %v707_v31 = vpop.f32.mrb[3].mxu0  ;;  %v835_v32 = vpop.f32.mrb[3].mxu1 }
 0x119   :  { %v1231_v33 = vadd.f32 %v2544_v19, %v1160_v29  ;;  %v1263_v34 = vadd.f32 %v2544_v19, %v1192_v30  ;;  %v1294_v35 = vmax.f32 %v1230_v27, 0.0  ;;  %v1326_v36 = vmax.f32 %v1262_v28, 0.0 }
 0x11b   :  { %v1295_v37 = vmax.f32 %v1231_v33, 0.0  ;;  %v1327_v38 = vmax.f32 %v1263_v34, 0.0 }
 0x11c   :  { %v710_v39 = vpop.f32.mrb[4].mxu0  ;;  %v838_v40 = vpop.f32.mrb[4].mxu1 }
 0x11d   :  { %v1895_v41 = vpack.c.bf16 %v1295_v37, %v1294_v35  ;;  %v1975_v42 = vpack.c.bf16 %v1327_v38, %v1326_v36  ;;  %v1161_v43 = vmul.f32 %v2539_v17, %v710_v39  ;;  %v1193_v44 = vmul.f32 %v2539_v17, %v838_v40  ;;  %v712_v45 = vpop.f32.mrb[5].mxu0  ;;  %v840_v46 = vpop.f32.mrb[5].mxu1 }
 0x11e   :  { %v713_v47 = vpop.f32.mrb[6].mxu0  ;;  %v841_v48 = vpop.f32.mrb[6].mxu1 }
 0x11f   :  { %1896 = vst [vmem:[%s2776_s6] sm:$0xff] %v1895_v41   ;;  %2067 = vst [vmem:[%s2776_s6 + $0x80] sm:$0xff] %v1975_v42   ;;  %v1232_v49 = vadd.f32 %v2544_v19, %v1161_v43  ;;  %v1264_v50 = vadd.f32 %v2544_v19, %v1193_v44  ;;  %v1162_v51 = vmul.f32 %v2539_v17, %v713_v47  ;;  %v715_v53 = vpop.f32.mrb[7].mxu0  ;;  %v843_v54 = vpop.f32.mrb[7].mxu1 }
 0x120   :  { %v1194_v52 = vmul.f32 %v2539_v17, %v841_v48 }
 0x121   :  { %v1233_v55 = vadd.f32 %v2544_v19, %v1162_v51  ;;  %v1296_v57 = vmax.f32 %v1232_v49, 0.0  ;;  %v1328_v58 = vmax.f32 %v1264_v50, 0.0 }
 0x122   :  { %v1265_v56 = vadd.f32 %v2544_v19, %v1194_v52 }
 0x123   :  { %v1297_v59 = vmax.f32 %v1233_v55, 0.0 }
 0x124   :  { %v1329_v60 = vmax.f32 %v1265_v56, 0.0  ;;  %v718_v61 = vpop.f32.mrb[8].mxu0  ;;  %v846_v62 = vpop.f32.mrb[8].mxu1 }
 0x125   :  { %v1900_v63 = vpack.c.bf16 %v1297_v59, %v1296_v57  ;;  %v1163_v1 = vmul.f32 %v2539_v17, %v718_v61  ;;  %v1195_v2 = vmul.f32 %v2539_v17, %v846_v62  ;;  %v720_v3 = vpop.f32.mrb[9].mxu0  ;;  %v848_v4 = vpop.f32.mrb[9].mxu1 }
 0x126   :  { %v1980_v0 = vpack.c.bf16 %v1329_v60, %v1328_v58  ;;  %v721_v5 = vpop.f32.mrb[10].mxu0  ;;  %v849_v6 = vpop.f32.mrb[10].mxu1 }
 0x127   :  { %2052 = vst [vmem:[%s2776_s6 + $0x8] sm:$0xff] %v1900_v63   ;;  %v1234_v7 = vadd.f32 %v2544_v19, %v1163_v1  ;;  %v1266_v8 = vadd.f32 %v2544_v19, %v1195_v2  ;;  %v1164_v9 = vmul.f32 %v2539_v17, %v721_v5  ;;  %v1196_v10 = vmul.f32 %v2539_v17, %v849_v6  ;;  %v723_v11 = vpop.f32.mrb[11].mxu0  ;;  %v851_v12 = vpop.f32.mrb[11].mxu1 }
 0x128   :  { %2068 = vst [vmem:[%s2776_s6 + $0x88] sm:$0xff] %v1980_v0  }
 0x129   :  { %v1235_v13 = vadd.f32 %v2544_v19, %v1164_v9  ;;  %v1267_v14 = vadd.f32 %v2544_v19, %v1196_v10  ;;  %v1298_v15 = vmax.f32 %v1234_v7, 0.0  ;;  %v1330_v16 = vmax.f32 %v1266_v8, 0.0 }
 0x12b   :  { %v1299_v18 = vmax.f32 %v1235_v13, 0.0  ;;  %v1331_v20 = vmax.f32 %v1267_v14, 0.0 }
 0x12c   :  { %v726_v21 = vpop.f32.mrb[12].mxu0  ;;  %v854_v22 = vpop.f32.mrb[12].mxu1 }
 0x12d   :  { %v1905_v23 = vpack.c.bf16 %v1299_v18, %v1298_v15  ;;  %v1985_v24 = vpack.c.bf16 %v1331_v20, %v1330_v16  ;;  %v1165_v25 = vmul.f32 %v2539_v17, %v726_v21  ;;  %v1197_v26 = vmul.f32 %v2539_v17, %v854_v22  ;;  %v728_v27 = vpop.f32.mrb[13].mxu0  ;;  %v856_v28 = vpop.f32.mrb[13].mxu1 }
 0x12e   :  { %v729_v29 = vpop.f32.mrb[14].mxu0  ;;  %v857_v30 = vpop.f32.mrb[14].mxu1 }
 0x12f   :  { %2053 = vst [vmem:[%s2776_s6 + $0x10] sm:$0xff] %v1905_v23   ;;  %2069 = vst [vmem:[%s2776_s6 + $0x90] sm:$0xff] %v1985_v24   ;;  %v1236_v31 = vadd.f32 %v2544_v19, %v1165_v25  ;;  %v1268_v32 = vadd.f32 %v2544_v19, %v1197_v26  ;;  %v1166_v33 = vmul.f32 %v2539_v17, %v729_v29  ;;  %v731_v35 = vpop.f32.mrb[15].mxu0  ;;  %v859_v36 = vpop.f32.mrb[15].mxu1 }
 0x130   :  { %v1198_v34 = vmul.f32 %v2539_v17, %v857_v30 }
 0x131   :  { %v1237_v37 = vadd.f32 %v2544_v19, %v1166_v33  ;;  %v1300_v39 = vmax.f32 %v1236_v31, 0.0  ;;  %v1332_v40 = vmax.f32 %v1268_v32, 0.0 }
 0x132   :  { %v1269_v38 = vadd.f32 %v2544_v19, %v1198_v34 }
 0x133   :  { %v1301_v41 = vmax.f32 %v1237_v37, 0.0 }
 0x134   :  { %v1333_v42 = vmax.f32 %v1269_v38, 0.0  ;;  %v734_v43 = vpop.f32.mrb[16].mxu0  ;;  %v862_v44 = vpop.f32.mrb[16].mxu1 }
 0x135   :  { %v1910_v45 = vpack.c.bf16 %v1301_v41, %v1300_v39  ;;  %v1167_v47 = vmul.f32 %v2539_v17, %v734_v43  ;;  %v1199_v48 = vmul.f32 %v2539_v17, %v862_v44  ;;  %v736_v49 = vpop.f32.mrb[17].mxu0  ;;  %v864_v50 = vpop.f32.mrb[17].mxu1 }
 0x136   :  { %v1990_v46 = vpack.c.bf16 %v1333_v42, %v1332_v40  ;;  %v737_v51 = vpop.f32.mrb[18].mxu0  ;;  %v865_v52 = vpop.f32.mrb[18].mxu1 }
 0x137   :  { %2054 = vst [vmem:[%s2776_s6 + $0x18] sm:$0xff] %v1910_v45   ;;  %v1238_v53 = vadd.f32 %v2544_v19, %v1167_v47  ;;  %v1270_v54 = vadd.f32 %v2544_v19, %v1199_v48  ;;  %v1168_v55 = vmul.f32 %v2539_v17, %v737_v51  ;;  %v1200_v56 = vmul.f32 %v2539_v17, %v865_v52  ;;  %v739_v57 = vpop.f32.mrb[19].mxu0  ;;  %v867_v58 = vpop.f32.mrb[19].mxu1 }
 0x138   :  { %2070 = vst [vmem:[%s2776_s6 + $0x98] sm:$0xff] %v1990_v46  }
 0x139   :  { %v1239_v59 = vadd.f32 %v2544_v19, %v1168_v55  ;;  %v1271_v60 = vadd.f32 %v2544_v19, %v1200_v56  ;;  %v1302_v61 = vmax.f32 %v1238_v53, 0.0  ;;  %v1334_v62 = vmax.f32 %v1270_v54, 0.0 }
 0x13b   :  { %v1303_v63 = vmax.f32 %v1239_v59, 0.0  ;;  %v1335_v0 = vmax.f32 %v1271_v60, 0.0 }
 0x13c   :  { %v742_v1 = vpop.f32.mrb[20].mxu0  ;;  %v870_v2 = vpop.f32.mrb[20].mxu1 }
 0x13d   :  { %v1915_v3 = vpack.c.bf16 %v1303_v63, %v1302_v61  ;;  %v1995_v4 = vpack.c.bf16 %v1335_v0, %v1334_v62  ;;  %v1169_v5 = vmul.f32 %v2539_v17, %v742_v1  ;;  %v1201_v6 = vmul.f32 %v2539_v17, %v870_v2  ;;  %v744_v7 = vpop.f32.mrb[21].mxu0  ;;  %v872_v8 = vpop.f32.mrb[21].mxu1 }
 0x13e   :  { %v745_v9 = vpop.f32.mrb[22].mxu0  ;;  %v873_v10 = vpop.f32.mrb[22].mxu1 }
 0x13f   :  { %2055 = vst [vmem:[%s2776_s6 + $0x20] sm:$0xff] %v1915_v3   ;;  %2071 = vst [vmem:[%s2776_s6 + $0xa0] sm:$0xff] %v1995_v4   ;;  %v1240_v11 = vadd.f32 %v2544_v19, %v1169_v5  ;;  %v1272_v12 = vadd.f32 %v2544_v19, %v1201_v6  ;;  %v1170_v13 = vmul.f32 %v2539_v17, %v745_v9  ;;  %v747_v15 = vpop.f32.mrb[23].mxu0  ;;  %v875_v16 = vpop.f32.mrb[23].mxu1 }
 0x140   :  { %v1202_v14 = vmul.f32 %v2539_v17, %v873_v10 }
 0x141   :  { %v1241_v18 = vadd.f32 %v2544_v19, %v1170_v13  ;;  %v1304_v21 = vmax.f32 %v1240_v11, 0.0  ;;  %v1336_v22 = vmax.f32 %v1272_v12, 0.0 }
 0x142   :  { %v1273_v20 = vadd.f32 %v2544_v19, %v1202_v14 }
 0x143   :  { %v1305_v23 = vmax.f32 %v1241_v18, 0.0 }
 0x144   :  { %v1337_v24 = vmax.f32 %v1273_v20, 0.0  ;;  %v750_v25 = vpop.f32.mrb[24].mxu0  ;;  %v878_v26 = vpop.f32.mrb[24].mxu1 }
 0x145   :  { %v1920_v27 = vpack.c.bf16 %v1305_v23, %v1304_v21  ;;  %v1171_v29 = vmul.f32 %v2539_v17, %v750_v25  ;;  %v1203_v30 = vmul.f32 %v2539_v17, %v878_v26  ;;  %v752_v31 = vpop.f32.mrb[25].mxu0  ;;  %v880_v32 = vpop.f32.mrb[25].mxu1 }
 0x146   :  { %v2000_v28 = vpack.c.bf16 %v1337_v24, %v1336_v22  ;;  %v753_v33 = vpop.f32.mrb[26].mxu0  ;;  %v881_v34 = vpop.f32.mrb[26].mxu1 }
 0x147   :  { %2056 = vst [vmem:[%s2776_s6 + $0x28] sm:$0xff] %v1920_v27   ;;  %v1242_v35 = vadd.f32 %v2544_v19, %v1171_v29  ;;  %v1274_v36 = vadd.f32 %v2544_v19, %v1203_v30  ;;  %v1172_v37 = vmul.f32 %v2539_v17, %v753_v33  ;;  %v1204_v38 = vmul.f32 %v2539_v17, %v881_v34  ;;  %v755_v39 = vpop.f32.mrb[27].mxu0  ;;  %v883_v40 = vpop.f32.mrb[27].mxu1 }
 0x148   :  { %2072 = vst [vmem:[%s2776_s6 + $0xa8] sm:$0xff] %v2000_v28  }
 0x149   :  { %v1243_v41 = vadd.f32 %v2544_v19, %v1172_v37  ;;  %v1275_v42 = vadd.f32 %v2544_v19, %v1204_v38  ;;  %v1306_v43 = vmax.f32 %v1242_v35, 0.0  ;;  %v1338_v44 = vmax.f32 %v1274_v36, 0.0 }
 0x14b   :  { %v1307_v45 = vmax.f32 %v1243_v41, 0.0  ;;  %v1339_v46 = vmax.f32 %v1275_v42, 0.0 }
 0x14c   :  { %v758_v47 = vpop.f32.mrb[28].mxu0  ;;  %v886_v48 = vpop.f32.mrb[28].mxu1 }
 0x14d   :  { %v1925_v49 = vpack.c.bf16 %v1307_v45, %v1306_v43  ;;  %v2005_v50 = vpack.c.bf16 %v1339_v46, %v1338_v44  ;;  %v1173_v51 = vmul.f32 %v2539_v17, %v758_v47  ;;  %v1205_v52 = vmul.f32 %v2539_v17, %v886_v48  ;;  %v760_v53 = vpop.f32.mrb[29].mxu0  ;;  %v888_v54 = vpop.f32.mrb[29].mxu1 }
 0x14e   :  { %v761_v55 = vpop.f32.mrb[30].mxu0  ;;  %v889_v56 = vpop.f32.mrb[30].mxu1 }
 0x14f   :  { %2057 = vst [vmem:[%s2776_s6 + $0x30] sm:$0xff] %v1925_v49   ;;  %2073 = vst [vmem:[%s2776_s6 + $0xb0] sm:$0xff] %v2005_v50   ;;  %v1244_v57 = vadd.f32 %v2544_v19, %v1173_v51  ;;  %v1276_v58 = vadd.f32 %v2544_v19, %v1205_v52  ;;  %v1174_v59 = vmul.f32 %v2539_v17, %v761_v55  ;;  %v763_v61 = vpop.f32.mrb[31].mxu0  ;;  %v891_v62 = vpop.f32.mrb[31].mxu1 }
 0x150   :  { %v1206_v60 = vmul.f32 %v2539_v17, %v889_v56 }
 0x151   :  { %v1245_v63 = vadd.f32 %v2544_v19, %v1174_v59  ;;  %v1308_v1 = vmax.f32 %v1244_v57, 0.0  ;;  %v1340_v2 = vmax.f32 %v1276_v58, 0.0 }
 0x152   :  { %v1277_v0 = vadd.f32 %v2544_v19, %v1206_v60 }
 0x153   :  { %v1309_v3 = vmax.f32 %v1245_v63, 0.0 }
 0x154   :  { %v1341_v4 = vmax.f32 %v1277_v0, 0.0  ;;  %v766_v5 = vpop.f32.mrb[32].mxu0  ;;  %v894_v6 = vpop.f32.mrb[32].mxu1 }
 0x155   :  { %v1930_v7 = vpack.c.bf16 %v1309_v3, %v1308_v1  ;;  %v1175_v9 = vmul.f32 %v2539_v17, %v766_v5  ;;  %v1207_v10 = vmul.f32 %v2539_v17, %v894_v6  ;;  %v768_v11 = vpop.f32.mrb[33].mxu0  ;;  %v896_v12 = vpop.f32.mrb[33].mxu1 }
 0x156   :  { %v2010_v8 = vpack.c.bf16 %v1341_v4, %v1340_v2  ;;  %v769_v13 = vpop.f32.mrb[34].mxu0  ;;  %v897_v14 = vpop.f32.mrb[34].mxu1 }
 0x157   :  { %2058 = vst [vmem:[%s2776_s6 + $0x38] sm:$0xff] %v1930_v7   ;;  %v1246_v15 = vadd.f32 %v2544_v19, %v1175_v9  ;;  %v1278_v16 = vadd.f32 %v2544_v19, %v1207_v10  ;;  %v1176_v18 = vmul.f32 %v2539_v17, %v769_v13  ;;  %v1208_v20 = vmul.f32 %v2539_v17, %v897_v14  ;;  %v771_v21 = vpop.f32.mrb[35].mxu0  ;;  %v899_v22 = vpop.f32.mrb[35].mxu1 }
 0x158   :  { %2074 = vst [vmem:[%s2776_s6 + $0xb8] sm:$0xff] %v2010_v8  }
 0x159   :  { %v1247_v23 = vadd.f32 %v2544_v19, %v1176_v18  ;;  %v1279_v24 = vadd.f32 %v2544_v19, %v1208_v20  ;;  %v1310_v25 = vmax.f32 %v1246_v15, 0.0  ;;  %v1342_v26 = vmax.f32 %v1278_v16, 0.0 }
 0x15b   :  { %v1311_v27 = vmax.f32 %v1247_v23, 0.0  ;;  %v1343_v28 = vmax.f32 %v1279_v24, 0.0 }
 0x15c   :  { %v774_v29 = vpop.f32.mrb[36].mxu0  ;;  %v902_v30 = vpop.f32.mrb[36].mxu1 }
 0x15d   :  { %v1935_v31 = vpack.c.bf16 %v1311_v27, %v1310_v25  ;;  %v2015_v32 = vpack.c.bf16 %v1343_v28, %v1342_v26  ;;  %v1177_v33 = vmul.f32 %v2539_v17, %v774_v29  ;;  %v1209_v34 = vmul.f32 %v2539_v17, %v902_v30  ;;  %v776_v35 = vpop.f32.mrb[37].mxu0  ;;  %v904_v36 = vpop.f32.mrb[37].mxu1 }
 0x15e   :  { %v777_v37 = vpop.f32.mrb[38].mxu0  ;;  %v905_v38 = vpop.f32.mrb[38].mxu1 }
 0x15f   :  { %2059 = vst [vmem:[%s2776_s6 + $0x40] sm:$0xff] %v1935_v31   ;;  %2075 = vst [vmem:[%s2776_s6 + $0xc0] sm:$0xff] %v2015_v32   ;;  %v1248_v39 = vadd.f32 %v2544_v19, %v1177_v33  ;;  %v1280_v40 = vadd.f32 %v2544_v19, %v1209_v34  ;;  %v1178_v41 = vmul.f32 %v2539_v17, %v777_v37  ;;  %v779_v43 = vpop.f32.mrb[39].mxu0  ;;  %v907_v44 = vpop.f32.mrb[39].mxu1 }
 0x160   :  { %v1210_v42 = vmul.f32 %v2539_v17, %v905_v38 }
 0x161   :  { %v1249_v45 = vadd.f32 %v2544_v19, %v1178_v41  ;;  %v1312_v47 = vmax.f32 %v1248_v39, 0.0  ;;  %v1344_v48 = vmax.f32 %v1280_v40, 0.0 }
 0x162   :  { %v1281_v46 = vadd.f32 %v2544_v19, %v1210_v42 }
 0x163   :  { %v1313_v49 = vmax.f32 %v1249_v45, 0.0 }
 0x164   :  { %v1345_v50 = vmax.f32 %v1281_v46, 0.0  ;;  %v782_v51 = vpop.f32.mrb[40].mxu0  ;;  %v910_v52 = vpop.f32.mrb[40].mxu1 }
 0x165   :  { %v1940_v53 = vpack.c.bf16 %v1313_v49, %v1312_v47  ;;  %v1179_v55 = vmul.f32 %v2539_v17, %v782_v51  ;;  %v1211_v56 = vmul.f32 %v2539_v17, %v910_v52  ;;  %v784_v57 = vpop.f32.mrb[41].mxu0  ;;  %v912_v58 = vpop.f32.mrb[41].mxu1 }
 0x166   :  { %v2020_v54 = vpack.c.bf16 %v1345_v50, %v1344_v48  ;;  %v785_v59 = vpop.f32.mrb[42].mxu0  ;;  %v913_v60 = vpop.f32.mrb[42].mxu1 }
 0x167   :  { %2060 = vst [vmem:[%s2776_s6 + $0x48] sm:$0xff] %v1940_v53   ;;  %v1250_v61 = vadd.f32 %v2544_v19, %v1179_v55  ;;  %v1282_v62 = vadd.f32 %v2544_v19, %v1211_v56  ;;  %v1180_v63 = vmul.f32 %v2539_v17, %v785_v59  ;;  %v1212_v0 = vmul.f32 %v2539_v17, %v913_v60  ;;  %v787_v1 = vpop.f32.mrb[43].mxu0  ;;  %v915_v2 = vpop.f32.mrb[43].mxu1 }
 0x168   :  { %2076 = vst [vmem:[%s2776_s6 + $0xc8] sm:$0xff] %v2020_v54  }
 0x169   :  { %v1251_v3 = vadd.f32 %v2544_v19, %v1180_v63  ;;  %v1283_v4 = vadd.f32 %v2544_v19, %v1212_v0  ;;  %v1314_v5 = vmax.f32 %v1250_v61, 0.0  ;;  %v1346_v6 = vmax.f32 %v1282_v62, 0.0 }
 0x16b   :  { %v1315_v7 = vmax.f32 %v1251_v3, 0.0  ;;  %v1347_v8 = vmax.f32 %v1283_v4, 0.0 }
 0x16c   :  { %v790_v9 = vpop.f32.mrb[44].mxu0  ;;  %v918_v10 = vpop.f32.mrb[44].mxu1 }
 0x16d   :  { %v1945_v11 = vpack.c.bf16 %v1315_v7, %v1314_v5  ;;  %v2025_v12 = vpack.c.bf16 %v1347_v8, %v1346_v6  ;;  %v1181_v13 = vmul.f32 %v2539_v17, %v790_v9  ;;  %v1213_v14 = vmul.f32 %v2539_v17, %v918_v10  ;;  %v792_v15 = vpop.f32.mrb[45].mxu0  ;;  %v920_v16 = vpop.f32.mrb[45].mxu1 }
 0x16e   :  { %v793_v18 = vpop.f32.mrb[46].mxu0  ;;  %v921_v20 = vpop.f32.mrb[46].mxu1 }
 0x16f   :  { %2061 = vst [vmem:[%s2776_s6 + $0x50] sm:$0xff] %v1945_v11   ;;  %2077 = vst [vmem:[%s2776_s6 + $0xd0] sm:$0xff] %v2025_v12   ;;  %v1252_v21 = vadd.f32 %v2544_v19, %v1181_v13  ;;  %v1284_v22 = vadd.f32 %v2544_v19, %v1213_v14  ;;  %v1182_v23 = vmul.f32 %v2539_v17, %v793_v18  ;;  %v795_v25 = vpop.f32.mrb[47].mxu0  ;;  %v923_v26 = vpop.f32.mrb[47].mxu1 }
 0x170   :  { %v1214_v24 = vmul.f32 %v2539_v17, %v921_v20 }
 0x171   :  { %v1253_v27 = vadd.f32 %v2544_v19, %v1182_v23  ;;  %v1316_v29 = vmax.f32 %v1252_v21, 0.0  ;;  %v1348_v30 = vmax.f32 %v1284_v22, 0.0 }
 0x172   :  { %v1285_v28 = vadd.f32 %v2544_v19, %v1214_v24 }
 0x173   :  { %v1317_v31 = vmax.f32 %v1253_v27, 0.0 }
 0x174   :  { %v1349_v32 = vmax.f32 %v1285_v28, 0.0  ;;  %v798_v33 = vpop.f32.mrb[48].mxu0  ;;  %v926_v34 = vpop.f32.mrb[48].mxu1 }
 0x175   :  { %v1950_v35 = vpack.c.bf16 %v1317_v31, %v1316_v29  ;;  %v1183_v37 = vmul.f32 %v2539_v17, %v798_v33  ;;  %v1215_v38 = vmul.f32 %v2539_v17, %v926_v34  ;;  %v800_v39 = vpop.f32.mrb[49].mxu0  ;;  %v928_v40 = vpop.f32.mrb[49].mxu1 }
 0x176   :  { %v2030_v36 = vpack.c.bf16 %v1349_v32, %v1348_v30  ;;  %v801_v41 = vpop.f32.mrb[50].mxu0  ;;  %v929_v42 = vpop.f32.mrb[50].mxu1 }
 0x177   :  { %2062 = vst [vmem:[%s2776_s6 + $0x58] sm:$0xff] %v1950_v35   ;;  %v1254_v43 = vadd.f32 %v2544_v19, %v1183_v37  ;;  %v1286_v44 = vadd.f32 %v2544_v19, %v1215_v38  ;;  %v1184_v45 = vmul.f32 %v2539_v17, %v801_v41  ;;  %v1216_v46 = vmul.f32 %v2539_v17, %v929_v42  ;;  %v803_v47 = vpop.f32.mrb[51].mxu0  ;;  %v931_v48 = vpop.f32.mrb[51].mxu1 }
 0x178   :  { %2078 = vst [vmem:[%s2776_s6 + $0xd8] sm:$0xff] %v2030_v36  }
 0x179   :  { %v1255_v49 = vadd.f32 %v2544_v19, %v1184_v45  ;;  %v1287_v50 = vadd.f32 %v2544_v19, %v1216_v46  ;;  %v1318_v51 = vmax.f32 %v1254_v43, 0.0  ;;  %v1350_v52 = vmax.f32 %v1286_v44, 0.0 }
 0x17b   :  { %v1319_v53 = vmax.f32 %v1255_v49, 0.0  ;;  %v1351_v54 = vmax.f32 %v1287_v50, 0.0 }
 0x17c   :  { %v806_v55 = vpop.f32.mrb[52].mxu0  ;;  %v934_v56 = vpop.f32.mrb[52].mxu1 }
 0x17d   :  { %v1955_v57 = vpack.c.bf16 %v1319_v53, %v1318_v51  ;;  %v2035_v58 = vpack.c.bf16 %v1351_v54, %v1350_v52  ;;  %v1185_v59 = vmul.f32 %v2539_v17, %v806_v55  ;;  %v1217_v60 = vmul.f32 %v2539_v17, %v934_v56  ;;  %v808_v61 = vpop.f32.mrb[53].mxu0  ;;  %v936_v62 = vpop.f32.mrb[53].mxu1 }
 0x17e   :  { %v809_v63 = vpop.f32.mrb[54].mxu0  ;;  %v937_v0 = vpop.f32.mrb[54].mxu1 }
 0x17f   :  { %2063 = vst [vmem:[%s2776_s6 + $0x60] sm:$0xff] %v1955_v57   ;;  %2079 = vst [vmem:[%s2776_s6 + $0xe0] sm:$0xff] %v2035_v58   ;;  %v1256_v1 = vadd.f32 %v2544_v19, %v1185_v59  ;;  %v1288_v2 = vadd.f32 %v2544_v19, %v1217_v60  ;;  %v1186_v3 = vmul.f32 %v2539_v17, %v809_v63  ;;  %v811_v5 = vpop.f32.mrb[55].mxu0  ;;  %v939_v6 = vpop.f32.mrb[55].mxu1 }
 0x180   :  { %v1218_v4 = vmul.f32 %v2539_v17, %v937_v0 }
 0x181   :  { %v1257_v7 = vadd.f32 %v2544_v19, %v1186_v3  ;;  %v1320_v9 = vmax.f32 %v1256_v1, 0.0  ;;  %v1352_v10 = vmax.f32 %v1288_v2, 0.0 }
 0x182   :  { %v1289_v8 = vadd.f32 %v2544_v19, %v1218_v4 }
 0x183   :  { %v1321_v11 = vmax.f32 %v1257_v7, 0.0 }
 0x184   :  { %v1353_v12 = vmax.f32 %v1289_v8, 0.0  ;;  %v814_v13 = vpop.f32.mrb[56].mxu0  ;;  %v942_v14 = vpop.f32.mrb[56].mxu1 }
 0x185   :  { %v1960_v15 = vpack.c.bf16 %v1321_v11, %v1320_v9  ;;  %v1187_v18 = vmul.f32 %v2539_v17, %v814_v13  ;;  %v1219_v20 = vmul.f32 %v2539_v17, %v942_v14  ;;  %v816_v21 = vpop.f32.mrb[57].mxu0  ;;  %v944_v22 = vpop.f32.mrb[57].mxu1 }
 0x186   :  { %v2040_v16 = vpack.c.bf16 %v1353_v12, %v1352_v10  ;;  %v817_v23 = vpop.f32.mrb[58].mxu0  ;;  %v945_v24 = vpop.f32.mrb[58].mxu1 }
 0x187   :  { %2064 = vst [vmem:[%s2776_s6 + $0x68] sm:$0xff] %v1960_v15   ;;  %v1258_v25 = vadd.f32 %v2544_v19, %v1187_v18  ;;  %v1290_v26 = vadd.f32 %v2544_v19, %v1219_v20  ;;  %v1188_v27 = vmul.f32 %v2539_v17, %v817_v23  ;;  %v1220_v28 = vmul.f32 %v2539_v17, %v945_v24  ;;  %v819_v29 = vpop.f32.mrb[59].mxu0  ;;  %v947_v30 = vpop.f32.mrb[59].mxu1 }
 0x188   :  { %2080 = vst [vmem:[%s2776_s6 + $0xe8] sm:$0xff] %v2040_v16  }
 0x189   :  { %v1259_v31 = vadd.f32 %v2544_v19, %v1188_v27  ;;  %v1291_v32 = vadd.f32 %v2544_v19, %v1220_v28  ;;  %v1322_v33 = vmax.f32 %v1258_v25, 0.0  ;;  %v1354_v34 = vmax.f32 %v1290_v26, 0.0 }
 0x18b   :  { %v1323_v35 = vmax.f32 %v1259_v31, 0.0  ;;  %v1355_v36 = vmax.f32 %v1291_v32, 0.0 }
 0x18c   :  { %v822_v37 = vpop.f32.mrb[60].mxu0  ;;  %v950_v38 = vpop.f32.mrb[60].mxu1 }
 0x18d   :  { %v1965_v39 = vpack.c.bf16 %v1323_v35, %v1322_v33  ;;  %v2045_v40 = vpack.c.bf16 %v1355_v36, %v1354_v34  ;;  %v1189_v41 = vmul.f32 %v2539_v17, %v822_v37  ;;  %v1221_v42 = vmul.f32 %v2539_v17, %v950_v38  ;;  %v824_v43 = vpop.f32.mrb[61].mxu0  ;;  %v952_v44 = vpop.f32.mrb[61].mxu1 }
 0x18e   :  { %v825_v45 = vpop.f32.mrb[62].mxu0  ;;  %v953_v46 = vpop.f32.mrb[62].mxu1 }
 0x18f   :  { %2065 = vst [vmem:[%s2776_s6 + $0x70] sm:$0xff] %v1965_v39   ;;  %2081 = vst [vmem:[%s2776_s6 + $0xf0] sm:$0xff] %v2045_v40   ;;  %v1260_v47 = vadd.f32 %v2544_v19, %v1189_v41  ;;  %v1292_v48 = vadd.f32 %v2544_v19, %v1221_v42  ;;  %v1190_v49 = vmul.f32 %v2539_v17, %v825_v45  ;;  %v827_v51 = vpop.f32.mrb[63].mxu0  ;;  %v955_v52 = vpop.f32.mrb[63].mxu1 }
 0x190   :  { %v1222_v50 = vmul.f32 %v2539_v17, %v953_v46 }
 0x191   :  { %v1261_v53 = vadd.f32 %v2544_v19, %v1190_v49  ;;  %v1324_v55 = vmax.f32 %v1260_v47, 0.0  ;;  %v1356_v56 = vmax.f32 %v1292_v48, 0.0 }
 0x192   :  { %v1293_v54 = vadd.f32 %v2544_v19, %v1222_v50 }
 0x193   :  { %v1325_v57 = vmax.f32 %v1261_v53, 0.0 }
 0x194   :  { %v1357_v58 = vmax.f32 %v1293_v54, 0.0 }
 0x195   :  { %v1970_v59 = vpack.c.bf16 %v1325_v57, %v1324_v55 }
 0x196   :  { %v2050_v60 = vpack.c.bf16 %v1357_v58, %v1356_v56 }
 0x197   :  { %2066 = vst [vmem:[%s2776_s6 + $0x78] sm:$0xff] %v1970_v59  }
 0x198   :  { %2082 = vst [vmem:[%s2776_s6 + $0xf8] sm:$0xff] %v2050_v60  }

// kernel: densenet_forward.23
= control target key start
LH: loop header
LB: loop body
LE: loop exit
PB: predicated region body
PF: predicated region fallthrough
CT: control target
= control target key end

     0   :  { %s1319_s21 = smov 0   ;;  %s1321_s22 = smov 0   ;;  %s1448_s0 = inlined_call_operand.vmem [shape: bf16[128,640], index: 0, kind: input, shape index: {}]   ;;  %s1449_s1 = inlined_call_operand.vmem [shape: bf16[640,128], index: 1, kind: input, shape index: {}]   ;;  %s1450_s2 = inlined_call_operand.vmem [shape: f32[1,640], index: 2, kind: input, shape index: {}]   ;;  %s1451_s3 = inlined_call_operand.vmem [shape: f32[1,640], index: 3, kind: input, shape index: {}]   ;;  %s1452_s4 = inlined_call_operand.vmem [shape: f32[1,128], index: 4, kind: input, shape index: {}]   ;;  %s1453_s5 = inlined_call_operand.vmem [shape: f32[1,128], index: 5, kind: input, shape index: {}]   ;;  %s1454_s6 = inlined_call_operand.vmem [shape: bf16[128,128], index: 6, kind: output, shape index: {}]  }
   0x1   :  { %s1323_s23 = smov 0   ;;  %s1325_s24 = smov 0  }
   0x2   :  { %s1327_s2 = smov 0  }
   0x3 LB: > { %s28_s3 = sadd.s32 1, %s1277_s24  ;;  %p51_p1 = scmp.ne.s32.totalorder %s1269_s22, %s1265_s21  ;;  %s1281_s2 = sphi %s1327_s2, %s16_s2   ;;  %s1277_s24 = sphi %s1325_s24, %s1458_s24   ;;  %s1273_s23 = sphi %s1323_s23, %s1457_s23   ;;  %s1269_s22 = sphi %s1321_s22, %s1456_s22   ;;  %s1265_s21 = sphi %s1319_s21, %s1455_s21  }
   0x4   : > { %p29_p0 = scmp.ge.s32.totalorder %s28_s3, 5  ;;  %p52_p2 = scmp.eq.s32.totalorder %s1281_s2, 0 }
   0x5   : > { %s44_s5 = sadd.s32 1, %s1269_s22  ;;  %p1014_p5 = scmp.ge.s32.totalorder %s1281_s2, 5 }
   0x6   : > { %s1460_s3 = smov (%p29_p0, %s28_s3), 0  ;;  %p53_p3 = por %p52_p2, %p51_p1 }
   0x7   : > { %s40_s4 = ssub.s32 %s1277_s24, %s1460_s3  ;;  %249 = sbr.rel (%p1014_p5) target bundleno = 28 (0x1c), region = 24 }
   0x8   : > { %p42_p4 = scmp.eq.s32.totalorder %s40_s4, 0 }
   0xa   : > { %s1354_s25 = scalar_select %p42_p4, %s1269_s22, %s44_s5  }
   0xe   : > { %252 = sbr.rel (!%p53_p3) target bundleno = 28 (0x1c), region = 28  ;;  %s254_s26 = sand.u32 (%p53_p3), 1, %s1269_s22  }
   0xf   : > { %s1016_s27 = sshll.u32 (%p53_p3), %s1277_s24, 2  ;;  %s1015_s28 = sshll.u32 (%p53_p3), %s254_s26, 6 }
  0x10   : > { %s1362_s7 = scalar_lea.vmem (%p53_p3), %s1448_s0, %s1016_s27  ;;  %s256_s8 = scalar_lea.vmem (%p53_p3), [#allocation3], %s1015_s28 }
  0x11   : > { %v277_v0 = vld [vmem:[%s1362_s7] sm:$0xf] (%p53_p3)  ;;  %v279_v1 = vld [vmem:[%s1362_s7 + $0x14] sm:$0xf] (%p53_p3)  ;;  %v281_v2 = vld [vmem:[%s1362_s7 + $0x28] sm:$0xf] (%p53_p3) }
  0x12   : > { %278 = vst [vmem:[%s256_s8] sm:$0xf] (%p53_p3), %v277_v0  ;;  %280 = vst [vmem:[%s256_s8 + $0x4] sm:$0xf] (%p53_p3), %v279_v1  ;;  %v283_v3 = vld [vmem:[%s1362_s7 + $0x3c] sm:$0xf] (%p53_p3) }
  0x13   : > { %v285_v4 = vld [vmem:[%s1362_s7 + $0x50] sm:$0xf] (%p53_p3)  ;;  %282 = vst [vmem:[%s256_s8 + $0x8] sm:$0xf] (%p53_p3), %v281_v2  ;;  %284 = vst [vmem:[%s256_s8 + $0xc] sm:$0xf] (%p53_p3), %v283_v3 }
  0x14   : > { %286 = vst [vmem:[%s256_s8 + $0x10] sm:$0xf] (%p53_p3), %v285_v4  ;;  %v287_v5 = vld [vmem:[%s1362_s7 + $0x64] sm:$0xf] (%p53_p3)  ;;  %v289_v6 = vld [vmem:[%s1362_s7 + $0x78] sm:$0xf] (%p53_p3) }
  0x15   : > { %v291_v7 = vld [vmem:[%s1362_s7 + $0x8c] sm:$0xf]  ;;  %288 = vst [vmem:[%s256_s8 + $0x14] sm:$0xf] %v287_v5  ;;  %290 = vst [vmem:[%s256_s8 + $0x18] sm:$0xf] %v289_v6 }
  0x16   : > { %292 = vst [vmem:[%s256_s8 + $0x1c] sm:$0xf] %v291_v7  ;;  %v293_v8 = vld [vmem:[%s1362_s7 + $0xa0] sm:$0xf]  ;;  %v295_v9 = vld [vmem:[%s1362_s7 + $0xb4] sm:$0xf] }
  0x17   : > { %v297_v10 = vld [vmem:[%s1362_s7 + $0xc8] sm:$0xf]  ;;  %294 = vst [vmem:[%s256_s8 + $0x20] sm:$0xf] %v293_v8  ;;  %296 = vst [vmem:[%s256_s8 + $0x24] sm:$0xf] %v295_v9 }
  0x18   : > { %298 = vst [vmem:[%s256_s8 + $0x28] sm:$0xf] %v297_v10  ;;  %v299_v11 = vld [vmem:[%s1362_s7 + $0xdc] sm:$0xf]  ;;  %v301_v12 = vld [vmem:[%s1362_s7 + $0xf0] sm:$0xf] }
  0x19   : > { %v303_v13 = vld [vmem:[%s1362_s7 + $0x104] sm:$0xf]  ;;  %300 = vst [vmem:[%s256_s8 + $0x2c] sm:$0xf] %v299_v11  ;;  %302 = vst [vmem:[%s256_s8 + $0x30] sm:$0xf] %v301_v12 }
  0x1a   : > { %304 = vst [vmem:[%s256_s8 + $0x34] sm:$0xf] %v303_v13  ;;  %v305_v14 = vld [vmem:[%s1362_s7 + $0x118] sm:$0xf]  ;;  %v307_v15 = vld [vmem:[%s1362_s7 + $0x12c] sm:$0xf] }
  0x1b   : > { %306 = vst [vmem:[%s256_s8 + $0x38] sm:$0xf] %v305_v14  ;;  %308 = vst [vmem:[%s256_s8 + $0x3c] sm:$0xf] %v307_v15 }
  0x1c PF: > { %p1017_p6 = scmp.ge.s32.totalorder %s1281_s2, 1  ;;  %p386_p7 = scmp.lt.s32.totalorder %s1281_s2, 6 }
  0x1e   : > { %p387_p8 = pnand %p1017_p6, %p386_p7 }
  0x1f   : > { %s393_s9 = sand.u32 (!%p387_p8), 1, %s1265_s21   ;;  %s1019_s10 = sshll.u32 (!%p387_p8), %s1273_s23, 4 }
  0x20   : > { %390 = sbr.rel (%p387_p8) target bundleno = 319 (0x13f), region = 81  ;;  %s1018_s11 = sshll.u32 (!%p387_p8), %s393_s9, 6 }
  0x21   : > { %p447_p9 = scmp.lt.s32.totalorder (!%p387_p8), %s1019_s10, 79  ;;  %s1389_s16 = scalar_lea.vmem (!%p387_p8), [#allocation3], %s1018_s11 }
  0x22   : > { %p1021_p10 = scmp.ne.s32.totalorder (!%p387_p8), %s1273_s23, 0 }
  0x27   : > { %s1462_s10 = smov (!%p447_p9, %s1019_s10), 79  ;;  %480 = sbr.rel (%p1021_p10) target bundleno = 49 (0x31), region = 89 }
  0x28   : > { %s1020_s12 = sshll.u32 %s1462_s10, 2  ;;  %v1283_v16 = vmov (!%p1021_p10), 0.0  }
  0x29   : > { %s1387_s15 = scalar_lea.vmem %s1449_s1, %s1020_s12  ;;  %481 = vst [vmem:[#allocation2] sm:$0xff] (!%p1021_p10), %v1283_v16  ;;  %482 = vst [vmem:[#allocation2 + $0x8] sm:$0xff] (!%p1021_p10), %v1283_v16 }
  0x2a   : > { %483 = vst [vmem:[#allocation2 + $0x10] sm:$0xff] (!%p1021_p10), %v1283_v16  ;;  %484 = vst [vmem:[#allocation2 + $0x18] sm:$0xff] (!%p1021_p10), %v1283_v16 }
  0x2b   : > { %485 = vst [vmem:[#allocation2 + $0x20] sm:$0xff] (!%p1021_p10), %v1283_v16  ;;  %486 = vst [vmem:[#allocation2 + $0x28] sm:$0xff] (!%p1021_p10), %v1283_v16 }
  0x2c   : > { %487 = vst [vmem:[#allocation2 + $0x30] sm:$0xff] (!%p1021_p10), %v1283_v16  ;;  %488 = vst [vmem:[#allocation2 + $0x38] sm:$0xff] (!%p1021_p10), %v1283_v16 }
  0x2d   : > { %489 = vst [vmem:[#allocation2 + $0x40] sm:$0xff] (!%p1021_p10), %v1283_v16  ;;  %490 = vst [vmem:[#allocation2 + $0x48] sm:$0xff] (!%p1021_p10), %v1283_v16 }
  0x2e   : > { %491 = vst [vmem:[#allocation2 + $0x50] sm:$0xff] %v1283_v16  ;;  %492 = vst [vmem:[#allocation2 + $0x58] sm:$0xff] %v1283_v16 }
  0x2f   : > { %493 = vst [vmem:[#allocation2 + $0x60] sm:$0xff] %v1283_v16  ;;  %494 = vst [vmem:[#allocation2 + $0x68] sm:$0xff] %v1283_v16 }
  0x30   : > { %495 = vst [vmem:[#allocation2 + $0x70] sm:$0xff] %v1283_v16  ;;  %496 = vst [vmem:[#allocation2 + $0x78] sm:$0xff] %v1283_v16 }
  0x31 PF: > { %v1227_v17 = vld [vmem:[%s1387_s15] sm:$0xff]   ;;  %v1228_v18 = vld [vmem:[%s1387_s15 + $0x8] sm:$0xff]   ;;  %v1229_v19 = vld [vmem:[%s1387_s15 + $0x10] sm:$0xff]   ;;  %p1038_p11 = scmp.ne.s32.totalorder %s1273_s23, 4 }
  0x32   : > { %1138 = vmatprep.subr.bf16.mxu0 %v1227_v17  ;;  %1170 = vmatprep.subr.bf16.mxu1 %v1227_v17  ;;  %v1230_v20 = vld [vmem:[%s1387_s15 + $0x18] sm:$0xff]   ;;  %v1235_v21 = vld [vmem:[%s1389_s16] sm:$0xff]   ;;  %v1232_v24 = vld [vmem:[%s1387_s15 + $0x28] sm:$0xff]  }
  0x33   : > { %1139 = vmatpush3.bf16.msra.mxu0 %v1227_v17  ;;  %1178 = vmatpush3.bf16.msra.mxu1 %v1227_v17  ;;  %v1236_v22 = vld [vmem:[%s1389_s16 + $0x20] sm:$0xff]   ;;  %v1233_v25 = vld [vmem:[%s1387_s15 + $0x30] sm:$0xff]   ;;  %v1234_v26 = vld [vmem:[%s1387_s15 + $0x38] sm:$0xff]  }
  0x34   : > { %1140 = vmatprep.subr.bf16.mxu0 %v1228_v18  ;;  %1171 = vmatprep.subr.bf16.mxu1 %v1228_v18  ;;  %v1231_v23 = vld [vmem:[%s1387_s15 + $0x20] sm:$0xff]   ;;  %v1237_v27 = vld [vmem:[%s1389_s16 + $0x8] sm:$0xff]   ;;  %v1239_v29 = vld [vmem:[%s1389_s16 + $0x10] sm:$0xff]  }
  0x35   : > { %1154 = vmatprep.mubr.bf16.mxu0 %v1235_v21  ;;  %1162 = vmatprep.mubr.bf16.mxu1 %v1236_v22  ;;  %v1238_v28 = vld [vmem:[%s1389_s16 + $0x28] sm:$0xff]   ;;  %v1240_v30 = vld [vmem:[%s1389_s16 + $0x30] sm:$0xff]   ;;  %v1241_v31 = vld [vmem:[%s1389_s16 + $0x18] sm:$0xff]  }
  0x36   : > { %v1242_v32 = vld [vmem:[%s1389_s16 + $0x38] sm:$0xff]   ;;  %v515_v33 = vld [vmem:[#allocation2 + $0x10] sm:$0xff]  ;;  %v513_v35 = vld [vmem:[#allocation2] sm:$0xff] }
  0x37   : > { %1141 = vmatpush3.bf16.msra.mxu0 %v1228_v18  ;;  %1179 = vmatpush3.bf16.msra.mxu1 %v1228_v18  ;;  %v523_v34 = vld [vmem:[#allocation2 + $0x50] sm:$0xff]  ;;  %v521_v36 = vld [vmem:[#allocation2 + $0x40] sm:$0xff]  ;;  %v516_v39 = vld [vmem:[#allocation2 + $0x18] sm:$0xff] }
  0x38   : > { %1142 = vmatprep.subr.bf16.mxu0 %v1229_v19  ;;  %1172 = vmatprep.subr.bf16.mxu1 %v1229_v19  ;;  %v524_v40 = vld [vmem:[#allocation2 + $0x58] sm:$0xff]  ;;  %v514_v45 = vld [vmem:[#allocation2 + $0x8] sm:$0xff]  ;;  %v519_v57 = vld [vmem:[#allocation2 + $0x30] sm:$0xff] }
  0x39   : > { %v522_v46 = vld [vmem:[#allocation2 + $0x48] sm:$0xff]  ;;  %v527_v58 = vld [vmem:[#allocation2 + $0x70] sm:$0xff]  ;;  %v517_v59 = vld [vmem:[#allocation2 + $0x20] sm:$0xff] }
  0x3a   : > { %v525_v60 = vld [vmem:[#allocation2 + $0x60] sm:$0xff]  ;;  %v520_v63 = vld [vmem:[#allocation2 + $0x38] sm:$0xff]  ;;  %v518_v5 = vld [vmem:[#allocation2 + $0x28] sm:$0xff] }
  0x3b   : > { %1143 = vmatpush3.bf16.msra.mxu0 %v1229_v19  ;;  %1180 = vmatpush3.bf16.msra.mxu1 %v1229_v19  ;;  %v528_v0 = vld [vmem:[#allocation2 + $0x78] sm:$0xff]  ;;  %v526_v6 = vld [vmem:[#allocation2 + $0x68] sm:$0xff] }
  0x3c   : > { %1144 = vmatprep.subr.bf16.mxu0 %v1230_v20  ;;  %1173 = vmatprep.subr.bf16.mxu1 %v1230_v20 }
  0x3f   : > { %1145 = vmatpush3.bf16.msra.mxu0 %v1230_v20  ;;  %1181 = vmatpush3.bf16.msra.mxu1 %v1230_v20 }
  0x40   : > { %1146 = vmatprep.subr.bf16.mxu0 %v1231_v23  ;;  %1174 = vmatprep.subr.bf16.mxu1 %v1231_v23 }
  0x43   : > { %1147 = vmatpush3.bf16.msra.mxu0 %v1231_v23  ;;  %1182 = vmatpush3.bf16.msra.mxu1 %v1231_v23 }
  0x44   : > { %1148 = vmatprep.subr.bf16.mxu0 %v1232_v24  ;;  %1175 = vmatprep.subr.bf16.mxu1 %v1232_v24 }
  0x47   : > { %1149 = vmatpush3.bf16.msra.mxu0 %v1232_v24  ;;  %1183 = vmatpush3.bf16.msra.mxu1 %v1232_v24 }
  0x48   : > { %1150 = vmatprep.subr.bf16.mxu0 %v1233_v25  ;;  %1176 = vmatprep.subr.bf16.mxu1 %v1233_v25 }
  0x4b   : > { %1151 = vmatpush3.bf16.msra.mxu0 %v1233_v25  ;;  %1184 = vmatpush3.bf16.msra.mxu1 %v1233_v25 }
  0x4c   : > { %1152 = vmatprep.subr.bf16.mxu0 %v1234_v26  ;;  %1177 = vmatprep.subr.bf16.mxu1 %v1234_v26 }
  0x4f   : > { %1153 = vmatpush3.bf16.msra.mxu0 %v1234_v26  ;;  %1185 = vmatpush3.bf16.msra.mxu1 %v1234_v26 }
  0x52   : > { %1155 = vmatmul.mubr.bf16.vlgmr.msra.gmra.mrb[0].mxu0 %v1237_v27  ;;  %1163 = vmatmul.mubr.bf16.vlgmr.msra.gmra.mrb[0].mxu1 %v1238_v28 }
  0x53   : > { %1158 = vmatprep.mubr.bf16.mxu0 %v1239_v29  ;;  %1166 = vmatprep.mubr.bf16.mxu1 %v1240_v30 }
  0x5a   : > { %1159 = vmatmul.mubr.bf16.gmra.mrb[4].mxu0 %v1241_v31  ;;  %1167 = vmatmul.mubr.bf16.gmra.mrb[4].mxu1 %v1242_v32 }
 0x125   : > { %v1156_v37 = vpop.f32.mrb[0].mxu0  ;;  %v1164_v38 = vpop.f32.mrb[0].mxu1 }
 0x126   : > { %v740_v41 = vadd.f32 %v1156_v37, %v515_v33  ;;  %v748_v42 = vadd.f32 %v1164_v38, %v523_v34  ;;  %v675_v43 = vpop.f32.mrb[1].mxu0  ;;  %v707_v44 = vpop.f32.mrb[1].mxu1 }
 0x127   : > { %v738_v47 = vadd.f32 %v675_v43, %v513_v35  ;;  %v746_v48 = vadd.f32 %v707_v44, %v521_v36  ;;  %v1157_v49 = vpop.f32.mrb[2].mxu0  ;;  %v1165_v50 = vpop.f32.mrb[2].mxu1 }
 0x128   : > { %756 = vst [vmem:[#allocation2 + $0x10] sm:$0xff] %v740_v41  ;;  %764 = vst [vmem:[#allocation2 + $0x50] sm:$0xff] %v748_v42  ;;  %v741_v51 = vadd.f32 %v1157_v49, %v516_v39  ;;  %v749_v52 = vadd.f32 %v1165_v50, %v524_v40  ;;  %v678_v53 = vpop.f32.mrb[3].mxu0  ;;  %v710_v54 = vpop.f32.mrb[3].mxu1 }
 0x129   : > { %754 = vst [vmem:[#allocation2] sm:$0xff] %v738_v47  ;;  %762 = vst [vmem:[#allocation2 + $0x40] sm:$0xff] %v746_v48  ;;  %v739_v55 = vadd.f32 %v678_v53, %v514_v45  ;;  %v747_v56 = vadd.f32 %v710_v54, %v522_v46 }
 0x12a   : > { %757 = vst [vmem:[#allocation2 + $0x18] sm:$0xff] %v741_v51  ;;  %765 = vst [vmem:[#allocation2 + $0x58] sm:$0xff] %v749_v52 }
 0x12b   : > { %755 = vst [vmem:[#allocation2 + $0x8] sm:$0xff] %v739_v55  ;;  %763 = vst [vmem:[#allocation2 + $0x48] sm:$0xff] %v747_v56 }
 0x12d   : > { %v1160_v61 = vpop.f32.mrb[4].mxu0  ;;  %v1168_v62 = vpop.f32.mrb[4].mxu1  ;;  %773 = sbr.rel (%p1038_p11) target bundleno = 319 (0x13f), region = 93 }
 0x12e   : > { %v744_v1 = vadd.f32 %v1160_v61, %v519_v57  ;;  %v752_v2 = vadd.f32 %v1168_v62, %v527_v58  ;;  %v691_v3 = vpop.f32.mrb[5].mxu0  ;;  %v723_v4 = vpop.f32.mrb[5].mxu1 }
 0x12f   : > { %v742_v7 = vadd.f32 %v691_v3, %v517_v59  ;;  %v750_v8 = vadd.f32 %v723_v4, %v525_v60  ;;  %v1161_v9 = vpop.f32.mrb[6].mxu0  ;;  %v1169_v10 = vpop.f32.mrb[6].mxu1  ;;  %v776_v19 = vld [vmem:[#allocation2 + $0x10] sm:$0xff] (!%p1038_p11) }
 0x130   : > { %760 = vst [vmem:[#allocation2 + $0x30] sm:$0xff] %v744_v1  ;;  %768 = vst [vmem:[#allocation2 + $0x70] sm:$0xff] %v752_v2  ;;  %v745_v11 = vadd.f32 %v1161_v9, %v520_v63  ;;  %v753_v12 = vadd.f32 %v1169_v10, %v528_v0  ;;  %v694_v13 = vpop.f32.mrb[7].mxu0  ;;  %v726_v14 = vpop.f32.mrb[7].mxu1  ;;  %v774_v17 = vld [vmem:[#allocation2] sm:$0xff] (!%p1038_p11)  ;;  %v784_v31 = vld [vmem:[#allocation2 + $0x50] sm:$0xff] (!%p1038_p11) }
 0x131   : > { %758 = vst [vmem:[#allocation2 + $0x20] sm:$0xff] %v742_v7  ;;  %766 = vst [vmem:[#allocation2 + $0x60] sm:$0xff] %v750_v8  ;;  %v743_v15 = vadd.f32 %v694_v13, %v518_v5  ;;  %v751_v16 = vadd.f32 %v726_v14, %v526_v6  ;;  %v777_v21 = vld [vmem:[#allocation2 + $0x18] sm:$0xff] (!%p1038_p11)  ;;  %v782_v28 = vld [vmem:[#allocation2 + $0x40] sm:$0xff] (!%p1038_p11) }
 0x132   : > { %761 = vst [vmem:[#allocation2 + $0x38] sm:$0xff] %v745_v11  ;;  %769 = vst [vmem:[#allocation2 + $0x78] sm:$0xff] %v753_v12  ;;  %v775_v18 = vld [vmem:[#allocation2 + $0x8] sm:$0xff] (!%p1038_p11)  ;;  %v1083_v24 = vpack.c.bf16 (!%p1038_p11), %v777_v21, %v776_v19  ;;  %v785_v32 = vld [vmem:[#allocation2 + $0x58] sm:$0xff] (!%p1038_p11) }
 0x133   : > { %759 = vst [vmem:[#allocation2 + $0x28] sm:$0xff] %v743_v15  ;;  %767 = vst [vmem:[#allocation2 + $0x68] sm:$0xff] %v751_v16  ;;  %v1078_v20 = vpack.c.bf16 (!%p1038_p11), %v775_v18, %v774_v17  ;;  %v783_v30 = vld [vmem:[#allocation2 + $0x48] sm:$0xff] (!%p1038_p11)  ;;  %v1103_v34 = vpack.c.bf16 (!%p1038_p11), %v785_v32, %v784_v31 }
 0x134   : > { %1115 = vst [vmem:[%s1454_s6 + $0x8] sm:$0xff] %v1083_v24   ;;  %v1098_v33 = vpack.c.bf16 %v783_v30, %v782_v28 }
 0x135   : > { %1079 = vst [vmem:[%s1454_s6] sm:$0xff] %v1078_v20   ;;  %1119 = vst [vmem:[%s1454_s6 + $0x28] sm:$0xff] %v1103_v34  }
 0x136   : > { %1118 = vst [vmem:[%s1454_s6 + $0x20] sm:$0xff] %v1098_v33  }
 0x137   : > { %v780_v26 = vld [vmem:[#allocation2 + $0x30] sm:$0xff] }
 0x138   : > { %v778_v22 = vld [vmem:[#allocation2 + $0x20] sm:$0xff]  ;;  %v788_v37 = vld [vmem:[#allocation2 + $0x70] sm:$0xff] }
 0x139   : > { %v781_v27 = vld [vmem:[#allocation2 + $0x38] sm:$0xff]  ;;  %v786_v35 = vld [vmem:[#allocation2 + $0x60] sm:$0xff] }
 0x13a   : > { %v779_v23 = vld [vmem:[#allocation2 + $0x28] sm:$0xff]  ;;  %v1093_v29 = vpack.c.bf16 %v781_v27, %v780_v26  ;;  %v789_v39 = vld [vmem:[#allocation2 + $0x78] sm:$0xff] }
 0x13b   : > { %v1088_v25 = vpack.c.bf16 %v779_v23, %v778_v22  ;;  %v787_v36 = vld [vmem:[#allocation2 + $0x68] sm:$0xff]  ;;  %v1113_v40 = vpack.c.bf16 %v789_v39, %v788_v37 }
 0x13c   : > { %1117 = vst [vmem:[%s1454_s6 + $0x18] sm:$0xff] %v1093_v29   ;;  %v1108_v38 = vpack.c.bf16 %v787_v36, %v786_v35 }
 0x13d   : > { %1116 = vst [vmem:[%s1454_s6 + $0x10] sm:$0xff] %v1088_v25   ;;  %1121 = vst [vmem:[%s1454_s6 + $0x38] sm:$0xff] %v1113_v40  }
 0x13e   : > { %1120 = vst [vmem:[%s1454_s6 + $0x30] sm:$0xff] %v1108_v38  }
 0x13f PF: > { %s16_s2 = sadd.s32 1, %s1281_s2   ;;  %s1455_s21 = smov %s1269_s22 }
 0x140   : > { %p13_p12 = scmp.ge.s32.totalorder %s16_s2, 7   ;;  %s1456_s22 = smov %s1354_s25 }
 0x141   : > { %s1457_s23 = smov %s1277_s24  ;;  %s1458_s24 = smov %s1460_s3 }
 0x142   :  { %15 = sbr.rel (!%p13_p12) target bundleno = 3 (0x3), region = 143 }

// kernel: densenet_forward.26
= control target key start
LH: loop header
LB: loop body
LE: loop exit
PB: predicated region body
PF: predicated region fallthrough
CT: control target
= control target key end

     0   :  { %s807_s1 = inlined_call_operand.vmem [shape: bf16[128,128], index: 1, kind: input, shape index: {}]   ;;  %s808_s4 = inlined_call_operand.vmem [shape: f32[1,128], index: 4, kind: input, shape index: {}]   ;;  %s809_s5 = inlined_call_operand.vmem [shape: f32[1,128], index: 5, kind: input, shape index: {}]   ;;  %s810_s0 = inlined_call_operand.vmem [shape: bf16[128,128], index: 0, kind: input, shape index: {}]   ;;  %s811_s2 = inlined_call_operand.vmem [shape: f32[1,128], index: 2, kind: input, shape index: {}]   ;;  %s812_s3 = inlined_call_operand.vmem [shape: f32[1,128], index: 3, kind: input, shape index: {}]   ;;  %s813_s6 = inlined_call_operand.vmem [shape: bf16[128,128], index: 6, kind: output, shape index: {}]  }
   0x1   :  { %v650_v0 = vld [vmem:[%s807_s1] sm:$0xff]   ;;  %v651_v1 = vld [vmem:[%s807_s1 + $0x8] sm:$0xff]   ;;  %v652_v2 = vld [vmem:[%s807_s1 + $0x10] sm:$0xff]  }
   0x2   :  { %602 = vmatprep.subr.bf16.mxu0 %v650_v0  ;;  %634 = vmatprep.subr.bf16.mxu1 %v650_v0  ;;  %v653_v3 = vld [vmem:[%s807_s1 + $0x18] sm:$0xff]   ;;  %v501_v4 = vld [vmem:[%s810_s0] sm:$0xff]   ;;  %v572_v9 = vld [vmem:[%s810_s0 + $0x8] sm:$0xff]  }
   0x3   :  { %603 = vmatpush3.bf16.msra.mxu0 %v650_v0  ;;  %642 = vmatpush3.bf16.msra.mxu1 %v650_v0  ;;  %v711_v5 = vld [vmem:[%s811_s2] ss:$0 sm:$0xff]  ;;  %v502_v6 = vunpack.c.l.bf16 %v501_v4  ;;  %v503_v7 = vunpack.c.h.bf16 %v501_v4  ;;  %v576_v13 = vld [vmem:[%s810_s0 + $0x28] sm:$0xff]   ;;  %v573_v16 = vld [vmem:[%s810_s0 + $0x10] sm:$0xff]   ;;  %v506_v20 = vunpack.c.l.bf16 %v572_v9  ;;  %v507_v21 = vunpack.c.h.bf16 %v572_v9 }
   0x4   :  { %604 = vmatprep.subr.bf16.mxu0 %v651_v1  ;;  %635 = vmatprep.subr.bf16.mxu1 %v651_v1  ;;  %v575_v8 = vld [vmem:[%s810_s0 + $0x20] sm:$0xff]   ;;  %v522_v24 = vunpack.c.l.bf16 %v576_v13  ;;  %v523_v25 = vunpack.c.h.bf16 %v576_v13  ;;  %v510_v28 = vunpack.c.l.bf16 %v573_v16  ;;  %v577_v31 = vld [vmem:[%s810_s0 + $0x30] sm:$0xff]   ;;  %v655_v32 = vld [vmem:[%s807_s1 + $0x28] sm:$0xff]   ;;  %v511_v40 = vunpack.c.h.bf16 %v573_v16 }
   0x5   :  { %v722_v10 = vld [vmem:[%s812_s3] ss:$0 sm:$0xff]  ;;  %v518_v11 = vunpack.c.l.bf16 %v575_v8  ;;  %v519_v12 = vunpack.c.h.bf16 %v575_v8  ;;  %v83_v14 = vmul.f32 %v502_v6, %v711_v5  ;;  %v84_v15 = vmul.f32 %v503_v7, %v711_v5  ;;  %v574_v44 = vld [vmem:[%s810_s0 + $0x18] sm:$0xff]   ;;  %v656_v48 = vld [vmem:[%s807_s1 + $0x30] sm:$0xff]  }
   0x6   :  { %v654_v17 = vld [vmem:[%s807_s1 + $0x20] sm:$0xff]   ;;  %v85_v35 = vmul.f32 %v506_v20, %v711_v5  ;;  %v86_v36 = vmul.f32 %v507_v21, %v711_v5  ;;  %v93_v38 = vmul.f32 %v522_v24, %v711_v5  ;;  %v94_v39 = vmul.f32 %v523_v25, %v711_v5  ;;  %v578_v47 = vld [vmem:[%s810_s0 + $0x38] sm:$0xff]  }
   0x7   :  { %605 = vmatpush3.bf16.msra.mxu0 %v651_v1  ;;  %643 = vmatpush3.bf16.msra.mxu1 %v651_v1  ;;  %v91_v18 = vmul.f32 %v518_v11, %v711_v5  ;;  %v92_v19 = vmul.f32 %v519_v12, %v711_v5  ;;  %v106_v22 = vadd.f32 %v722_v10, %v83_v14  ;;  %v526_v43 = vunpack.c.l.bf16 %v577_v31  ;;  %v657_v63 = vld [vmem:[%s807_s1 + $0x38] sm:$0xff]  }
   0x8   :  { %606 = vmatprep.subr.bf16.mxu0 %v652_v2  ;;  %636 = vmatprep.subr.bf16.mxu1 %v652_v2  ;;  %v107_v23 = vadd.f32 %v722_v10, %v84_v15  ;;  %v87_v42 = vmul.f32 %v510_v28, %v711_v5  ;;  %v88_v45 = vmul.f32 %v511_v40, %v711_v5  ;;  %v527_v46 = vunpack.c.h.bf16 %v577_v31 }
   0x9   :  { %v114_v26 = vadd.f32 %v722_v10, %v91_v18  ;;  %v115_v27 = vadd.f32 %v722_v10, %v92_v19  ;;  %v122_v29 = vmax.f32 %v106_v22, 0.0  ;;  %v108_v49 = vadd.f32 %v722_v10, %v85_v35 }
   0xa   :  { %v123_v30 = vmax.f32 %v107_v23, 0.0  ;;  %v109_v50 = vadd.f32 %v722_v10, %v86_v36  ;;  %v95_v51 = vmul.f32 %v526_v43, %v711_v5  ;;  %v116_v52 = vadd.f32 %v722_v10, %v93_v38 }
   0xb   :  { %607 = vmatpush3.bf16.msra.mxu0 %v652_v2  ;;  %644 = vmatpush3.bf16.msra.mxu1 %v652_v2  ;;  %v130_v33 = vmax.f32 %v114_v26, 0.0  ;;  %v131_v34 = vmax.f32 %v115_v27, 0.0  ;;  %v117_v53 = vadd.f32 %v722_v10, %v94_v39  ;;  %v96_v54 = vmul.f32 %v527_v46, %v711_v5 }
   0xc   :  { %608 = vmatprep.subr.bf16.mxu0 %v653_v3  ;;  %637 = vmatprep.subr.bf16.mxu1 %v653_v3  ;;  %v154_v37 = vpack.c.bf16 %v123_v30, %v122_v29  ;;  %v514_v55 = vunpack.c.l.bf16 %v574_v44  ;;  %v110_v56 = vadd.f32 %v722_v10, %v87_v42  ;;  %v515_v57 = vunpack.c.h.bf16 %v574_v44 }
   0xd   :  { %v158_v41 = vpack.c.bf16 %v131_v34, %v130_v33  ;;  %v530_v58 = vunpack.c.l.bf16 %v578_v47  ;;  %v531_v59 = vunpack.c.h.bf16 %v578_v47  ;;  %v111_v60 = vadd.f32 %v722_v10, %v88_v45 }
   0xe   :  { %618 = vmatprep.mubr.bf16.mxu0 %v154_v37  ;;  %v118_v61 = vadd.f32 %v722_v10, %v95_v51  ;;  %v119_v62 = vadd.f32 %v722_v10, %v96_v54  ;;  %v124_v0 = vmax.f32 %v108_v49, 0.0  ;;  %v125_v1 = vmax.f32 %v109_v50, 0.0 }
   0xf   :  { %609 = vmatpush3.bf16.msra.mxu0 %v653_v3  ;;  %645 = vmatpush3.bf16.msra.mxu1 %v653_v3  ;;  %v132_v2 = vmax.f32 %v116_v52, 0.0  ;;  %v133_v3 = vmax.f32 %v117_v53, 0.0  ;;  %v89_v4 = vmul.f32 %v514_v55, %v711_v5  ;;  %v90_v6 = vmul.f32 %v515_v57, %v711_v5 }
  0x10   :  { %610 = vmatprep.subr.bf16.mxu0 %v654_v17  ;;  %638 = vmatprep.subr.bf16.mxu1 %v654_v17  ;;  %v97_v7 = vmul.f32 %v530_v58, %v711_v5  ;;  %v98_v8 = vmul.f32 %v531_v59, %v711_v5  ;;  %v126_v9 = vmax.f32 %v110_v56, 0.0  ;;  %v127_v11 = vmax.f32 %v111_v60, 0.0 }
  0x11   :  { %626 = vmatprep.mubr.bf16.mxu1 %v158_v41  ;;  %v134_v12 = vmax.f32 %v118_v61, 0.0  ;;  %v135_v13 = vmax.f32 %v119_v62, 0.0  ;;  %v155_v14 = vpack.c.bf16 %v125_v1, %v124_v0  ;;  %v159_v15 = vpack.c.bf16 %v133_v3, %v132_v2 }
  0x12   :  { %v112_v16 = vadd.f32 %v722_v10, %v89_v4  ;;  %v120_v18 = vadd.f32 %v722_v10, %v97_v7  ;;  %v121_v19 = vadd.f32 %v722_v10, %v98_v8  ;;  %v156_v5 = vpack.c.bf16 %v127_v11, %v126_v9 }
  0x13   :  { %611 = vmatpush3.bf16.msra.mxu0 %v654_v17  ;;  %646 = vmatpush3.bf16.msra.mxu1 %v654_v17  ;;  %v113_v17 = vadd.f32 %v722_v10, %v90_v6  ;;  %v160_v20 = vpack.c.bf16 %v135_v13, %v134_v12 }
  0x14   :  { %612 = vmatprep.subr.bf16.mxu0 %v655_v32  ;;  %639 = vmatprep.subr.bf16.mxu1 %v655_v32  ;;  %v128_v21 = vmax.f32 %v112_v16, 0.0  ;;  %v136_v23 = vmax.f32 %v120_v18, 0.0  ;;  %v137_v24 = vmax.f32 %v121_v19, 0.0 }
  0x15   :  { %v129_v22 = vmax.f32 %v113_v17, 0.0 }
  0x16   :  { %v161_v26 = vpack.c.bf16 %v137_v24, %v136_v23 }
  0x17   :  { %613 = vmatpush3.bf16.msra.mxu0 %v655_v32  ;;  %647 = vmatpush3.bf16.msra.mxu1 %v655_v32  ;;  %v157_v25 = vpack.c.bf16 %v129_v22, %v128_v21 }
  0x18   :  { %614 = vmatprep.subr.bf16.mxu0 %v656_v48  ;;  %640 = vmatprep.subr.bf16.mxu1 %v656_v48 }
  0x1b   :  { %615 = vmatpush3.bf16.msra.mxu0 %v656_v48  ;;  %648 = vmatpush3.bf16.msra.mxu1 %v656_v48 }
  0x1c   :  { %616 = vmatprep.subr.bf16.mxu0 %v657_v63  ;;  %641 = vmatprep.subr.bf16.mxu1 %v657_v63 }
  0x1f   :  { %617 = vmatpush3.bf16.msra.mxu0 %v657_v63  ;;  %649 = vmatpush3.bf16.msra.mxu1 %v657_v63 }
  0x22   :  { %619 = vmatmul.mubr.bf16.vlgmr.msra.gmra.mrb[0].mxu0 %v155_v14  ;;  %627 = vmatmul.mubr.bf16.vlgmr.msra.gmra.mrb[0].mxu1 %v159_v15 }
  0x23   :  { %622 = vmatprep.mubr.bf16.mxu0 %v156_v5  ;;  %630 = vmatprep.mubr.bf16.mxu1 %v160_v20 }
  0x2a   :  { %623 = vmatmul.mubr.bf16.gmra.mrb[4].mxu0 %v157_v25  ;;  %631 = vmatmul.mubr.bf16.gmra.mrb[4].mxu1 %v161_v26 }
  0xf5   :  { %v620_v27 = vpop.f32.mrb[0].mxu0  ;;  %v628_v28 = vpop.f32.mrb[0].mxu1 }
  0xf6   :  { %v260_v29 = vpop.f32.mrb[1].mxu0  ;;  %v292_v10 = vpop.f32.mrb[1].mxu1 }
  0xf7   :  { %v621_v30 = vpop.f32.mrb[2].mxu0  ;;  %v629_v31 = vpop.f32.mrb[2].mxu1 }
  0xf8   :  { %v540_v32 = vpack.c.bf16 %v621_v30, %v620_v27  ;;  %v560_v33 = vpack.c.bf16 %v629_v31, %v628_v28  ;;  %v263_v34 = vpop.f32.mrb[3].mxu0  ;;  %v295_v35 = vpop.f32.mrb[3].mxu1 }
  0xf9   :  { %v535_v36 = vpack.c.bf16 %v263_v34, %v260_v29  ;;  %v555_v37 = vpack.c.bf16 %v295_v35, %v292_v10 }
  0xfa   :  { %579 = vst [vmem:[%s813_s6 + $0x8] sm:$0xff] %v540_v32   ;;  %583 = vst [vmem:[%s813_s6 + $0x28] sm:$0xff] %v560_v33  }
  0xfb   :  { %536 = vst [vmem:[%s813_s6] sm:$0xff] %v535_v36   ;;  %582 = vst [vmem:[%s813_s6 + $0x20] sm:$0xff] %v555_v37  }
  0xfd   :  { %v624_v38 = vpop.f32.mrb[4].mxu0  ;;  %v632_v39 = vpop.f32.mrb[4].mxu1 }
  0xfe   :  { %v276_v40 = vpop.f32.mrb[5].mxu0  ;;  %v308_v41 = vpop.f32.mrb[5].mxu1 }
  0xff   :  { %v625_v42 = vpop.f32.mrb[6].mxu0  ;;  %v633_v43 = vpop.f32.mrb[6].mxu1 }
 0x100   :  { %v550_v44 = vpack.c.bf16 %v625_v42, %v624_v38  ;;  %v570_v45 = vpack.c.bf16 %v633_v43, %v632_v39  ;;  %v279_v46 = vpop.f32.mrb[7].mxu0  ;;  %v311_v47 = vpop.f32.mrb[7].mxu1 }
 0x101   :  { %v545_v48 = vpack.c.bf16 %v279_v46, %v276_v40  ;;  %v565_v49 = vpack.c.bf16 %v311_v47, %v308_v41 }
 0x102   :  { %581 = vst [vmem:[%s813_s6 + $0x18] sm:$0xff] %v550_v44   ;;  %585 = vst [vmem:[%s813_s6 + $0x38] sm:$0xff] %v570_v45  }
 0x103   :  { %580 = vst [vmem:[%s813_s6 + $0x10] sm:$0xff] %v545_v48   ;;  %584 = vst [vmem:[%s813_s6 + $0x30] sm:$0xff] %v565_v49  }

// kernel: densenet_forward.27
= control target key start
LH: loop header
LB: loop body
LE: loop exit
PB: predicated region body
PF: predicated region fallthrough
CT: control target
= control target key end

     0   :  { %s411_s1 = inlined_call_operand.vmem [shape: bf16[128,128], index: 1, kind: input, shape index: {}]   ;;  %s412_s0 = inlined_call_operand.vmem [shape: bf16[32,128], index: 0, kind: input, shape index: {}]   ;;  %s413_s2 = inlined_call_operand.vmem [shape: f32[1,128], index: 2, kind: input, shape index: {}]   ;;  %s414_s3 = inlined_call_operand.vmem [shape: f32[1,128], index: 3, kind: input, shape index: {}]   ;;  %s415_s4 = inlined_call_operand.vmem [shape: f32[1,128], index: 4, kind: input, shape index: {}]   ;;  %s416_s5 = inlined_call_operand.vmem [shape: f32[1,128], index: 5, kind: input, shape index: {}]   ;;  %s417_s6 = inlined_call_operand.vmem [shape: bf16[32,128], index: 6, kind: output, shape index: {}]  }
   0x1   :  { %v320_v0 = vld [vmem:[%s411_s1] sm:$0xff]   ;;  %v321_v1 = vld [vmem:[%s411_s1 + $0x8] sm:$0xff]   ;;  %v322_v2 = vld [vmem:[%s411_s1 + $0x10] sm:$0xff]  }
   0x2   :  { %300 = vmatprep.subr.bf16.mxu0 %v320_v0  ;;  %v323_v3 = vld [vmem:[%s411_s1 + $0x18] sm:$0xff]   ;;  %v271_v4 = vld [vmem:[%s412_s0] sm:$0xff]   ;;  %v288_v9 = vld [vmem:[%s412_s0 + $0x8] sm:$0xff]  }
   0x3   :  { %301 = vmatpush3.bf16.msra.mxu0 %v320_v0  ;;  %v250_v5 = vld [vmem:[%s413_s2] ss:$0 sm:$0xff]  ;;  %v272_v6 = vunpack.c.l.bf16 %v271_v4  ;;  %v273_v7 = vunpack.c.h.bf16 %v271_v4  ;;  %v276_v15 = vunpack.c.l.bf16 %v288_v9  ;;  %v277_v16 = vunpack.c.h.bf16 %v288_v9  ;;  %v325_v19 = vld [vmem:[%s411_s1 + $0x28] sm:$0xff]   ;;  %v326_v23 = vld [vmem:[%s411_s1 + $0x30] sm:$0xff]  }
   0x4   :  { %302 = vmatprep.subr.bf16.mxu0 %v321_v1  ;;  %v251_v8 = vld [vmem:[%s414_s3] ss:$0 sm:$0xff]  ;;  %v327_v26 = vld [vmem:[%s411_s1 + $0x38] sm:$0xff]  }
   0x5   :  { %v47_v10 = vmul.f32 %v272_v6, %v250_v5  ;;  %v48_v11 = vmul.f32 %v273_v7, %v250_v5  ;;  %v324_v12 = vld [vmem:[%s411_s1 + $0x20] sm:$0xff]   ;;  %v49_v21 = vmul.f32 %v276_v15, %v250_v5  ;;  %v50_v22 = vmul.f32 %v277_v16, %v250_v5 }
   0x6   :  { %v260_v30 = vld [vmem:[%s415_s4] ss:$0 sm:$0xff] }
   0x7   :  { %303 = vmatpush3.bf16.msra.mxu0 %v321_v1  ;;  %v58_v13 = vadd.f32 %v251_v8, %v47_v10  ;;  %v59_v14 = vadd.f32 %v251_v8, %v48_v11  ;;  %v60_v24 = vadd.f32 %v251_v8, %v49_v21  ;;  %v61_v25 = vadd.f32 %v251_v8, %v50_v22  ;;  %v261_v32 = vld [vmem:[%s416_s5] ss:$0 sm:$0xff] }
   0x8   :  { %304 = vmatprep.subr.bf16.mxu0 %v322_v2 }
   0x9   :  { %v62_v17 = vmax.f32 %v58_v13, 0.0  ;;  %v63_v18 = vmax.f32 %v59_v14, 0.0  ;;  %v64_v27 = vmax.f32 %v60_v24, 0.0  ;;  %v65_v28 = vmax.f32 %v61_v25, 0.0 }
   0xb   :  { %305 = vmatpush3.bf16.msra.mxu0 %v322_v2  ;;  %v70_v20 = vpack.c.bf16 %v63_v18, %v62_v17  ;;  %v71_v29 = vpack.c.bf16 %v65_v28, %v64_v27 }
   0xc   :  { %306 = vmatprep.subr.bf16.mxu0 %v323_v3 }
   0xd   :  { %316 = vmatprep.mubr.bf16.mxu0 %v70_v20 }
   0xf   :  { %307 = vmatpush3.bf16.msra.mxu0 %v323_v3 }
  0x10   :  { %308 = vmatprep.subr.bf16.mxu0 %v324_v12 }
  0x13   :  { %309 = vmatpush3.bf16.msra.mxu0 %v324_v12 }
  0x14   :  { %310 = vmatprep.subr.bf16.mxu0 %v325_v19 }
  0x17   :  { %311 = vmatpush3.bf16.msra.mxu0 %v325_v19 }
  0x18   :  { %312 = vmatprep.subr.bf16.mxu0 %v326_v23 }
  0x1b   :  { %313 = vmatpush3.bf16.msra.mxu0 %v326_v23 }
  0x1c   :  { %314 = vmatprep.subr.bf16.mxu0 %v327_v26 }
  0x1f   :  { %315 = vmatpush3.bf16.msra.mxu0 %v327_v26 }
  0x22   :  { %317 = vmatmul.mubr.bf16.vlgmr.msra.gmra.mrb[0].mxu0 %v71_v29 }
  0xf5   :  { %v318_v31 = vpop.f32.mrb[0].mxu0 }
  0xf6   :  { %v209_v33 = vmul.f32 %v318_v31, %v260_v30  ;;  %v170_v34 = vpop.f32.mrb[1].mxu0 }
  0xf7   :  { %v207_v35 = vmul.f32 %v260_v30, %v170_v34  ;;  %v319_v36 = vpop.f32.mrb[2].mxu0 }
  0xf8   :  { %v220_v37 = vadd.f32 %v261_v32, %v209_v33  ;;  %v210_v38 = vmul.f32 %v319_v36, %v260_v30  ;;  %v173_v39 = vpop.f32.mrb[3].mxu0 }
  0xf9   :  { %v218_v40 = vadd.f32 %v261_v32, %v207_v35  ;;  %v208_v41 = vmul.f32 %v260_v30, %v173_v39 }
  0xfa   :  { %v221_v42 = vadd.f32 %v261_v32, %v210_v38  ;;  %v224_v44 = vmax.f32 %v220_v37, 0.0 }
  0xfb   :  { %v219_v43 = vadd.f32 %v261_v32, %v208_v41  ;;  %v222_v46 = vmax.f32 %v218_v40, 0.0 }
  0xfc   :  { %v225_v45 = vmax.f32 %v221_v42, 0.0 }
  0xfd   :  { %v223_v47 = vmax.f32 %v219_v43, 0.0 }
  0xfe   :  { %v286_v48 = vpack.c.bf16 %v225_v45, %v224_v44 }
  0xff   :  { %v281_v49 = vpack.c.bf16 %v223_v47, %v222_v46 }
 0x100   :  { %289 = vst [vmem:[%s417_s6 + $0x8] sm:$0xff] %v286_v48  }
 0x101   :  { %282 = vst [vmem:[%s417_s6] sm:$0xff] %v281_v49  }

// kernel: densenet_forward.28
= control target key start
LH: loop header
LB: loop body
LE: loop exit
PB: predicated region body
PF: predicated region fallthrough
CT: control target
= control target key end

     0   :  { %s949_s21 = smov 0   ;;  %s951_s22 = smov 0   ;;  %s1039_s0 = inlined_call_operand.vmem [shape: bf16[32,640], index: 0, kind: input, shape index: {}]   ;;  %s1040_s1 = inlined_call_operand.vmem [shape: bf16[640,128], index: 1, kind: input, shape index: {}]   ;;  %s1041_s2 = inlined_call_operand.vmem [shape: f32[1,640], index: 2, kind: input, shape index: {}]   ;;  %s1042_s3 = inlined_call_operand.vmem [shape: f32[1,640], index: 3, kind: input, shape index: {}]   ;;  %s1043_s4 = inlined_call_operand.vmem [shape: f32[1,128], index: 4, kind: input, shape index: {}]   ;;  %s1044_s5 = inlined_call_operand.vmem [shape: f32[1,128], index: 5, kind: input, shape index: {}]   ;;  %s1045_s6 = inlined_call_operand.vmem [shape: bf16[32,128], index: 6, kind: output, shape index: {}]  }
   0x1   :  { %s953_s23 = smov 0   ;;  %s955_s24 = smov 0  }
   0x2   :  { %s957_s2 = smov 0  }
   0x3 LB: > { %s28_s3 = sadd.s32 1, %s907_s24  ;;  %p51_p1 = scmp.ne.s32.totalorder %s899_s22, %s895_s21  ;;  %s911_s2 = sphi %s957_s2, %s16_s2   ;;  %s907_s24 = sphi %s955_s24, %s1049_s24   ;;  %s903_s23 = sphi %s953_s23, %s1048_s23   ;;  %s899_s22 = sphi %s951_s22, %s1047_s22   ;;  %s895_s21 = sphi %s949_s21, %s1046_s21  }
   0x4   : > { %p29_p0 = scmp.ge.s32.totalorder %s28_s3, 5  ;;  %p52_p2 = scmp.eq.s32.totalorder %s911_s2, 0 }
   0x5   : > { %s44_s5 = sadd.s32 1, %s899_s22  ;;  %p750_p5 = scmp.ge.s32.totalorder %s911_s2, 5 }
   0x6   : > { %s1051_s3 = smov (%p29_p0, %s28_s3), 0  ;;  %p53_p3 = por %p52_p2, %p51_p1 }
   0x7   : > { %s40_s4 = ssub.s32 %s907_s24, %s1051_s3  ;;  %249 = sbr.rel (%p750_p5) target bundleno = 21 (0x15), region = 24 }
   0x8   : > { %p42_p4 = scmp.eq.s32.totalorder %s40_s4, 0 }
   0xa   : > { %s984_s25 = scalar_select %p42_p4, %s899_s22, %s44_s5  }
   0xe   : > { %252 = sbr.rel (!%p53_p3) target bundleno = 21 (0x15), region = 28  ;;  %s254_s26 = sand.u32 (%p53_p3), 1, %s899_s22  }
   0xf   : > { %s752_s27 = sshll.u32 (%p53_p3), %s907_s24, 2  ;;  %s751_s28 = sshll.u32 (%p53_p3), %s254_s26, 4 }
  0x10   : > { %s261_s7 = scalar_lea.vmem (%p53_p3), %s1039_s0, %s752_s27  ;;  %s256_s8 = scalar_lea.vmem (%p53_p3), [#allocation3], %s751_s28 }
  0x11   : > { %v277_v0 = vld [vmem:[%s261_s7] sm:$0xf] (%p53_p3)  ;;  %v279_v1 = vld [vmem:[%s261_s7 + $0x14] sm:$0xf] (%p53_p3)  ;;  %v281_v2 = vld [vmem:[%s261_s7 + $0x28] sm:$0xf] (%p53_p3) }
  0x12   : > { %278 = vst [vmem:[%s256_s8] sm:$0xf] (%p53_p3), %v277_v0  ;;  %280 = vst [vmem:[%s256_s8 + $0x4] sm:$0xf] (%p53_p3), %v279_v1  ;;  %v283_v3 = vld [vmem:[%s261_s7 + $0x3c] sm:$0xf] (%p53_p3) }
  0x13   : > { %282 = vst [vmem:[%s256_s8 + $0x8] sm:$0xf] (%p53_p3), %v281_v2  ;;  %284 = vst [vmem:[%s256_s8 + $0xc] sm:$0xf] (%p53_p3), %v283_v3 }
  0x15 PF: > { %p753_p6 = scmp.ge.s32.totalorder %s911_s2, 1  ;;  %p338_p7 = scmp.lt.s32.totalorder %s911_s2, 6 }
  0x17   : > { %p339_p8 = pnand %p753_p6, %p338_p7 }
  0x18   : > { %s345_s9 = sand.u32 (!%p339_p8), 1, %s895_s21   ;;  %s755_s10 = sshll.u32 (!%p339_p8), %s903_s23, 4 }
  0x19   : > { %342 = sbr.rel (%p339_p8) target bundleno = 300 (0x12c), region = 81  ;;  %s996_s11 = sshll.u32 (!%p339_p8), %s345_s9, 4 }
  0x1a   : > { %p399_p9 = scmp.lt.s32.totalorder (!%p339_p8), %s755_s10, 79  ;;  %s347_s16 = scalar_lea.vmem (!%p339_p8), [#allocation3], %s996_s11 }
  0x1b   : > { %p757_p10 = scmp.ne.s32.totalorder (!%p339_p8), %s903_s23, 0 }
  0x20   : > { %s1053_s10 = smov (!%p399_p9, %s755_s10), 79  ;;  %432 = sbr.rel (%p757_p10) target bundleno = 39 (0x27), region = 89 }
  0x21   : > { %s756_s12 = sshll.u32 %s1053_s10, 2  ;;  %v913_v4 = vmov (!%p757_p10), 0.0  }
  0x22   : > { %s1001_s15 = scalar_lea.vmem %s1040_s1, %s756_s12  ;;  %433 = vst [vmem:[#allocation2] sm:$0xff] (!%p757_p10), %v913_v4  ;;  %434 = vst [vmem:[#allocation2 + $0x8] sm:$0xff] (!%p757_p10), %v913_v4 }
  0x23   : > { %435 = vst [vmem:[#allocation2 + $0x10] sm:$0xff] (!%p757_p10), %v913_v4  ;;  %436 = vst [vmem:[#allocation2 + $0x18] sm:$0xff] (!%p757_p10), %v913_v4 }
  0x27 PF: > { %v863_v5 = vld [vmem:[%s1001_s15] sm:$0xff]   ;;  %v864_v6 = vld [vmem:[%s1001_s15 + $0x8] sm:$0xff]   ;;  %v865_v7 = vld [vmem:[%s1001_s15 + $0x10] sm:$0xff]   ;;  %p768_p11 = scmp.ne.s32.totalorder %s903_s23, 4 }
  0x28   : > { %802 = vmatprep.subr.bf16.mxu0 %v863_v5  ;;  %v866_v8 = vld [vmem:[%s1001_s15 + $0x18] sm:$0xff]   ;;  %v871_v9 = vld [vmem:[%s347_s16] sm:$0xff]   ;;  %v868_v11 = vld [vmem:[%s1001_s15 + $0x28] sm:$0xff]  }
  0x29   : > { %803 = vmatpush3.bf16.msra.mxu0 %v863_v5  ;;  %818 = vmatprep.mubr.bf16.mxu0 %v871_v9  ;;  %v867_v10 = vld [vmem:[%s1001_s15 + $0x20] sm:$0xff]   ;;  %v869_v12 = vld [vmem:[%s1001_s15 + $0x30] sm:$0xff]   ;;  %v870_v13 = vld [vmem:[%s1001_s15 + $0x38] sm:$0xff]  }
  0x2a   : > { %804 = vmatprep.subr.bf16.mxu0 %v864_v6  ;;  %v872_v14 = vld [vmem:[%s347_s16 + $0x8] sm:$0xff]   ;;  %v443_v15 = vld [vmem:[#allocation2 + $0x10] sm:$0xff]  ;;  %v441_v16 = vld [vmem:[#allocation2] sm:$0xff] }
  0x2b   : > { %v444_v18 = vld [vmem:[#allocation2 + $0x18] sm:$0xff]  ;;  %v442_v21 = vld [vmem:[#allocation2 + $0x8] sm:$0xff] }
  0x2d   : > { %805 = vmatpush3.bf16.msra.mxu0 %v864_v6 }
  0x2e   : > { %806 = vmatprep.subr.bf16.mxu0 %v865_v7 }
  0x31   : > { %807 = vmatpush3.bf16.msra.mxu0 %v865_v7 }
  0x32   : > { %808 = vmatprep.subr.bf16.mxu0 %v866_v8 }
  0x35   : > { %809 = vmatpush3.bf16.msra.mxu0 %v866_v8 }
  0x36   : > { %810 = vmatprep.subr.bf16.mxu0 %v867_v10 }
  0x39   : > { %811 = vmatpush3.bf16.msra.mxu0 %v867_v10 }
  0x3a   : > { %812 = vmatprep.subr.bf16.mxu0 %v868_v11 }
  0x3d   : > { %813 = vmatpush3.bf16.msra.mxu0 %v868_v11 }
  0x3e   : > { %814 = vmatprep.subr.bf16.mxu0 %v869_v12 }
  0x41   : > { %815 = vmatpush3.bf16.msra.mxu0 %v869_v12 }
  0x42   : > { %816 = vmatprep.subr.bf16.mxu0 %v870_v13 }
  0x45   : > { %817 = vmatpush3.bf16.msra.mxu0 %v870_v13 }
  0x48   : > { %819 = vmatmul.mubr.bf16.vlgmr.msra.gmra.mrb[0].mxu0 %v872_v14 }
 0x11b   : > { %v820_v17 = vpop.f32.mrb[0].mxu0  ;;  %581 = sbr.rel (%p768_p11) target bundleno = 300 (0x12c), region = 93 }
 0x11c   : > { %v572_v19 = vadd.f32 %v820_v17, %v443_v15  ;;  %v555_v20 = vpop.f32.mrb[1].mxu0 }
 0x11d   : > { %v570_v22 = vadd.f32 %v555_v20, %v441_v16  ;;  %v821_v23 = vpop.f32.mrb[2].mxu0 }
 0x11e   : > { %576 = vst [vmem:[#allocation2 + $0x10] sm:$0xff] %v572_v19  ;;  %v573_v24 = vadd.f32 %v821_v23, %v444_v18  ;;  %v558_v25 = vpop.f32.mrb[3].mxu0 }
 0x11f   : > { %574 = vst [vmem:[#allocation2] sm:$0xff] %v570_v22  ;;  %v571_v26 = vadd.f32 %v558_v25, %v442_v21 }
 0x120   : > { %577 = vst [vmem:[#allocation2 + $0x18] sm:$0xff] %v573_v24 }
 0x121   : > { %575 = vst [vmem:[#allocation2 + $0x8] sm:$0xff] %v571_v26 }
 0x125   : > { %v584_v29 = vld [vmem:[#allocation2 + $0x10] sm:$0xff] }
 0x126   : > { %v582_v27 = vld [vmem:[#allocation2] sm:$0xff] }
 0x127   : > { %v585_v31 = vld [vmem:[#allocation2 + $0x18] sm:$0xff] }
 0x128   : > { %v583_v28 = vld [vmem:[#allocation2 + $0x8] sm:$0xff]  ;;  %v789_v32 = vpack.c.bf16 %v585_v31, %v584_v29 }
 0x129   : > { %v784_v30 = vpack.c.bf16 %v583_v28, %v582_v27 }
 0x12a   : > { %791 = vst [vmem:[%s1045_s6 + $0x8] sm:$0xff] %v789_v32  }
 0x12b   : > { %785 = vst [vmem:[%s1045_s6] sm:$0xff] %v784_v30  }
 0x12c PF: > { %s16_s2 = sadd.s32 1, %s911_s2   ;;  %s1046_s21 = smov %s899_s22 }
 0x12d   : > { %p13_p12 = scmp.ge.s32.totalorder %s16_s2, 7   ;;  %s1047_s22 = smov %s984_s25 }
 0x12e   : > { %s1048_s23 = smov %s907_s24  ;;  %s1049_s24 = smov %s1051_s3 }
 0x12f   :  { %15 = sbr.rel (!%p13_p12) target bundleno = 3 (0x3), region = 143 }

// kernel: densenet_forward.31
= control target key start
LH: loop header
LB: loop body
LE: loop exit
PB: predicated region body
PF: predicated region fallthrough
CT: control target
= control target key end

     0   :  { %s377_s1 = inlined_call_operand.vmem [shape: bf16[128,128], index: 1, kind: input, shape index: {}]   ;;  %s378_s4 = inlined_call_operand.vmem [shape: f32[1,128], index: 4, kind: input, shape index: {}]   ;;  %s379_s5 = inlined_call_operand.vmem [shape: f32[1,128], index: 5, kind: input, shape index: {}]   ;;  %s380_s0 = inlined_call_operand.vmem [shape: bf16[32,128], index: 0, kind: input, shape index: {}]   ;;  %s381_s2 = inlined_call_operand.vmem [shape: f32[1,128], index: 2, kind: input, shape index: {}]   ;;  %s382_s3 = inlined_call_operand.vmem [shape: f32[1,128], index: 3, kind: input, shape index: {}]   ;;  %s383_s6 = inlined_call_operand.vmem [shape: bf16[32,128], index: 6, kind: output, shape index: {}]  }
   0x1   :  { %v292_v0 = vld [vmem:[%s377_s1] sm:$0xff]   ;;  %v293_v1 = vld [vmem:[%s377_s1 + $0x8] sm:$0xff]   ;;  %v294_v2 = vld [vmem:[%s377_s1 + $0x10] sm:$0xff]  }
   0x2   :  { %272 = vmatprep.subr.bf16.mxu0 %v292_v0  ;;  %v295_v3 = vld [vmem:[%s377_s1 + $0x18] sm:$0xff]   ;;  %v243_v4 = vld [vmem:[%s380_s0] sm:$0xff]   ;;  %v260_v9 = vld [vmem:[%s380_s0 + $0x8] sm:$0xff]  }
   0x3   :  { %273 = vmatpush3.bf16.msra.mxu0 %v292_v0  ;;  %v224_v5 = vld [vmem:[%s381_s2] ss:$0 sm:$0xff]  ;;  %v244_v6 = vunpack.c.l.bf16 %v243_v4  ;;  %v245_v7 = vunpack.c.h.bf16 %v243_v4  ;;  %v248_v15 = vunpack.c.l.bf16 %v260_v9  ;;  %v249_v16 = vunpack.c.h.bf16 %v260_v9  ;;  %v297_v19 = vld [vmem:[%s377_s1 + $0x28] sm:$0xff]   ;;  %v298_v23 = vld [vmem:[%s377_s1 + $0x30] sm:$0xff]  }
   0x4   :  { %274 = vmatprep.subr.bf16.mxu0 %v293_v1  ;;  %v225_v8 = vld [vmem:[%s382_s3] ss:$0 sm:$0xff]  ;;  %v299_v26 = vld [vmem:[%s377_s1 + $0x38] sm:$0xff]  }
   0x5   :  { %v47_v10 = vmul.f32 %v244_v6, %v224_v5  ;;  %v48_v11 = vmul.f32 %v245_v7, %v224_v5  ;;  %v296_v12 = vld [vmem:[%s377_s1 + $0x20] sm:$0xff]   ;;  %v49_v21 = vmul.f32 %v248_v15, %v224_v5  ;;  %v50_v22 = vmul.f32 %v249_v16, %v224_v5 }
   0x7   :  { %275 = vmatpush3.bf16.msra.mxu0 %v293_v1  ;;  %v58_v13 = vadd.f32 %v225_v8, %v47_v10  ;;  %v59_v14 = vadd.f32 %v225_v8, %v48_v11  ;;  %v60_v24 = vadd.f32 %v225_v8, %v49_v21  ;;  %v61_v25 = vadd.f32 %v225_v8, %v50_v22 }
   0x8   :  { %276 = vmatprep.subr.bf16.mxu0 %v294_v2 }
   0x9   :  { %v62_v17 = vmax.f32 %v58_v13, 0.0  ;;  %v63_v18 = vmax.f32 %v59_v14, 0.0  ;;  %v64_v27 = vmax.f32 %v60_v24, 0.0  ;;  %v65_v28 = vmax.f32 %v61_v25, 0.0 }
   0xb   :  { %277 = vmatpush3.bf16.msra.mxu0 %v294_v2  ;;  %v70_v20 = vpack.c.bf16 %v63_v18, %v62_v17  ;;  %v71_v29 = vpack.c.bf16 %v65_v28, %v64_v27 }
   0xc   :  { %278 = vmatprep.subr.bf16.mxu0 %v295_v3 }
   0xd   :  { %288 = vmatprep.mubr.bf16.mxu0 %v70_v20 }
   0xf   :  { %279 = vmatpush3.bf16.msra.mxu0 %v295_v3 }
  0x10   :  { %280 = vmatprep.subr.bf16.mxu0 %v296_v12 }
  0x13   :  { %281 = vmatpush3.bf16.msra.mxu0 %v296_v12 }
  0x14   :  { %282 = vmatprep.subr.bf16.mxu0 %v297_v19 }
  0x17   :  { %283 = vmatpush3.bf16.msra.mxu0 %v297_v19 }
  0x18   :  { %284 = vmatprep.subr.bf16.mxu0 %v298_v23 }
  0x1b   :  { %285 = vmatpush3.bf16.msra.mxu0 %v298_v23 }
  0x1c   :  { %286 = vmatprep.subr.bf16.mxu0 %v299_v26 }
  0x1f   :  { %287 = vmatpush3.bf16.msra.mxu0 %v299_v26 }
  0x22   :  { %289 = vmatmul.mubr.bf16.vlgmr.msra.gmra.mrb[0].mxu0 %v71_v29 }
  0xf5   :  { %v290_v30 = vpop.f32.mrb[0].mxu0 }
  0xf6   :  { %v170_v31 = vpop.f32.mrb[1].mxu0 }
  0xf7   :  { %v291_v32 = vpop.f32.mrb[2].mxu0 }
  0xf8   :  { %v258_v33 = vpack.c.bf16 %v291_v32, %v290_v30  ;;  %v173_v34 = vpop.f32.mrb[3].mxu0 }
  0xf9   :  { %v253_v35 = vpack.c.bf16 %v173_v34, %v170_v31 }
  0xfa   :  { %261 = vst [vmem:[%s383_s6 + $0x8] sm:$0xff] %v258_v33  }
  0xfb   :  { %254 = vst [vmem:[%s383_s6] sm:$0xff] %v253_v35  }

// kernel: densenet_forward.32
= control target key start
LH: loop header
LB: loop body
LE: loop exit
PB: predicated region body
PF: predicated region fallthrough
CT: control target
= control target key end

     0   :  { %v234_v0 = vmov 0.0   ;;  %vm235_vm0 = vmmov 0   ;;  %s313_s1 = inlined_call_operand.vmem [shape: bf16[128,128], index: 1, kind: input, shape index: {}]   ;;  %s314_s0 = inlined_call_operand.vmem [shape: bf16[8,128], index: 0, kind: input, shape index: {}]   ;;  %s315_s2 = inlined_call_operand.vmem [shape: f32[1,128], index: 2, kind: input, shape index: {}]   ;;  %s316_s3 = inlined_call_operand.vmem [shape: f32[1,128], index: 3, kind: input, shape index: {}]   ;;  %s317_s4 = inlined_call_operand.vmem [shape: f32[1,128], index: 4, kind: input, shape index: {}]   ;;  %s318_s5 = inlined_call_operand.vmem [shape: f32[1,128], index: 5, kind: input, shape index: {}]   ;;  %s319_s6 = inlined_call_operand.vmem [shape: bf16[8,128], index: 6, kind: output, shape index: {}]  }
   0x1   :  { %204 = vmatprep.subr.bf16.mxu0 %v234_v0  ;;  %v226_v1 = vld [vmem:[%s313_s1] sm:$0xff]   ;;  %220 = vmatprep.mubr.msk.bf16.mxu0 %vm235_vm0, %v234_v0  ;;  %v227_v2 = vld [vmem:[%s313_s1 + $0x8] sm:$0xff]   ;;  %v228_v3 = vld [vmem:[%s313_s1 + $0x10] sm:$0xff]  }
   0x2   :  { %205 = vmatpush3.bf16.msra.mxu0 %v226_v1  ;;  %v229_v4 = vld [vmem:[%s313_s1 + $0x18] sm:$0xff]   ;;  %v29_v5 = vld [vmem:[%s314_s0] sm:$0xf]  ;;  %v231_v10 = vld [vmem:[%s313_s1 + $0x28] sm:$0xff]  }
   0x3   :  { %206 = vmatprep.subr.bf16.mxu0 %v234_v0  ;;  %v30_v6 = vunpack.c.l.bf16 %v29_v5  ;;  %v230_v7 = vld [vmem:[%s313_s1 + $0x20] sm:$0xff]   ;;  %v232_v13 = vld [vmem:[%s313_s1 + $0x30] sm:$0xff]   ;;  %v233_v15 = vld [vmem:[%s313_s1 + $0x38] sm:$0xff]  }
   0x4   :  { %v183_v8 = vld [vmem:[%s315_s2] ss:$0 sm:$0xff] }
   0x5   :  { %v38_v9 = vmul.f32 %v183_v8, %v30_v6  ;;  %v184_v11 = vld [vmem:[%s316_s3] ss:$0 sm:$0xff] }
   0x6   :  { %207 = vmatpush3.bf16.msra.mxu0 %v227_v2  ;;  %v193_v17 = vld [vmem:[%s317_s4] ss:$0 sm:$0xff] }
   0x7   :  { %208 = vmatprep.subr.bf16.mxu0 %v234_v0  ;;  %v46_v12 = vadd.f32 %v184_v11, %v38_v9  ;;  %v194_v19 = vld [vmem:[%s318_s5] ss:$0 sm:$0xff] }
   0x9   :  { %v47_v14 = vmax.f32 %v46_v12, 0.0 }
   0xa   :  { %209 = vmatpush3.bf16.msra.mxu0 %v228_v3 }
   0xb   :  { %210 = vmatprep.subr.bf16.mxu0 %v234_v0  ;;  %v49_v16 = vpack.c.bf16 %v47_v14, %v47_v14 }
   0xe   :  { %211 = vmatpush3.bf16.msra.mxu0 %v229_v4 }
   0xf   :  { %212 = vmatprep.subr.bf16.mxu0 %v234_v0 }
  0x12   :  { %213 = vmatpush3.bf16.msra.mxu0 %v230_v7 }
  0x13   :  { %214 = vmatprep.subr.bf16.mxu0 %v234_v0 }
  0x16   :  { %215 = vmatpush3.bf16.msra.mxu0 %v231_v10 }
  0x17   :  { %216 = vmatprep.subr.bf16.mxu0 %v234_v0 }
  0x1a   :  { %217 = vmatpush3.bf16.msra.mxu0 %v232_v13 }
  0x1b   :  { %218 = vmatprep.subr.bf16.mxu0 %v234_v0 }
  0x1e   :  { %219 = vmatpush3.bf16.msra.mxu0 %v233_v15 }
  0x21   :  { %221 = vmatmul.mubr.bf16.vlgmr.msra.gmra.mrb[0].mxu0 %v49_v16 }
  0xf4   :  { %v148_v18 = vpop.f32.mrb[0].mxu0 }
  0xf5   :  { %v167_v20 = vmul.f32 %v193_v17, %v148_v18  ;;  %v222_v21 = vpop.f32.mrb[1].mxu0 }
  0xf6   :  { %v151_v22 = vpop.f32.mrb[2].mxu0 }
  0xf7   :  { %v175_v23 = vadd.f32 %v194_v19, %v167_v20  ;;  %v223_v24 = vpop.f32.mrb[3].mxu0 }
  0xf9   :  { %v176_v25 = vmax.f32 %v175_v23, 0.0 }
  0xfb   :  { %v177_v26 = vpack.c.bf16 %v176_v25, %v176_v25 }
  0xfd   :  { %178 = vst [vmem:[%s319_s6] sm:$0xf] %v177_v26 }

// kernel: densenet_forward.33
= control target key start
LH: loop header
LB: loop body
LE: loop exit
PB: predicated region body
PF: predicated region fallthrough
CT: control target
= control target key end

     0   :  { %s781_s21 = smov 0   ;;  %s783_s22 = smov 0   ;;  %s827_s0 = inlined_call_operand.vmem [shape: bf16[8,640], index: 0, kind: input, shape index: {}]   ;;  %s828_s1 = inlined_call_operand.vmem [shape: bf16[640,128], index: 1, kind: input, shape index: {}]   ;;  %s829_s2 = inlined_call_operand.vmem [shape: f32[1,640], index: 2, kind: input, shape index: {}]   ;;  %s830_s3 = inlined_call_operand.vmem [shape: f32[1,640], index: 3, kind: input, shape index: {}]   ;;  %s831_s4 = inlined_call_operand.vmem [shape: f32[1,128], index: 4, kind: input, shape index: {}]   ;;  %s832_s5 = inlined_call_operand.vmem [shape: f32[1,128], index: 5, kind: input, shape index: {}]   ;;  %s833_s6 = inlined_call_operand.vmem [shape: bf16[8,128], index: 6, kind: output, shape index: {}]  }
   0x1   :  { %s785_s23 = smov 0  }
   0x2 LB: > { %s28_s2 = sadd.s32 1, %s737_s22  ;;  %p638_p0 = scmp.ge.s32.totalorder %s741_s23, 1  ;;  %s741_s23 = sphi %s785_s23, %s16_s23   ;;  %s737_s22 = sphi %s783_s22, %s835_s22   ;;  %s733_s21 = sphi %s781_s21, %s834_s21  }
   0x3   : > { %p29_p1 = scmp.ge.s32.totalorder %s28_s2, 5  ;;  %p286_p2 = scmp.lt.s32.totalorder %s741_s23, 6 }
   0x5   : > { %s837_s2 = smov (%p29_p1, %s28_s2), 0  ;;  %p287_p3 = pnand %p638_p0, %p286_p2 }
   0x6   : > { %p343_p4 = scmp.lt.s32.totalorder (!%p287_p3), %s733_s21, 4  ;;  %s640_s3 = sshll.u32 (!%p287_p3), %s733_s21, 4 }
   0x7   : > { %290 = sbr.rel (%p287_p3) target bundleno = 280 (0x118), region = 44  ;;  %p350_p5 = scmp.lt.s32.totalorder (!%p287_p3), %s640_s3, 79 }
   0x8   : > { %p642_p6 = scmp.ne.s32.totalorder (!%p287_p3), %s733_s21, 0 }
   0xe   : > { %s344_s4 = scalar_select %p343_p4, %s733_s21, 4 }
   0xf   : > { %s839_s3 = smov (!%p350_p5, %s640_s3), 79  ;;  %381 = sbr.rel (%p642_p6) target bundleno = 22 (0x16), region = 48 }
  0x10   : > { %s639_s5 = sshll.u32 %s344_s4, 2  ;;  %s641_s27 = sshll.u32 %s839_s3, 2  ;;  %v743_v0 = vmov (!%p642_p6), 0.0  }
  0x11   : > { %s807_s26 = scalar_lea.vmem %s827_s0, %s639_s5  ;;  %s356_s30 = scalar_lea.vmem %s828_s1, %s641_s27  ;;  %382 = vst [vmem:[#allocation2] sm:$0xff] (!%p642_p6), %v743_v0 }
  0x16 PF: > { %v711_v1 = vld [vmem:[%s356_s30] sm:$0xff]   ;;  %v744_v2 = vmov 0.0   ;;  %v712_v3 = vld [vmem:[%s356_s30 + $0x8] sm:$0xff]   ;;  %vm745_vm0 = vmmov 0   ;;  %v713_v4 = vld [vmem:[%s356_s30 + $0x10] sm:$0xff]   ;;  %p651_p7 = scmp.ne.s32.totalorder %s733_s21, 4 }
  0x17   : > { %664 = vmatprep.subr.bf16.mxu0 %v744_v2  ;;  %680 = vmatprep.mubr.msk.bf16.mxu0 %vm745_vm0, %v744_v2  ;;  %v714_v5 = vld [vmem:[%s356_s30 + $0x18] sm:$0xff]   ;;  %v715_v6 = vld [vmem:[%s356_s30 + $0x20] sm:$0xff]   ;;  %v716_v7 = vld [vmem:[%s356_s30 + $0x28] sm:$0xff]  }
  0x18   : > { %665 = vmatpush3.bf16.msra.mxu0 %v711_v1  ;;  %v717_v8 = vld [vmem:[%s356_s30 + $0x30] sm:$0xff]   ;;  %v718_v9 = vld [vmem:[%s356_s30 + $0x38] sm:$0xff]   ;;  %v383_v10 = vld [vmem:[%s807_s26] sm:$0xf] }
  0x19   : > { %666 = vmatprep.subr.bf16.mxu0 %v744_v2  ;;  %v384_v11 = vld [vmem:[#allocation2] sm:$0xff] }
  0x1c   : > { %667 = vmatpush3.bf16.msra.mxu0 %v712_v3 }
  0x1d   : > { %668 = vmatprep.subr.bf16.mxu0 %v744_v2 }
  0x20   : > { %669 = vmatpush3.bf16.msra.mxu0 %v713_v4 }
  0x21   : > { %670 = vmatprep.subr.bf16.mxu0 %v744_v2 }
  0x24   : > { %671 = vmatpush3.bf16.msra.mxu0 %v714_v5 }
  0x25   : > { %672 = vmatprep.subr.bf16.mxu0 %v744_v2 }
  0x28   : > { %673 = vmatpush3.bf16.msra.mxu0 %v715_v6 }
  0x29   : > { %674 = vmatprep.subr.bf16.mxu0 %v744_v2 }
  0x2c   : > { %675 = vmatpush3.bf16.msra.mxu0 %v716_v7 }
  0x2d   : > { %676 = vmatprep.subr.bf16.mxu0 %v744_v2 }
  0x30   : > { %677 = vmatpush3.bf16.msra.mxu0 %v717_v8 }
  0x31   : > { %678 = vmatprep.subr.bf16.mxu0 %v744_v2 }
  0x34   : > { %679 = vmatpush3.bf16.msra.mxu0 %v718_v9 }
  0x37   : > { %681 = vmatmul.mubr.bf16.vlgmr.msra.gmra.mrb[0].mxu0 %v383_v10 }
 0x107   : > { %494 = sbr.rel (%p651_p7) target bundleno = 280 (0x118), region = 52 }
 0x10a   : > { %v483_v12 = vpop.f32.mrb[0].mxu0 }
 0x10b   : > { %v489_v13 = vadd.f32 %v483_v12, %v384_v11  ;;  %v682_v14 = vpop.f32.mrb[1].mxu0 }
 0x10c   : > { %v486_v15 = vpop.f32.mrb[2].mxu0 }
 0x10d   : > { %490 = vst [vmem:[#allocation2] sm:$0xff] %v489_v13  ;;  %v683_v16 = vpop.f32.mrb[3].mxu0 }
 0x114   : > { %v495_v17 = vld [vmem:[#allocation2] sm:$0xff] }
 0x115   : > { %v496_v18 = vpack.c.bf16 %v495_v17, %v495_v17 }
 0x117   : > { %497 = vst [vmem:[%s833_s6] sm:$0xf] %v496_v18 }
 0x118 PF: > { %s16_s23 = sadd.s32 1, %s741_s23   ;;  %s834_s21 = smov %s737_s22 }
 0x119   : > { %p13_p8 = scmp.ge.s32.totalorder %s16_s23, 7   ;;  %s835_s22 = smov %s837_s2 }
 0x11b   :  { %15 = sbr.rel (!%p13_p8) target bundleno = 2 (0x2), region = 97 }

// kernel: densenet_forward.36
= control target key start
LH: loop header
LB: loop body
LE: loop exit
PB: predicated region body
PF: predicated region fallthrough
CT: control target
= control target key end

     0   :  { %v215_v0 = vmov 0.0   ;;  %vm216_vm0 = vmmov 0   ;;  %s288_s4 = inlined_call_operand.vmem [shape: f32[1,128], index: 4, kind: input, shape index: {}]   ;;  %s289_s5 = inlined_call_operand.vmem [shape: f32[1,128], index: 5, kind: input, shape index: {}]   ;;  %s290_s1 = inlined_call_operand.vmem [shape: bf16[128,128], index: 1, kind: input, shape index: {}]   ;;  %s291_s0 = inlined_call_operand.vmem [shape: bf16[8,128], index: 0, kind: input, shape index: {}]   ;;  %s292_s2 = inlined_call_operand.vmem [shape: f32[1,128], index: 2, kind: input, shape index: {}]   ;;  %s293_s3 = inlined_call_operand.vmem [shape: f32[1,128], index: 3, kind: input, shape index: {}]   ;;  %s294_s6 = inlined_call_operand.vmem [shape: bf16[8,128], index: 6, kind: output, shape index: {}]  }
   0x1   :  { %185 = vmatprep.subr.bf16.mxu0 %v215_v0  ;;  %v207_v1 = vld [vmem:[%s290_s1] sm:$0xff]   ;;  %201 = vmatprep.mubr.msk.bf16.mxu0 %vm216_vm0, %v215_v0  ;;  %v208_v2 = vld [vmem:[%s290_s1 + $0x8] sm:$0xff]   ;;  %v209_v3 = vld [vmem:[%s290_s1 + $0x10] sm:$0xff]  }
   0x2   :  { %186 = vmatpush3.bf16.msra.mxu0 %v207_v1  ;;  %v210_v4 = vld [vmem:[%s290_s1 + $0x18] sm:$0xff]   ;;  %v29_v5 = vld [vmem:[%s291_s0] sm:$0xf]  ;;  %v212_v10 = vld [vmem:[%s290_s1 + $0x28] sm:$0xff]  }
   0x3   :  { %187 = vmatprep.subr.bf16.mxu0 %v215_v0  ;;  %v30_v6 = vunpack.c.l.bf16 %v29_v5  ;;  %v211_v7 = vld [vmem:[%s290_s1 + $0x20] sm:$0xff]   ;;  %v213_v13 = vld [vmem:[%s290_s1 + $0x30] sm:$0xff]   ;;  %v214_v15 = vld [vmem:[%s290_s1 + $0x38] sm:$0xff]  }
   0x4   :  { %v166_v8 = vld [vmem:[%s292_s2] ss:$0 sm:$0xff] }
   0x5   :  { %v38_v9 = vmul.f32 %v166_v8, %v30_v6  ;;  %v167_v11 = vld [vmem:[%s293_s3] ss:$0 sm:$0xff] }
   0x6   :  { %188 = vmatpush3.bf16.msra.mxu0 %v208_v2 }
   0x7   :  { %189 = vmatprep.subr.bf16.mxu0 %v215_v0  ;;  %v46_v12 = vadd.f32 %v167_v11, %v38_v9 }
   0x9   :  { %v47_v14 = vmax.f32 %v46_v12, 0.0 }
   0xa   :  { %190 = vmatpush3.bf16.msra.mxu0 %v209_v3 }
   0xb   :  { %191 = vmatprep.subr.bf16.mxu0 %v215_v0  ;;  %v49_v16 = vpack.c.bf16 %v47_v14, %v47_v14 }
   0xe   :  { %192 = vmatpush3.bf16.msra.mxu0 %v210_v4 }
   0xf   :  { %193 = vmatprep.subr.bf16.mxu0 %v215_v0 }
  0x12   :  { %194 = vmatpush3.bf16.msra.mxu0 %v211_v7 }
  0x13   :  { %195 = vmatprep.subr.bf16.mxu0 %v215_v0 }
  0x16   :  { %196 = vmatpush3.bf16.msra.mxu0 %v212_v10 }
  0x17   :  { %197 = vmatprep.subr.bf16.mxu0 %v215_v0 }
  0x1a   :  { %198 = vmatpush3.bf16.msra.mxu0 %v213_v13 }
  0x1b   :  { %199 = vmatprep.subr.bf16.mxu0 %v215_v0 }
  0x1e   :  { %200 = vmatpush3.bf16.msra.mxu0 %v214_v15 }
  0x21   :  { %202 = vmatmul.mubr.bf16.vlgmr.msra.gmra.mrb[0].mxu0 %v49_v16 }
  0xf4   :  { %v148_v17 = vpop.f32.mrb[0].mxu0 }
  0xf5   :  { %v160_v18 = vpack.c.bf16 %v148_v17, %v148_v17  ;;  %v203_v19 = vpop.f32.mrb[1].mxu0 }
  0xf6   :  { %v151_v20 = vpop.f32.mrb[2].mxu0 }
  0xf7   :  { %161 = vst [vmem:[%s294_s6] sm:$0xf] %v160_v18  ;;  %v204_v21 = vpop.f32.mrb[3].mxu0 }

// kernel: densenet_forward.41
= control target key start
LH: loop header
LB: loop body
LE: loop exit
PB: predicated region body
PF: predicated region fallthrough
CT: control target
= control target key end

     0   :  { %v31_v3 = vlaneseq  ;;  %s128_s0 = inlined_call_operand.vmem [shape: bf16[2,1,64], index: 0, kind: input, shape index: {}]   ;;  %s129_s1 = inlined_call_operand.vmem [shape: f32[1,1,64], index: 1, kind: input, shape index: {}]   ;;  %s130_s2 = inlined_call_operand.vmem [shape: f32[1,1,64], index: 2, kind: input, shape index: {}]   ;;  %s131_s3 = inlined_call_operand.hbm [shape: f32[2,64], index: 3, kind: output, shape index: {}]  }
   0x1   :  { %v15_v0 = vld [vmem:[%s128_s0] sm:$0x1]  ;;  %v16_v1 = vld [vmem:[%s128_s0 + $0x1] sm:$0x1] }
   0x2   :  { %v19_v2 = vld [vmem:[%s129_s1] sm:$0x1]  ;;  %v17_v4 = vunpack.c.l.bf16 %v15_v0  ;;  %v18_v5 = vunpack.c.l.bf16 %v16_v1 }
   0x3   :  { %8 = vsyncpa [#allocation3], 0  ;;  %v22_v6 = vld [vmem:[%s130_s2] sm:$0x1]  ;;  %v32_v7 = vshrl.u32 %v31_v3, 7  ;;  %s83_s0 = smov [#allocation2]  }
   0x4   :  { %v20_v8 = vmul.f32 %v19_v2, %v17_v4  ;;  %v21_v9 = vmul.f32 %v19_v2, %v18_v5  ;;  %s50_s20 = sshll.u32 %s83_s0, 4  ;;  %vm39_vm0 = vcmask 1041409   ;;  %vm42_vm1 = vcmask 517120   ;;  %s51_s20 = int_to_ptr.vmem [resolvable:$true] %s50_s20 }
   0x5   :  { %v33_v12 = vsub.s32 0, %v32_v7  ;;  %s59_s1 = scalar_lea.vmem %s51_s20, 32  ;;  %p64_p1 = scmp.lt.s32.totalorder %s51_s20, %s51_s20 }
   0x6   :  { %v23_v10 = vadd.f32 %v22_v6, %v20_v8  ;;  %v24_v11 = vadd.f32 %v22_v6, %v21_v9  ;;  %p60_p0 = scmp.ne.s32.totalorder %s51_s20, %s59_s1  ;;  %p65_p2 = scmp.lt.s32.totalorder %s59_s1, %s59_s1 }
   0x8   :  { %v25_v13 = vmax.f32 %v23_v10, 0.0  ;;  %v26_v14 = vmax.f32 %v24_v11, 0.0  ;;  %p66_p3 = por %p65_p2, %p64_p1 }
   0xa   :  { %v34_v15 = vrot.slane %v25_v13, %v33_v12  ;;  %v38_v16 = vrot.slane %v26_v14, %v33_v12  ;;  %p67_p4 = pnand %p66_p3, %p60_p0 }
   0xc   :  { %v40_v17 = vsel %vm39_vm0, %v38_v16, %v34_v15 }
   0xd   :  { %43 = vst.msk [vmem:[#allocation2] sm:$0x3] %vm42_vm1, %v40_v17 }
   0xe   :  { %70 = shalt.err (!%p67_p4)
}
   0xf   :  { %s71_s22 = scalar_lea.hbm %s131_s3, 32 }
  0x10   :  { %p72_p5 = scmp.ne.s32.totalorder %s131_s3, %s71_s22  ;;  %p75_p6 = scmp.lt.u32.totalorder %s71_s22, %s131_s3 }
  0x12   :  { %p77_p7 = pnand %p75_p6, %p72_p5 }
  0x14   :  { %80 = shalt.err (!%p77_p7)
}
  0x15   :  { %53 = dma.vmem_to_hbm [thread:$0]  %s51_s20, 32, %s131_s3, [#allocation3]  }
  0x16   :  { %81 = dma.done.wait [#allocation3], 32  }
  0x17   :  { %82 = vsyncadd [#allocation3], 4294967264 }
  0x18   :  { %57 = vsyncpa [#allocation3], 1 }

</bundles_post_ra>
